<compile_context>
chip_gen: v5e
topology: v5e:2x2
jax: 0.10.0
libtpu: 0.0.40
codegen_flags: <defaults>
</compile_context>

<pallas_src>
import functools

import jax
import jax.numpy as jnp
from jax.experimental import pallas as pl
from jax.experimental.pallas import tpu as pltpu


# ----------------------------------------------------------------------------
# Model config (small, synthetic)
# ----------------------------------------------------------------------------
VOCAB = 50          # token vocab size
EMB = 32            # config.embedding.token.dimension
HID = 32            # RNN hidden per direction (bidirectional -> 2*HID features)
KERNEL_SIZES = (2, 3)
KERNEL_NUM = 16     # Conv1d out_channels
TOP_K = 1           # topK max pooling
NUM_LABELS = 6      # |label_map|
NODE_DIM = 32       # structure-encoder node dim


# ----------------------------------------------------------------------------
# Fused forward kernel
# ----------------------------------------------------------------------------
def _himatch_fused_kernel(
    x_ref,        # (S, B, E)   f32  time-major token embeddings
    wih_ref,      # (E, 6H)     bf16 [fwd r,z,n | bwd r,z,n] input weights
    whh_ref,      # (2, H, 3H)  bf16 hidden weights per direction
    bih_ref,      # (1, 6H)     f32
    bhh_ref,      # (2, 1, 3H)  f32
    w2_ref,       # (2*2H, C)   bf16 tap-stacked conv (kernel_size=2)
    b2_ref,       # (1, C)      f32
    w3_ref,       # (3*2H, C)   bf16 tap-stacked conv (kernel_size=3)
    b3_ref,       # (1, C)      f32
    wt_ref,       # (2C, L*D)   bf16 HiMatchTP transformation
    bt_ref,       # (1, L*D)    f32
    wg_ref,       # (L*D, L*D)  bf16 Kronecker-folded hierarchy-GCN weight
    bg_ref,       # (1, L*D)    f32
    wc_ref,       # (L*D, L)    bf16 classifier
    bc_ref,       # (1, L)      f32
    out_ref,      # (B, L)      f32  logits
    gi_f_ref,     # scratch (S, B, 3H) f32  hoisted fwd input-gate projections
    gi_b_ref,     # scratch (S, B, 3H) f32  hoisted bwd input-gate projections
    rnn_f_ref,    # scratch (S, B, H)  f32  fwd GRU outputs
    rnn_b_ref,    # scratch (S, B, H)  f32  bwd GRU outputs
):
    S, B, _ = x_ref.shape
    H = whh_ref.shape[1]
    D2 = 2 * H
    bf16 = jnp.bfloat16

    # ---- BiGRU: hoisted input projection (one MXU push for both directions) --
    gi = jnp.einsum('sbe,eg->sbg', x_ref[...].astype(bf16), wih_ref[...],
                    preferred_element_type=jnp.float32) + bih_ref[...]  # (S,B,6H)
    gi_f_ref[...] = gi[:, :, :3 * H]
    gi_b_ref[...] = gi[:, :, 3 * H:]

    whh_f = whh_ref[0]
    whh_b = whh_ref[1]
    bhh_f = bhh_ref[0]
    bhh_b = bhh_ref[1]

    def gru_cell(gi_t, h, whh, bhh):
        # PyTorch GRU cell (gate order r, z, n); gate math kept in f32.
        gh = jnp.dot(h.astype(bf16), whh, preferred_element_type=jnp.float32) + bhh
        r = jax.nn.sigmoid(gi_t[:, :H] + gh[:, :H])
        z = jax.nn.sigmoid(gi_t[:, H:2 * H] + gh[:, H:2 * H])
        n = jnp.tanh(gi_t[:, 2 * H:] + r * gh[:, 2 * H:])
        return (1.0 - z) * n + z * h

    def step(i, carry):
        hf, hb = carry
        hf = gru_cell(gi_f_ref[i], hf, whh_f, bhh_f)      # forward, time i
        rnn_f_ref[i] = hf
        tb = S - 1 - i                                     # backward, time S-1-i
        hb = gru_cell(gi_b_ref[tb], hb, whh_b, bhh_b)
        rnn_b_ref[tb] = hb
        return hf, hb

    h0 = jnp.zeros((B, H), jnp.float32)
    jax.lax.fori_loop(0, S, step, (h0, h0), unroll=True)

    # ---- Conv1d bank (tap-stacked matmuls, shared padded input) + ReLU + max --
    # Both kernel sizes (2, 3) use padding = k // 2 = 1, so one padded tensor
    # serves both convolutions.  Everything stays time-major (no transposes);
    # the max over positions is order-independent.
    rnn = jnp.concatenate([rnn_f_ref[...], rnn_b_ref[...]], axis=-1)   # (S, B, 2H)
    zpad = jnp.zeros((1, B, D2), jnp.float32)
    xp = jnp.concatenate([zpad, rnn, zpad], axis=0)                    # (S+2, B, 2H)

    def conv_feat(w, b):
        k = w.shape[0] // D2
        P = (S + 2) - k + 1                                 # = PyTorch Conv1d out len
        taps = jnp.concatenate([xp[j:j + P] for j in range(k)], axis=-1)  # (P,B,k*2H)
        y = jnp.einsum('pbf,fc->pbc', taps.astype(bf16), w,
                       preferred_element_type=jnp.float32) + b
        return jnp.max(jax.nn.relu(y), axis=0)              # top_k = 1 -> (B, C)

    text = jnp.concatenate([conv_feat(w2_ref[...], b2_ref[...]),
                            conv_feat(w3_ref[...], b3_ref[...])], axis=-1)  # (B, 2C)

    # ---- HiMatchTP: transformation linear -> hierarchy GCN -> classifier -----
    t = jnp.dot(text.astype(bf16), wt_ref[...],
                preferred_element_type=jnp.float32) + bt_ref[...]        # (B, L*D)
    # GCN is pre-folded into one (L*D, L*D) matrix (Kronecker products of the
    # adjacency matrices with the per-edge-type weights), so no (B, L, D)
    # tensors are ever materialized inside the kernel.
    g = jax.nn.relu(jnp.dot(t.astype(bf16), wg_ref[...],
                            preferred_element_type=jnp.float32) + bg_ref[...])
    logits = jnp.dot(g.astype(bf16), wc_ref[...],
                     preferred_element_type=jnp.float32) + bc_ref[...]   # (B, L)
    out_ref[...] = logits.astype(out_ref.dtype)


# ----------------------------------------------------------------------------
# Parameter init (same layout as the previous version) + host-side folding
# ----------------------------------------------------------------------------
def init_params(key):
    ks = list(jax.random.split(key, 24))
    nk = lambda: ks.pop()
    s = 0.02
    p = {}
    p['embedding'] = s * jax.random.normal(nk(), (VOCAB, EMB), jnp.float32)
    # BiGRU
    for d in ('f', 'b'):
        p[f'gru_{d}_wih'] = s * jax.random.normal(nk(), (EMB, 3 * HID), jnp.float32)
        p[f'gru_{d}_whh'] = s * jax.random.normal(nk(), (HID, 3 * HID), jnp.float32)
        p[f'gru_{d}_bih'] = jnp.zeros((1, 3 * HID), jnp.float32)
        p[f'gru_{d}_bhh'] = jnp.zeros((1, 3 * HID), jnp.float32)
    # CNN bank
    p['convs'] = []
    for k in KERNEL_SIZES:
        w = s * jax.random.normal(nk(), (k, 2 * HID, KERNEL_NUM), jnp.float32)
        b = jnp.zeros((1, KERNEL_NUM), jnp.float32)
        p['convs'].append((w, b))
    # HiMatchTP transformation: text feature -> num_labels * node_dim
    text_dim = len(KERNEL_SIZES) * TOP_K * KERNEL_NUM
    p['trans_w'] = s * jax.random.normal(nk(), (text_dim, NUM_LABELS * NODE_DIM), jnp.float32)
    p['trans_b'] = jnp.zeros((1, NUM_LABELS * NODE_DIM), jnp.float32)
    # StructureEncoder hierarchy GCN (chain hierarchy: i -> i+1)
    a_td = jnp.zeros((NUM_LABELS, NUM_LABELS), jnp.float32)
    for i in range(NUM_LABELS - 1):
        a_td = a_td.at[i + 1, i].set(1.0)        # child receives from parent
    p['a_td'] = a_td
    p['a_bu'] = a_td.T
    p['gcn_w_td'] = s * jax.random.normal(nk(), (NODE_DIM, NODE_DIM), jnp.float32)
    p['gcn_w_bu'] = s * jax.random.normal(nk(), (NODE_DIM, NODE_DIM), jnp.float32)
    p['gcn_w_self'] = s * jax.random.normal(nk(), (NODE_DIM, NODE_DIM), jnp.float32)
    p['gcn_b'] = jnp.zeros((1, NODE_DIM), jnp.float32)
    # Classifier
    p['cls_w'] = s * jax.random.normal(nk(), (NUM_LABELS * NODE_DIM, NUM_LABELS), jnp.float32)
    p['cls_b'] = jnp.zeros((1, NUM_LABELS), jnp.float32)
    return p


def prepare_fused_params(p):
    """One-time host-side weight folding / packing for the fused kernel."""
    bf16 = jnp.bfloat16
    f = {}
    f['embedding'] = p['embedding']
    # BiGRU: concat directions on the gate axis, stack hidden weights.
    f['wih'] = jnp.concatenate([p['gru_f_wih'], p['gru_b_wih']], axis=1).astype(bf16)
    f['whh'] = jnp.stack([p['gru_f_whh'], p['gru_b_whh']], axis=0).astype(bf16)
    f['bih'] = jnp.concatenate([p['gru_f_bih'], p['gru_b_bih']], axis=1)
    f['bhh'] = jnp.stack([p['gru_f_bhh'], p['gru_b_bhh']], axis=0)
    # Conv1d: tap-stacked weights (k, 2H, C) -> (k*2H, C).
    (w2, b2), (w3, b3) = p['convs']
    f['w2'] = w2.reshape(-1, w2.shape[-1]).astype(bf16)
    f['b2'] = b2
    f['w3'] = w3.reshape(-1, w3.shape[-1]).astype(bf16)
    f['b3'] = b3
    # Transformation linear.
    f['wt'] = p['trans_w'].astype(bf16)
    f['bt'] = p['trans_b']
    # Hierarchy GCN folded into one (L*D, L*D) matrix:
    #   vec_row(A_td T W_td + A_bu T W_bu + T W_self)
    #     = vec_row(T) @ (kron(A_td^T, W_td) + kron(A_bu^T, W_bu) + kron(I, W_self))
    eye = jnp.eye(NUM_LABELS, dtype=jnp.float32)
    wg = (jnp.kron(p['a_td'].T, p['gcn_w_td'])
          + jnp.kron(p['a_bu'].T, p['gcn_w_bu'])
          + jnp.kron(eye, p['gcn_w_self']))
    f['wg'] = wg.astype(bf16)
    f['bg'] = jnp.tile(p['gcn_b'], (1, NUM_LABELS))
    # Classifier.
    f['wc'] = p['cls_w'].astype(bf16)
    f['bc'] = p['cls_b']
    return f


# ----------------------------------------------------------------------------
# Forward (HiMatch.forward, mode != 'TRAIN', non-bert path) -> logits (B, L)
# ----------------------------------------------------------------------------
def himatch_forward_eval(fp, tokens):
    B, S = tokens.shape
    H = fp['whh'].shape[1]
    L = fp['wc'].shape[-1]

    # EmbeddingLayer (gather is glue, outside the kernel).
    emb = jnp.take(fp['embedding'], tokens, axis=0)            # (B, S, E)
    x_tm = jnp.transpose(emb, (1, 0, 2))                       # (S, B, E) time-major

    return pl.pallas_call(
        _himatch_fused_kernel,
        out_shape=jax.ShapeDtypeStruct((B, L), jnp.float32),
        scratch_shapes=[
            pltpu.VMEM((S, B, 3 * H), jnp.float32),   # gi forward
            pltpu.VMEM((S, B, 3 * H), jnp.float32),   # gi backward
            pltpu.VMEM((S, B, H), jnp.float32),       # rnn forward outputs
            pltpu.VMEM((S, B, H), jnp.float32),       # rnn backward outputs
        ],
    )(x_tm,
      fp['wih'], fp['whh'], fp['bih'], fp['bhh'],
      fp['w2'], fp['b2'], fp['w3'], fp['b3'],
      fp['wt'], fp['bt'], fp['wg'], fp['bg'], fp['wc'], fp['bc'])


if __name__ == "__main__":
    key = jax.random.PRNGKey(0)
    k_param, k_tok = jax.random.split(key)
    params = init_params(k_param)
    fused = prepare_fused_params(params)

    B, S = 2, 8
    tokens = jax.random.randint(k_tok, (B, S), 1, VOCAB, dtype=jnp.int32)

    fwd_fn = jax.jit(functools.partial(himatch_forward_eval, fused))
    logits = fwd_fn(tokens)
    jax.block_until_ready(logits)

    assert logits.shape == (B, NUM_LABELS)
    assert bool(jnp.all(jnp.isfinite(logits)))
    print("KERNEL_OK")
</pallas_src>

<mosaic_0001>
module attributes {stable_mosaic.version = 11 : i64} {
  func.func @_himatch_fused_kernel(%arg0: memref<8x2x32xf32, #tpu.memory_space<vmem>>, %arg1: memref<32x192xbf16, #tpu.memory_space<vmem>>, %arg2: memref<2x32x96xbf16, #tpu.memory_space<vmem>>, %arg3: memref<1x192xf32, #tpu.memory_space<vmem>>, %arg4: memref<2x1x96xf32, #tpu.memory_space<vmem>>, %arg5: memref<128x16xbf16, #tpu.memory_space<vmem>>, %arg6: memref<1x16xf32, #tpu.memory_space<vmem>>, %arg7: memref<192x16xbf16, #tpu.memory_space<vmem>>, %arg8: memref<1x16xf32, #tpu.memory_space<vmem>>, %arg9: memref<32x192xbf16, #tpu.memory_space<vmem>>, %arg10: memref<1x192xf32, #tpu.memory_space<vmem>>, %arg11: memref<192x192xbf16, #tpu.memory_space<vmem>>, %arg12: memref<1x192xf32, #tpu.memory_space<vmem>>, %arg13: memref<192x6xbf16, #tpu.memory_space<vmem>>, %arg14: memref<1x6xf32, #tpu.memory_space<vmem>>, %arg15: memref<2x6xf32, #tpu.memory_space<vmem>>, %arg16: memref<8x2x96xf32, #tpu.memory_space<vmem>>, %arg17: memref<8x2x96xf32, #tpu.memory_space<vmem>>, %arg18: memref<8x2x32xf32, #tpu.memory_space<vmem>>, %arg19: memref<8x2x32xf32, #tpu.memory_space<vmem>>) attributes {dimension_semantics = [], scalar_prefetch = 0 : i64, scratch_operands = 4 : i64, tpu.core_type = #tpu.core_type<tc>} {
    %c0 = arith.constant 0 : index
    %c0_0 = arith.constant 0 : index
    %c0_1 = arith.constant 0 : index
    %0 = vector.load %arg0[%c0, %c0_0, %c0_1] : memref<8x2x32xf32, #tpu.memory_space<vmem>>, vector<8x2x32xf32>
    %1 = arith.truncf %0 : vector<8x2x32xf32> to vector<8x2x32xbf16>
    %c0_2 = arith.constant 0 : index
    %c0_3 = arith.constant 0 : index
    %2 = vector.load %arg1[%c0_2, %c0_3] : memref<32x192xbf16, #tpu.memory_space<vmem>>, vector<32x192xbf16>
    "tpu.trace_start"() <{level = 10 : i32, message = "sbe,eg->sbg"}> : () -> ()
    %cst = arith.constant dense<0.000000e+00> : vector<8x2x192xf32>
    %3 = tpu.matmul %1, %2, %cst {dimension_numbers = #tpu.dot_dimension_numbers<[2], [0], [0, 1], [1], [0, 0, 0, 1, 1, 1], [], []>} : vector<8x2x32xbf16>, vector<32x192xbf16>, vector<8x2x192xf32> -> vector<8x2x192xf32>
    "tpu.trace_stop"() : () -> ()
    %c0_4 = arith.constant 0 : index
    %c0_5 = arith.constant 0 : index
    %4 = vector.load %arg3[%c0_4, %c0_5] : memref<1x192xf32, #tpu.memory_space<vmem>>, vector<1x192xf32>
    %5 = vector.shape_cast %4 : vector<1x192xf32> to vector<1x1x192xf32>
    %6 = vector.broadcast %5 : vector<1x1x192xf32> to vector<8x2x192xf32>
    %7 = arith.addf %3, %6 : vector<8x2x192xf32>
    %8 = vector.extract_strided_slice %7 {offsets = [0, 0, 0], sizes = [8, 2, 96], strides = [1, 1, 1]} : vector<8x2x192xf32> to vector<8x2x96xf32>
    %c0_6 = arith.constant 0 : index
    %c0_7 = arith.constant 0 : index
    %c0_8 = arith.constant 0 : index
    %9 = vector.load %arg16[%c0_6, %c0_7, %c0_8] : memref<8x2x96xf32, #tpu.memory_space<vmem>>, vector<8x2x96xf32>
    tpu.vector_store %arg16[%c0_6, %c0_7, %c0_8], %8 {strides = array<i32>} : memref<8x2x96xf32, #tpu.memory_space<vmem>>, vector<8x2x96xf32>,
    %10 = vector.extract_strided_slice %7 {offsets = [0, 0, 96], sizes = [8, 2, 96], strides = [1, 1, 1]} : vector<8x2x192xf32> to vector<8x2x96xf32>
    %c0_9 = arith.constant 0 : index
    %c0_10 = arith.constant 0 : index
    %c0_11 = arith.constant 0 : index
    %11 = vector.load %arg17[%c0_9, %c0_10, %c0_11] : memref<8x2x96xf32, #tpu.memory_space<vmem>>, vector<8x2x96xf32>
    tpu.vector_store %arg17[%c0_9, %c0_10, %c0_11], %10 {strides = array<i32>} : memref<8x2x96xf32, #tpu.memory_space<vmem>>, vector<8x2x96xf32>,
    %c0_12 = arith.constant 0 : index
    %c0_13 = arith.constant 0 : index
    %c0_14 = arith.constant 0 : index
    %12 = vector.load %arg2[%c0_12, %c0_13, %c0_14] : memref<2x32x96xbf16, #tpu.memory_space<vmem>>, vector<1x32x96xbf16>
    %13 = vector.shape_cast %12 : vector<1x32x96xbf16> to vector<32x96xbf16>
    %c1 = arith.constant 1 : index
    %c0_15 = arith.constant 0 : index
    %c0_16 = arith.constant 0 : index
    %14 = vector.load %arg2[%c1, %c0_15, %c0_16] : memref<2x32x96xbf16, #tpu.memory_space<vmem>>, vector<1x32x96xbf16>
    %15 = vector.shape_cast %14 : vector<1x32x96xbf16> to vector<32x96xbf16>
    %c0_17 = arith.constant 0 : index
    %c0_18 = arith.constant 0 : index
    %c0_19 = arith.constant 0 : index
    %16 = vector.load %arg4[%c0_17, %c0_18, %c0_19] : memref<2x1x96xf32, #tpu.memory_space<vmem>>, vector<1x1x96xf32>
    %17 = vector.shape_cast %16 : vector<1x1x96xf32> to vector<1x96xf32>
    %c1_20 = arith.constant 1 : index
    %c0_21 = arith.constant 0 : index
    %c0_22 = arith.constant 0 : index
    %18 = vector.load %arg4[%c1_20, %c0_21, %c0_22] : memref<2x1x96xf32, #tpu.memory_space<vmem>>, vector<1x1x96xf32>
    %19 = vector.shape_cast %18 : vector<1x1x96xf32> to vector<1x96xf32>
    %cst_23 = arith.constant 0.000000e+00 : f32
    %20 = vector.broadcast %cst_23 : f32 to vector<2x32xf32>
    %c0_i32 = arith.constant 0 : i32
    %21 = arith.index_cast %c0_i32 : i32 to index
    %c0_24 = arith.constant 0 : index
    %c0_25 = arith.constant 0 : index
    %22 = vector.load %arg16[%21, %c0_24, %c0_25] : memref<8x2x96xf32, #tpu.memory_space<vmem>>, vector<1x2x96xf32>
    %23 = vector.shape_cast %22 : vector<1x2x96xf32> to vector<2x96xf32>
    %24 = arith.truncf %20 : vector<2x32xf32> to vector<2x32xbf16>
    %cst_26 = arith.constant dense<0.000000e+00> : vector<2x96xf32>
    %25 = tpu.matmul %24, %13, %cst_26 {dimension_numbers = #tpu.dot_dimension_numbers<[1], [0], [0], [1], [0, 0, 1, 1], [], []>} : vector<2x32xbf16>, vector<32x96xbf16>, vector<2x96xf32> -> vector<2x96xf32>
    %26 = vector.broadcast %17 : vector<1x96xf32> to vector<2x96xf32>
    %27 = arith.addf %25, %26 : vector<2x96xf32>
    %28 = vector.extract_strided_slice %23 {offsets = [0, 0], sizes = [2, 32], strides = [1, 1]} : vector<2x96xf32> to vector<2x32xf32>
    %29 = vector.extract_strided_slice %27 {offsets = [0, 0], sizes = [2, 32], strides = [1, 1]} : vector<2x96xf32> to vector<2x32xf32>
    %30 = arith.addf %28, %29 : vector<2x32xf32>
    %31 = arith.negf %30 : vector<2x32xf32>
    %32 = math.exp %31 : vector<2x32xf32>
    %cst_27 = arith.constant 1.000000e+00 : f32
    %33 = vector.broadcast %cst_27 : f32 to vector<2x32xf32>
    %34 = arith.addf %33, %32 : vector<2x32xf32>
    %35 = arith.divf %33, %34 : vector<2x32xf32>
    %36 = vector.extract_strided_slice %23 {offsets = [0, 32], sizes = [2, 32], strides = [1, 1]} : vector<2x96xf32> to vector<2x32xf32>
    %37 = vector.extract_strided_slice %27 {offsets = [0, 32], sizes = [2, 32], strides = [1, 1]} : vector<2x96xf32> to vector<2x32xf32>
    %38 = arith.addf %36, %37 : vector<2x32xf32>
    %39 = arith.negf %38 : vector<2x32xf32>
    %40 = math.exp %39 : vector<2x32xf32>
    %cst_28 = arith.constant 1.000000e+00 : f32
    %41 = vector.broadcast %cst_28 : f32 to vector<2x32xf32>
    %42 = arith.addf %41, %40 : vector<2x32xf32>
    %43 = arith.divf %41, %42 : vector<2x32xf32>
    %44 = vector.extract_strided_slice %23 {offsets = [0, 64], sizes = [2, 32], strides = [1, 1]} : vector<2x96xf32> to vector<2x32xf32>
    %45 = vector.extract_strided_slice %27 {offsets = [0, 64], sizes = [2, 32], strides = [1, 1]} : vector<2x96xf32> to vector<2x32xf32>
    %46 = arith.mulf %35, %45 : vector<2x32xf32>
    %47 = arith.addf %44, %46 : vector<2x32xf32>
    %48 = math.tanh %47 : vector<2x32xf32>
    %cst_29 = arith.constant 1.000000e+00 : f32
    %49 = vector.broadcast %cst_29 : f32 to vector<2x32xf32>
    %50 = arith.subf %49, %43 : vector<2x32xf32>
    %51 = arith.mulf %50, %48 : vector<2x32xf32>
    %52 = arith.mulf %43, %20 : vector<2x32xf32>
    %53 = arith.addf %51, %52 : vector<2x32xf32>
    %54 = arith.index_cast %c0_i32 : i32 to index
    %c0_30 = arith.constant 0 : index
    %c0_31 = arith.constant 0 : index
    %55 = vector.load %arg18[%54, %c0_30, %c0_31] : memref<8x2x32xf32, #tpu.memory_space<vmem>>, vector<1x2x32xf32>
    %56 = vector.shape_cast %55 : vector<1x2x32xf32> to vector<2x32xf32>
    %57 = vector.shape_cast %53 : vector<2x32xf32> to vector<1x2x32xf32>
    tpu.vector_store %arg18[%54, %c0_30, %c0_31], %57 {strides = array<i32>} : memref<8x2x32xf32, #tpu.memory_space<vmem>>, vector<1x2x32xf32>,
    %c7_i32 = arith.constant 7 : i32
    %58 = arith.subi %c7_i32, %c0_i32 : i32
    %59 = arith.index_cast %58 : i32 to index
    %c0_32 = arith.constant 0 : index
    %c0_33 = arith.constant 0 : index
    %60 = vector.load %arg17[%59, %c0_32, %c0_33] : memref<8x2x96xf32, #tpu.memory_space<vmem>>, vector<1x2x96xf32>
    %61 = vector.shape_cast %60 : vector<1x2x96xf32> to vector<2x96xf32>
    %62 = arith.truncf %20 : vector<2x32xf32> to vector<2x32xbf16>
    %cst_34 = arith.constant dense<0.000000e+00> : vector<2x96xf32>
    %63 = tpu.matmul %62, %15, %cst_34 {dimension_numbers = #tpu.dot_dimension_numbers<[1], [0], [0], [1], [0, 0, 1, 1], [], []>} : vector<2x32xbf16>, vector<32x96xbf16>, vector<2x96xf32> -> vector<2x96xf32>
    %64 = vector.broadcast %19 : vector<1x96xf32> to vector<2x96xf32>
    %65 = arith.addf %63, %64 : vector<2x96xf32>
    %66 = vector.extract_strided_slice %61 {offsets = [0, 0], sizes = [2, 32], strides = [1, 1]} : vector<2x96xf32> to vector<2x32xf32>
    %67 = vector.extract_strided_slice %65 {offsets = [0, 0], sizes = [2, 32], strides = [1, 1]} : vector<2x96xf32> to vector<2x32xf32>
    %68 = arith.addf %66, %67 : vector<2x32xf32>
    %69 = arith.negf %68 : vector<2x32xf32>
    %70 = math.exp %69 : vector<2x32xf32>
    %cst_35 = arith.constant 1.000000e+00 : f32
    %71 = vector.broadcast %cst_35 : f32 to vector<2x32xf32>
    %72 = arith.addf %71, %70 : vector<2x32xf32>
    %73 = arith.divf %71, %72 : vector<2x32xf32>
    %74 = vector.extract_strided_slice %61 {offsets = [0, 32], sizes = [2, 32], strides = [1, 1]} : vector<2x96xf32> to vector<2x32xf32>
    %75 = vector.extract_strided_slice %65 {offsets = [0, 32], sizes = [2, 32], strides = [1, 1]} : vector<2x96xf32> to vector<2x32xf32>
    %76 = arith.addf %74, %75 : vector<2x32xf32>
    %77 = arith.negf %76 : vector<2x32xf32>
    %78 = math.exp %77 : vector<2x32xf32>
    %cst_36 = arith.constant 1.000000e+00 : f32
    %79 = vector.broadcast %cst_36 : f32 to vector<2x32xf32>
    %80 = arith.addf %79, %78 : vector<2x32xf32>
    %81 = arith.divf %79, %80 : vector<2x32xf32>
    %82 = vector.extract_strided_slice %61 {offsets = [0, 64], sizes = [2, 32], strides = [1, 1]} : vector<2x96xf32> to vector<2x32xf32>
    %83 = vector.extract_strided_slice %65 {offsets = [0, 64], sizes = [2, 32], strides = [1, 1]} : vector<2x96xf32> to vector<2x32xf32>
    %84 = arith.mulf %73, %83 : vector<2x32xf32>
    %85 = arith.addf %82, %84 : vector<2x32xf32>
    %86 = math.tanh %85 : vector<2x32xf32>
    %cst_37 = arith.constant 1.000000e+00 : f32
    %87 = vector.broadcast %cst_37 : f32 to vector<2x32xf32>
    %88 = arith.subf %87, %81 : vector<2x32xf32>
    %89 = arith.mulf %88, %86 : vector<2x32xf32>
    %90 = arith.mulf %81, %20 : vector<2x32xf32>
    %91 = arith.addf %89, %90 : vector<2x32xf32>
    %92 = arith.index_cast %58 : i32 to index
    %c0_38 = arith.constant 0 : index
    %c0_39 = arith.constant 0 : index
    %93 = vector.load %arg19[%92, %c0_38, %c0_39] : memref<8x2x32xf32, #tpu.memory_space<vmem>>, vector<1x2x32xf32>
    %94 = vector.shape_cast %93 : vector<1x2x32xf32> to vector<2x32xf32>
    %95 = vector.shape_cast %91 : vector<2x32xf32> to vector<1x2x32xf32>
    tpu.vector_store %arg19[%92, %c0_38, %c0_39], %95 {strides = array<i32>} : memref<8x2x32xf32, #tpu.memory_space<vmem>>, vector<1x2x32xf32>,
    %c1_i32 = arith.constant 1 : i32
    %96 = arith.index_cast %c1_i32 : i32 to index
    %c0_40 = arith.constant 0 : index
    %c0_41 = arith.constant 0 : index
    %97 = vector.load %arg16[%96, %c0_40, %c0_41] : memref<8x2x96xf32, #tpu.memory_space<vmem>>, vector<1x2x96xf32>
    %98 = vector.shape_cast %97 : vector<1x2x96xf32> to vector<2x96xf32>
    %99 = arith.truncf %53 : vector<2x32xf32> to vector<2x32xbf16>
    %cst_42 = arith.constant dense<0.000000e+00> : vector<2x96xf32>
    %100 = tpu.matmul %99, %13, %cst_42 {dimension_numbers = #tpu.dot_dimension_numbers<[1], [0], [0], [1], [0, 0, 1, 1], [], []>} : vector<2x32xbf16>, vector<32x96xbf16>, vector<2x96xf32> -> vector<2x96xf32>
    %101 = vector.broadcast %17 : vector<1x96xf32> to vector<2x96xf32>
    %102 = arith.addf %100, %101 : vector<2x96xf32>
    %103 = vector.extract_strided_slice %98 {offsets = [0, 0], sizes = [2, 32], strides = [1, 1]} : vector<2x96xf32> to vector<2x32xf32>
    %104 = vector.extract_strided_slice %102 {offsets = [0, 0], sizes = [2, 32], strides = [1, 1]} : vector<2x96xf32> to vector<2x32xf32>
    %105 = arith.addf %103, %104 : vector<2x32xf32>
    %106 = arith.negf %105 : vector<2x32xf32>
    %107 = math.exp %106 : vector<2x32xf32>
    %cst_43 = arith.constant 1.000000e+00 : f32
    %108 = vector.broadcast %cst_43 : f32 to vector<2x32xf32>
    %109 = arith.addf %108, %107 : vector<2x32xf32>
    %110 = arith.divf %108, %109 : vector<2x32xf32>
    %111 = vector.extract_strided_slice %98 {offsets = [0, 32], sizes = [2, 32], strides = [1, 1]} : vector<2x96xf32> to vector<2x32xf32>
    %112 = vector.extract_strided_slice %102 {offsets = [0, 32], sizes = [2, 32], strides = [1, 1]} : vector<2x96xf32> to vector<2x32xf32>
    %113 = arith.addf %111, %112 : vector<2x32xf32>
    %114 = arith.negf %113 : vector<2x32xf32>
    %115 = math.exp %114 : vector<2x32xf32>
    %cst_44 = arith.constant 1.000000e+00 : f32
    %116 = vector.broadcast %cst_44 : f32 to vector<2x32xf32>
    %117 = arith.addf %116, %115 : vector<2x32xf32>
    %118 = arith.divf %116, %117 : vector<2x32xf32>
    %119 = vector.extract_strided_slice %98 {offsets = [0, 64], sizes = [2, 32], strides = [1, 1]} : vector<2x96xf32> to vector<2x32xf32>
    %120 = vector.extract_strided_slice %102 {offsets = [0, 64], sizes = [2, 32], strides = [1, 1]} : vector<2x96xf32> to vector<2x32xf32>
    %121 = arith.mulf %110, %120 : vector<2x32xf32>
    %122 = arith.addf %119, %121 : vector<2x32xf32>
    %123 = math.tanh %122 : vector<2x32xf32>
    %cst_45 = arith.constant 1.000000e+00 : f32
    %124 = vector.broadcast %cst_45 : f32 to vector<2x32xf32>
    %125 = arith.subf %124, %118 : vector<2x32xf32>
    %126 = arith.mulf %125, %123 : vector<2x32xf32>
    %127 = arith.mulf %118, %53 : vector<2x32xf32>
    %128 = arith.addf %126, %127 : vector<2x32xf32>
    %129 = arith.index_cast %c1_i32 : i32 to index
    %c0_46 = arith.constant 0 : index
    %c0_47 = arith.constant 0 : index
    %130 = vector.load %arg18[%129, %c0_46, %c0_47] : memref<8x2x32xf32, #tpu.memory_space<vmem>>, vector<1x2x32xf32>
    %131 = vector.shape_cast %130 : vector<1x2x32xf32> to vector<2x32xf32>
    %132 = vector.shape_cast %128 : vector<2x32xf32> to vector<1x2x32xf32>
    tpu.vector_store %arg18[%129, %c0_46, %c0_47], %132 {strides = array<i32>} : memref<8x2x32xf32, #tpu.memory_space<vmem>>, vector<1x2x32xf32>,
    %c7_i32_48 = arith.constant 7 : i32
    %133 = arith.subi %c7_i32_48, %c1_i32 : i32
    %134 = arith.index_cast %133 : i32 to index
    %c0_49 = arith.constant 0 : index
    %c0_50 = arith.constant 0 : index
    %135 = vector.load %arg17[%134, %c0_49, %c0_50] : memref<8x2x96xf32, #tpu.memory_space<vmem>>, vector<1x2x96xf32>
    %136 = vector.shape_cast %135 : vector<1x2x96xf32> to vector<2x96xf32>
    %137 = arith.truncf %91 : vector<2x32xf32> to vector<2x32xbf16>
    %cst_51 = arith.constant dense<0.000000e+00> : vector<2x96xf32>
    %138 = tpu.matmul %137, %15, %cst_51 {dimension_numbers = #tpu.dot_dimension_numbers<[1], [0], [0], [1], [0, 0, 1, 1], [], []>} : vector<2x32xbf16>, vector<32x96xbf16>, vector<2x96xf32> -> vector<2x96xf32>
    %139 = vector.broadcast %19 : vector<1x96xf32> to vector<2x96xf32>
    %140 = arith.addf %138, %139 : vector<2x96xf32>
    %141 = vector.extract_strided_slice %136 {offsets = [0, 0], sizes = [2, 32], strides = [1, 1]} : vector<2x96xf32> to vector<2x32xf32>
    %142 = vector.extract_strided_slice %140 {offsets = [0, 0], sizes = [2, 32], strides = [1, 1]} : vector<2x96xf32> to vector<2x32xf32>
    %143 = arith.addf %141, %142 : vector<2x32xf32>
    %144 = arith.negf %143 : vector<2x32xf32>
    %145 = math.exp %144 : vector<2x32xf32>
    %cst_52 = arith.constant 1.000000e+00 : f32
    %146 = vector.broadcast %cst_52 : f32 to vector<2x32xf32>
    %147 = arith.addf %146, %145 : vector<2x32xf32>
    %148 = arith.divf %146, %147 : vector<2x32xf32>
    %149 = vector.extract_strided_slice %136 {offsets = [0, 32], sizes = [2, 32], strides = [1, 1]} : vector<2x96xf32> to vector<2x32xf32>
    %150 = vector.extract_strided_slice %140 {offsets = [0, 32], sizes = [2, 32], strides = [1, 1]} : vector<2x96xf32> to vector<2x32xf32>
    %151 = arith.addf %149, %150 : vector<2x32xf32>
    %152 = arith.negf %151 : vector<2x32xf32>
    %153 = math.exp %152 : vector<2x32xf32>
    %cst_53 = arith.constant 1.000000e+00 : f32
    %154 = vector.broadcast %cst_53 : f32 to vector<2x32xf32>
    %155 = arith.addf %154, %153 : vector<2x32xf32>
    %156 = arith.divf %154, %155 : vector<2x32xf32>
    %157 = vector.extract_strided_slice %136 {offsets = [0, 64], sizes = [2, 32], strides = [1, 1]} : vector<2x96xf32> to vector<2x32xf32>
    %158 = vector.extract_strided_slice %140 {offsets = [0, 64], sizes = [2, 32], strides = [1, 1]} : vector<2x96xf32> to vector<2x32xf32>
    %159 = arith.mulf %148, %158 : vector<2x32xf32>
    %160 = arith.addf %157, %159 : vector<2x32xf32>
    %161 = math.tanh %160 : vector<2x32xf32>
    %cst_54 = arith.constant 1.000000e+00 : f32
    %162 = vector.broadcast %cst_54 : f32 to vector<2x32xf32>
    %163 = arith.subf %162, %156 : vector<2x32xf32>
    %164 = arith.mulf %163, %161 : vector<2x32xf32>
    %165 = arith.mulf %156, %91 : vector<2x32xf32>
    %166 = arith.addf %164, %165 : vector<2x32xf32>
    %167 = arith.index_cast %133 : i32 to index
    %c0_55 = arith.constant 0 : index
    %c0_56 = arith.constant 0 : index
    %168 = vector.load %arg19[%167, %c0_55, %c0_56] : memref<8x2x32xf32, #tpu.memory_space<vmem>>, vector<1x2x32xf32>
    %169 = vector.shape_cast %168 : vector<1x2x32xf32> to vector<2x32xf32>
    %170 = vector.shape_cast %166 : vector<2x32xf32> to vector<1x2x32xf32>
    tpu.vector_store %arg19[%167, %c0_55, %c0_56], %170 {strides = array<i32>} : memref<8x2x32xf32, #tpu.memory_space<vmem>>, vector<1x2x32xf32>,
    %c2_i32 = arith.constant 2 : i32
    %171 = arith.index_cast %c2_i32 : i32 to index
    %c0_57 = arith.constant 0 : index
    %c0_58 = arith.constant 0 : index
    %172 = vector.load %arg16[%171, %c0_57, %c0_58] : memref<8x2x96xf32, #tpu.memory_space<vmem>>, vector<1x2x96xf32>
    %173 = vector.shape_cast %172 : vector<1x2x96xf32> to vector<2x96xf32>
    %174 = arith.truncf %128 : vector<2x32xf32> to vector<2x32xbf16>
    %cst_59 = arith.constant dense<0.000000e+00> : vector<2x96xf32>
    %175 = tpu.matmul %174, %13, %cst_59 {dimension_numbers = #tpu.dot_dimension_numbers<[1], [0], [0], [1], [0, 0, 1, 1], [], []>} : vector<2x32xbf16>, vector<32x96xbf16>, vector<2x96xf32> -> vector<2x96xf32>
    %176 = vector.broadcast %17 : vector<1x96xf32> to vector<2x96xf32>
    %177 = arith.addf %175, %176 : vector<2x96xf32>
    %178 = vector.extract_strided_slice %173 {offsets = [0, 0], sizes = [2, 32], strides = [1, 1]} : vector<2x96xf32> to vector<2x32xf32>
    %179 = vector.extract_strided_slice %177 {offsets = [0, 0], sizes = [2, 32], strides = [1, 1]} : vector<2x96xf32> to vector<2x32xf32>
    %180 = arith.addf %178, %179 : vector<2x32xf32>
    %181 = arith.negf %180 : vector<2x32xf32>
    %182 = math.exp %181 : vector<2x32xf32>
    %cst_60 = arith.constant 1.000000e+00 : f32
    %183 = vector.broadcast %cst_60 : f32 to vector<2x32xf32>
    %184 = arith.addf %183, %182 : vector<2x32xf32>
    %185 = arith.divf %183, %184 : vector<2x32xf32>
    %186 = vector.extract_strided_slice %173 {offsets = [0, 32], sizes = [2, 32], strides = [1, 1]} : vector<2x96xf32> to vector<2x32xf32>
    %187 = vector.extract_strided_slice %177 {offsets = [0, 32], sizes = [2, 32], strides = [1, 1]} : vector<2x96xf32> to vector<2x32xf32>
    %188 = arith.addf %186, %187 : vector<2x32xf32>
    %189 = arith.negf %188 : vector<2x32xf32>
    %190 = math.exp %189 : vector<2x32xf32>
    %cst_61 = arith.constant 1.000000e+00 : f32
    %191 = vector.broadcast %cst_61 : f32 to vector<2x32xf32>
    %192 = arith.addf %191, %190 : vector<2x32xf32>
    %193 = arith.divf %191, %192 : vector<2x32xf32>
    %194 = vector.extract_strided_slice %173 {offsets = [0, 64], sizes = [2, 32], strides = [1, 1]} : vector<2x96xf32> to vector<2x32xf32>
    %195 = vector.extract_strided_slice %177 {offsets = [0, 64], sizes = [2, 32], strides = [1, 1]} : vector<2x96xf32> to vector<2x32xf32>
    %196 = arith.mulf %185, %195 : vector<2x32xf32>
    %197 = arith.addf %194, %196 : vector<2x32xf32>
    %198 = math.tanh %197 : vector<2x32xf32>
    %cst_62 = arith.constant 1.000000e+00 : f32
    %199 = vector.broadcast %cst_62 : f32 to vector<2x32xf32>
    %200 = arith.subf %199, %193 : vector<2x32xf32>
    %201 = arith.mulf %200, %198 : vector<2x32xf32>
    %202 = arith.mulf %193, %128 : vector<2x32xf32>
    %203 = arith.addf %201, %202 : vector<2x32xf32>
    %204 = arith.index_cast %c2_i32 : i32 to index
    %c0_63 = arith.constant 0 : index
    %c0_64 = arith.constant 0 : index
    %205 = vector.load %arg18[%204, %c0_63, %c0_64] : memref<8x2x32xf32, #tpu.memory_space<vmem>>, vector<1x2x32xf32>
    %206 = vector.shape_cast %205 : vector<1x2x32xf32> to vector<2x32xf32>
    %207 = vector.shape_cast %203 : vector<2x32xf32> to vector<1x2x32xf32>
    tpu.vector_store %arg18[%204, %c0_63, %c0_64], %207 {strides = array<i32>} : memref<8x2x32xf32, #tpu.memory_space<vmem>>, vector<1x2x32xf32>,
    %c7_i32_65 = arith.constant 7 : i32
    %208 = arith.subi %c7_i32_65, %c2_i32 : i32
    %209 = arith.index_cast %208 : i32 to index
    %c0_66 = arith.constant 0 : index
    %c0_67 = arith.constant 0 : index
    %210 = vector.load %arg17[%209, %c0_66, %c0_67] : memref<8x2x96xf32, #tpu.memory_space<vmem>>, vector<1x2x96xf32>
    %211 = vector.shape_cast %210 : vector<1x2x96xf32> to vector<2x96xf32>
    %212 = arith.truncf %166 : vector<2x32xf32> to vector<2x32xbf16>
    %cst_68 = arith.constant dense<0.000000e+00> : vector<2x96xf32>
    %213 = tpu.matmul %212, %15, %cst_68 {dimension_numbers = #tpu.dot_dimension_numbers<[1], [0], [0], [1], [0, 0, 1, 1], [], []>} : vector<2x32xbf16>, vector<32x96xbf16>, vector<2x96xf32> -> vector<2x96xf32>
    %214 = vector.broadcast %19 : vector<1x96xf32> to vector<2x96xf32>
    %215 = arith.addf %213, %214 : vector<2x96xf32>
    %216 = vector.extract_strided_slice %211 {offsets = [0, 0], sizes = [2, 32], strides = [1, 1]} : vector<2x96xf32> to vector<2x32xf32>
    %217 = vector.extract_strided_slice %215 {offsets = [0, 0], sizes = [2, 32], strides = [1, 1]} : vector<2x96xf32> to vector<2x32xf32>
    %218 = arith.addf %216, %217 : vector<2x32xf32>
    %219 = arith.negf %218 : vector<2x32xf32>
    %220 = math.exp %219 : vector<2x32xf32>
    %cst_69 = arith.constant 1.000000e+00 : f32
    %221 = vector.broadcast %cst_69 : f32 to vector<2x32xf32>
    %222 = arith.addf %221, %220 : vector<2x32xf32>
    %223 = arith.divf %221, %222 : vector<2x32xf32>
    %224 = vector.extract_strided_slice %211 {offsets = [0, 32], sizes = [2, 32], strides = [1, 1]} : vector<2x96xf32> to vector<2x32xf32>
    %225 = vector.extract_strided_slice %215 {offsets = [0, 32], sizes = [2, 32], strides = [1, 1]} : vector<2x96xf32> to vector<2x32xf32>
    %226 = arith.addf %224, %225 : vector<2x32xf32>
    %227 = arith.negf %226 : vector<2x32xf32>
    %228 = math.exp %227 : vector<2x32xf32>
    %cst_70 = arith.constant 1.000000e+00 : f32
    %229 = vector.broadcast %cst_70 : f32 to vector<2x32xf32>
    %230 = arith.addf %229, %228 : vector<2x32xf32>
    %231 = arith.divf %229, %230 : vector<2x32xf32>
    %232 = vector.extract_strided_slice %211 {offsets = [0, 64], sizes = [2, 32], strides = [1, 1]} : vector<2x96xf32> to vector<2x32xf32>
    %233 = vector.extract_strided_slice %215 {offsets = [0, 64], sizes = [2, 32], strides = [1, 1]} : vector<2x96xf32> to vector<2x32xf32>
    %234 = arith.mulf %223, %233 : vector<2x32xf32>
    %235 = arith.addf %232, %234 : vector<2x32xf32>
    %236 = math.tanh %235 : vector<2x32xf32>
    %cst_71 = arith.constant 1.000000e+00 : f32
    %237 = vector.broadcast %cst_71 : f32 to vector<2x32xf32>
    %238 = arith.subf %237, %231 : vector<2x32xf32>
    %239 = arith.mulf %238, %236 : vector<2x32xf32>
    %240 = arith.mulf %231, %166 : vector<2x32xf32>
    %241 = arith.addf %239, %240 : vector<2x32xf32>
    %242 = arith.index_cast %208 : i32 to index
    %c0_72 = arith.constant 0 : index
    %c0_73 = arith.constant 0 : index
    %243 = vector.load %arg19[%242, %c0_72, %c0_73] : memref<8x2x32xf32, #tpu.memory_space<vmem>>, vector<1x2x32xf32>
    %244 = vector.shape_cast %243 : vector<1x2x32xf32> to vector<2x32xf32>
    %245 = vector.shape_cast %241 : vector<2x32xf32> to vector<1x2x32xf32>
    tpu.vector_store %arg19[%242, %c0_72, %c0_73], %245 {strides = array<i32>} : memref<8x2x32xf32, #tpu.memory_space<vmem>>, vector<1x2x32xf32>,
    %c3_i32 = arith.constant 3 : i32
    %246 = arith.index_cast %c3_i32 : i32 to index
    %c0_74 = arith.constant 0 : index
    %c0_75 = arith.constant 0 : index
    %247 = vector.load %arg16[%246, %c0_74, %c0_75] : memref<8x2x96xf32, #tpu.memory_space<vmem>>, vector<1x2x96xf32>
    %248 = vector.shape_cast %247 : vector<1x2x96xf32> to vector<2x96xf32>
    %249 = arith.truncf %203 : vector<2x32xf32> to vector<2x32xbf16>
    %cst_76 = arith.constant dense<0.000000e+00> : vector<2x96xf32>
    %250 = tpu.matmul %249, %13, %cst_76 {dimension_numbers = #tpu.dot_dimension_numbers<[1], [0], [0], [1], [0, 0, 1, 1], [], []>} : vector<2x32xbf16>, vector<32x96xbf16>, vector<2x96xf32> -> vector<2x96xf32>
    %251 = vector.broadcast %17 : vector<1x96xf32> to vector<2x96xf32>
    %252 = arith.addf %250, %251 : vector<2x96xf32>
    %253 = vector.extract_strided_slice %248 {offsets = [0, 0], sizes = [2, 32], strides = [1, 1]} : vector<2x96xf32> to vector<2x32xf32>
    %254 = vector.extract_strided_slice %252 {offsets = [0, 0], sizes = [2, 32], strides = [1, 1]} : vector<2x96xf32> to vector<2x32xf32>
    %255 = arith.addf %253, %254 : vector<2x32xf32>
    %256 = arith.negf %255 : vector<2x32xf32>
    %257 = math.exp %256 : vector<2x32xf32>
    %cst_77 = arith.constant 1.000000e+00 : f32
    %258 = vector.broadcast %cst_77 : f32 to vector<2x32xf32>
    %259 = arith.addf %258, %257 : vector<2x32xf32>
    %260 = arith.divf %258, %259 : vector<2x32xf32>
    %261 = vector.extract_strided_slice %248 {offsets = [0, 32], sizes = [2, 32], strides = [1, 1]} : vector<2x96xf32> to vector<2x32xf32>
    %262 = vector.extract_strided_slice %252 {offsets = [0, 32], sizes = [2, 32], strides = [1, 1]} : vector<2x96xf32> to vector<2x32xf32>
    %263 = arith.addf %261, %262 : vector<2x32xf32>
    %264 = arith.negf %263 : vector<2x32xf32>
    %265 = math.exp %264 : vector<2x32xf32>
    %cst_78 = arith.constant 1.000000e+00 : f32
    %266 = vector.broadcast %cst_78 : f32 to vector<2x32xf32>
    %267 = arith.addf %266, %265 : vector<2x32xf32>
    %268 = arith.divf %266, %267 : vector<2x32xf32>
    %269 = vector.extract_strided_slice %248 {offsets = [0, 64], sizes = [2, 32], strides = [1, 1]} : vector<2x96xf32> to vector<2x32xf32>
    %270 = vector.extract_strided_slice %252 {offsets = [0, 64], sizes = [2, 32], strides = [1, 1]} : vector<2x96xf32> to vector<2x32xf32>
    %271 = arith.mulf %260, %270 : vector<2x32xf32>
    %272 = arith.addf %269, %271 : vector<2x32xf32>
    %273 = math.tanh %272 : vector<2x32xf32>
    %cst_79 = arith.constant 1.000000e+00 : f32
    %274 = vector.broadcast %cst_79 : f32 to vector<2x32xf32>
    %275 = arith.subf %274, %268 : vector<2x32xf32>
    %276 = arith.mulf %275, %273 : vector<2x32xf32>
    %277 = arith.mulf %268, %203 : vector<2x32xf32>
    %278 = arith.addf %276, %277 : vector<2x32xf32>
    %279 = arith.index_cast %c3_i32 : i32 to index
    %c0_80 = arith.constant 0 : index
    %c0_81 = arith.constant 0 : index
    %280 = vector.load %arg18[%279, %c0_80, %c0_81] : memref<8x2x32xf32, #tpu.memory_space<vmem>>, vector<1x2x32xf32>
    %281 = vector.shape_cast %280 : vector<1x2x32xf32> to vector<2x32xf32>
    %282 = vector.shape_cast %278 : vector<2x32xf32> to vector<1x2x32xf32>
    tpu.vector_store %arg18[%279, %c0_80, %c0_81], %282 {strides = array<i32>} : memref<8x2x32xf32, #tpu.memory_space<vmem>>, vector<1x2x32xf32>,
    %c7_i32_82 = arith.constant 7 : i32
    %283 = arith.subi %c7_i32_82, %c3_i32 : i32
    %284 = arith.index_cast %283 : i32 to index
    %c0_83 = arith.constant 0 : index
    %c0_84 = arith.constant 0 : index
    %285 = vector.load %arg17[%284, %c0_83, %c0_84] : memref<8x2x96xf32, #tpu.memory_space<vmem>>, vector<1x2x96xf32>
    %286 = vector.shape_cast %285 : vector<1x2x96xf32> to vector<2x96xf32>
    %287 = arith.truncf %241 : vector<2x32xf32> to vector<2x32xbf16>
    %cst_85 = arith.constant dense<0.000000e+00> : vector<2x96xf32>
    %288 = tpu.matmul %287, %15, %cst_85 {dimension_numbers = #tpu.dot_dimension_numbers<[1], [0], [0], [1], [0, 0, 1, 1], [], []>} : vector<2x32xbf16>, vector<32x96xbf16>, vector<2x96xf32> -> vector<2x96xf32>
    %289 = vector.broadcast %19 : vector<1x96xf32> to vector<2x96xf32>
    %290 = arith.addf %288, %289 : vector<2x96xf32>
    %291 = vector.extract_strided_slice %286 {offsets = [0, 0], sizes = [2, 32], strides = [1, 1]} : vector<2x96xf32> to vector<2x32xf32>
    %292 = vector.extract_strided_slice %290 {offsets = [0, 0], sizes = [2, 32], strides = [1, 1]} : vector<2x96xf32> to vector<2x32xf32>
    %293 = arith.addf %291, %292 : vector<2x32xf32>
    %294 = arith.negf %293 : vector<2x32xf32>
    %295 = math.exp %294 : vector<2x32xf32>
    %cst_86 = arith.constant 1.000000e+00 : f32
    %296 = vector.broadcast %cst_86 : f32 to vector<2x32xf32>
    %297 = arith.addf %296, %295 : vector<2x32xf32>
    %298 = arith.divf %296, %297 : vector<2x32xf32>
    %299 = vector.extract_strided_slice %286 {offsets = [0, 32], sizes = [2, 32], strides = [1, 1]} : vector<2x96xf32> to vector<2x32xf32>
    %300 = vector.extract_strided_slice %290 {offsets = [0, 32], sizes = [2, 32], strides = [1, 1]} : vector<2x96xf32> to vector<2x32xf32>
    %301 = arith.addf %299, %300 : vector<2x32xf32>
    %302 = arith.negf %301 : vector<2x32xf32>
    %303 = math.exp %302 : vector<2x32xf32>
    %cst_87 = arith.constant 1.000000e+00 : f32
    %304 = vector.broadcast %cst_87 : f32 to vector<2x32xf32>
    %305 = arith.addf %304, %303 : vector<2x32xf32>
    %306 = arith.divf %304, %305 : vector<2x32xf32>
    %307 = vector.extract_strided_slice %286 {offsets = [0, 64], sizes = [2, 32], strides = [1, 1]} : vector<2x96xf32> to vector<2x32xf32>
    %308 = vector.extract_strided_slice %290 {offsets = [0, 64], sizes = [2, 32], strides = [1, 1]} : vector<2x96xf32> to vector<2x32xf32>
    %309 = arith.mulf %298, %308 : vector<2x32xf32>
    %310 = arith.addf %307, %309 : vector<2x32xf32>
    %311 = math.tanh %310 : vector<2x32xf32>
    %cst_88 = arith.constant 1.000000e+00 : f32
    %312 = vector.broadcast %cst_88 : f32 to vector<2x32xf32>
    %313 = arith.subf %312, %306 : vector<2x32xf32>
    %314 = arith.mulf %313, %311 : vector<2x32xf32>
    %315 = arith.mulf %306, %241 : vector<2x32xf32>
    %316 = arith.addf %314, %315 : vector<2x32xf32>
    %317 = arith.index_cast %283 : i32 to index
    %c0_89 = arith.constant 0 : index
    %c0_90 = arith.constant 0 : index
    %318 = vector.load %arg19[%317, %c0_89, %c0_90] : memref<8x2x32xf32, #tpu.memory_space<vmem>>, vector<1x2x32xf32>
    %319 = vector.shape_cast %318 : vector<1x2x32xf32> to vector<2x32xf32>
    %320 = vector.shape_cast %316 : vector<2x32xf32> to vector<1x2x32xf32>
    tpu.vector_store %arg19[%317, %c0_89, %c0_90], %320 {strides = array<i32>} : memref<8x2x32xf32, #tpu.memory_space<vmem>>, vector<1x2x32xf32>,
    %c4_i32 = arith.constant 4 : i32
    %321 = arith.index_cast %c4_i32 : i32 to index
    %c0_91 = arith.constant 0 : index
    %c0_92 = arith.constant 0 : index
    %322 = vector.load %arg16[%321, %c0_91, %c0_92] : memref<8x2x96xf32, #tpu.memory_space<vmem>>, vector<1x2x96xf32>
    %323 = vector.shape_cast %322 : vector<1x2x96xf32> to vector<2x96xf32>
    %324 = arith.truncf %278 : vector<2x32xf32> to vector<2x32xbf16>
    %cst_93 = arith.constant dense<0.000000e+00> : vector<2x96xf32>
    %325 = tpu.matmul %324, %13, %cst_93 {dimension_numbers = #tpu.dot_dimension_numbers<[1], [0], [0], [1], [0, 0, 1, 1], [], []>} : vector<2x32xbf16>, vector<32x96xbf16>, vector<2x96xf32> -> vector<2x96xf32>
    %326 = vector.broadcast %17 : vector<1x96xf32> to vector<2x96xf32>
    %327 = arith.addf %325, %326 : vector<2x96xf32>
    %328 = vector.extract_strided_slice %323 {offsets = [0, 0], sizes = [2, 32], strides = [1, 1]} : vector<2x96xf32> to vector<2x32xf32>
    %329 = vector.extract_strided_slice %327 {offsets = [0, 0], sizes = [2, 32], strides = [1, 1]} : vector<2x96xf32> to vector<2x32xf32>
    %330 = arith.addf %328, %329 : vector<2x32xf32>
    %331 = arith.negf %330 : vector<2x32xf32>
    %332 = math.exp %331 : vector<2x32xf32>
    %cst_94 = arith.constant 1.000000e+00 : f32
    %333 = vector.broadcast %cst_94 : f32 to vector<2x32xf32>
    %334 = arith.addf %333, %332 : vector<2x32xf32>
    %335 = arith.divf %333, %334 : vector<2x32xf32>
    %336 = vector.extract_strided_slice %323 {offsets = [0, 32], sizes = [2, 32], strides = [1, 1]} : vector<2x96xf32> to vector<2x32xf32>
    %337 = vector.extract_strided_slice %327 {offsets = [0, 32], sizes = [2, 32], strides = [1, 1]} : vector<2x96xf32> to vector<2x32xf32>
    %338 = arith.addf %336, %337 : vector<2x32xf32>
    %339 = arith.negf %338 : vector<2x32xf32>
    %340 = math.exp %339 : vector<2x32xf32>
    %cst_95 = arith.constant 1.000000e+00 : f32
    %341 = vector.broadcast %cst_95 : f32 to vector<2x32xf32>
    %342 = arith.addf %341, %340 : vector<2x32xf32>
    %343 = arith.divf %341, %342 : vector<2x32xf32>
    %344 = vector.extract_strided_slice %323 {offsets = [0, 64], sizes = [2, 32], strides = [1, 1]} : vector<2x96xf32> to vector<2x32xf32>
    %345 = vector.extract_strided_slice %327 {offsets = [0, 64], sizes = [2, 32], strides = [1, 1]} : vector<2x96xf32> to vector<2x32xf32>
    %346 = arith.mulf %335, %345 : vector<2x32xf32>
    %347 = arith.addf %344, %346 : vector<2x32xf32>
    %348 = math.tanh %347 : vector<2x32xf32>
    %cst_96 = arith.constant 1.000000e+00 : f32
    %349 = vector.broadcast %cst_96 : f32 to vector<2x32xf32>
    %350 = arith.subf %349, %343 : vector<2x32xf32>
    %351 = arith.mulf %350, %348 : vector<2x32xf32>
    %352 = arith.mulf %343, %278 : vector<2x32xf32>
    %353 = arith.addf %351, %352 : vector<2x32xf32>
    %354 = arith.index_cast %c4_i32 : i32 to index
    %c0_97 = arith.constant 0 : index
    %c0_98 = arith.constant 0 : index
    %355 = vector.load %arg18[%354, %c0_97, %c0_98] : memref<8x2x32xf32, #tpu.memory_space<vmem>>, vector<1x2x32xf32>
    %356 = vector.shape_cast %355 : vector<1x2x32xf32> to vector<2x32xf32>
    %357 = vector.shape_cast %353 : vector<2x32xf32> to vector<1x2x32xf32>
    tpu.vector_store %arg18[%354, %c0_97, %c0_98], %357 {strides = array<i32>} : memref<8x2x32xf32, #tpu.memory_space<vmem>>, vector<1x2x32xf32>,
    %c7_i32_99 = arith.constant 7 : i32
    %358 = arith.subi %c7_i32_99, %c4_i32 : i32
    %359 = arith.index_cast %358 : i32 to index
    %c0_100 = arith.constant 0 : index
    %c0_101 = arith.constant 0 : index
    %360 = vector.load %arg17[%359, %c0_100, %c0_101] : memref<8x2x96xf32, #tpu.memory_space<vmem>>, vector<1x2x96xf32>
    %361 = vector.shape_cast %360 : vector<1x2x96xf32> to vector<2x96xf32>
    %362 = arith.truncf %316 : vector<2x32xf32> to vector<2x32xbf16>
    %cst_102 = arith.constant dense<0.000000e+00> : vector<2x96xf32>
    %363 = tpu.matmul %362, %15, %cst_102 {dimension_numbers = #tpu.dot_dimension_numbers<[1], [0], [0], [1], [0, 0, 1, 1], [], []>} : vector<2x32xbf16>, vector<32x96xbf16>, vector<2x96xf32> -> vector<2x96xf32>
    %364 = vector.broadcast %19 : vector<1x96xf32> to vector<2x96xf32>
    %365 = arith.addf %363, %364 : vector<2x96xf32>
    %366 = vector.extract_strided_slice %361 {offsets = [0, 0], sizes = [2, 32], strides = [1, 1]} : vector<2x96xf32> to vector<2x32xf32>
    %367 = vector.extract_strided_slice %365 {offsets = [0, 0], sizes = [2, 32], strides = [1, 1]} : vector<2x96xf32> to vector<2x32xf32>
    %368 = arith.addf %366, %367 : vector<2x32xf32>
    %369 = arith.negf %368 : vector<2x32xf32>
    %370 = math.exp %369 : vector<2x32xf32>
    %cst_103 = arith.constant 1.000000e+00 : f32
    %371 = vector.broadcast %cst_103 : f32 to vector<2x32xf32>
    %372 = arith.addf %371, %370 : vector<2x32xf32>
    %373 = arith.divf %371, %372 : vector<2x32xf32>
    %374 = vector.extract_strided_slice %361 {offsets = [0, 32], sizes = [2, 32], strides = [1, 1]} : vector<2x96xf32> to vector<2x32xf32>
    %375 = vector.extract_strided_slice %365 {offsets = [0, 32], sizes = [2, 32], strides = [1, 1]} : vector<2x96xf32> to vector<2x32xf32>
    %376 = arith.addf %374, %375 : vector<2x32xf32>
    %377 = arith.negf %376 : vector<2x32xf32>
    %378 = math.exp %377 : vector<2x32xf32>
    %cst_104 = arith.constant 1.000000e+00 : f32
    %379 = vector.broadcast %cst_104 : f32 to vector<2x32xf32>
    %380 = arith.addf %379, %378 : vector<2x32xf32>
    %381 = arith.divf %379, %380 : vector<2x32xf32>
    %382 = vector.extract_strided_slice %361 {offsets = [0, 64], sizes = [2, 32], strides = [1, 1]} : vector<2x96xf32> to vector<2x32xf32>
    %383 = vector.extract_strided_slice %365 {offsets = [0, 64], sizes = [2, 32], strides = [1, 1]} : vector<2x96xf32> to vector<2x32xf32>
    %384 = arith.mulf %373, %383 : vector<2x32xf32>
    %385 = arith.addf %382, %384 : vector<2x32xf32>
    %386 = math.tanh %385 : vector<2x32xf32>
    %cst_105 = arith.constant 1.000000e+00 : f32
    %387 = vector.broadcast %cst_105 : f32 to vector<2x32xf32>
    %388 = arith.subf %387, %381 : vector<2x32xf32>
    %389 = arith.mulf %388, %386 : vector<2x32xf32>
    %390 = arith.mulf %381, %316 : vector<2x32xf32>
    %391 = arith.addf %389, %390 : vector<2x32xf32>
    %392 = arith.index_cast %358 : i32 to index
    %c0_106 = arith.constant 0 : index
    %c0_107 = arith.constant 0 : index
    %393 = vector.load %arg19[%392, %c0_106, %c0_107] : memref<8x2x32xf32, #tpu.memory_space<vmem>>, vector<1x2x32xf32>
    %394 = vector.shape_cast %393 : vector<1x2x32xf32> to vector<2x32xf32>
    %395 = vector.shape_cast %391 : vector<2x32xf32> to vector<1x2x32xf32>
    tpu.vector_store %arg19[%392, %c0_106, %c0_107], %395 {strides = array<i32>} : memref<8x2x32xf32, #tpu.memory_space<vmem>>, vector<1x2x32xf32>,
    %c5_i32 = arith.constant 5 : i32
    %396 = arith.index_cast %c5_i32 : i32 to index
    %c0_108 = arith.constant 0 : index
    %c0_109 = arith.constant 0 : index
    %397 = vector.load %arg16[%396, %c0_108, %c0_109] : memref<8x2x96xf32, #tpu.memory_space<vmem>>, vector<1x2x96xf32>
    %398 = vector.shape_cast %397 : vector<1x2x96xf32> to vector<2x96xf32>
    %399 = arith.truncf %353 : vector<2x32xf32> to vector<2x32xbf16>
    %cst_110 = arith.constant dense<0.000000e+00> : vector<2x96xf32>
    %400 = tpu.matmul %399, %13, %cst_110 {dimension_numbers = #tpu.dot_dimension_numbers<[1], [0], [0], [1], [0, 0, 1, 1], [], []>} : vector<2x32xbf16>, vector<32x96xbf16>, vector<2x96xf32> -> vector<2x96xf32>
    %401 = vector.broadcast %17 : vector<1x96xf32> to vector<2x96xf32>
    %402 = arith.addf %400, %401 : vector<2x96xf32>
    %403 = vector.extract_strided_slice %398 {offsets = [0, 0], sizes = [2, 32], strides = [1, 1]} : vector<2x96xf32> to vector<2x32xf32>
    %404 = vector.extract_strided_slice %402 {offsets = [0, 0], sizes = [2, 32], strides = [1, 1]} : vector<2x96xf32> to vector<2x32xf32>
    %405 = arith.addf %403, %404 : vector<2x32xf32>
    %406 = arith.negf %405 : vector<2x32xf32>
    %407 = math.exp %406 : vector<2x32xf32>
    %cst_111 = arith.constant 1.000000e+00 : f32
    %408 = vector.broadcast %cst_111 : f32 to vector<2x32xf32>
    %409 = arith.addf %408, %407 : vector<2x32xf32>
    %410 = arith.divf %408, %409 : vector<2x32xf32>
    %411 = vector.extract_strided_slice %398 {offsets = [0, 32], sizes = [2, 32], strides = [1, 1]} : vector<2x96xf32> to vector<2x32xf32>
    %412 = vector.extract_strided_slice %402 {offsets = [0, 32], sizes = [2, 32], strides = [1, 1]} : vector<2x96xf32> to vector<2x32xf32>
    %413 = arith.addf %411, %412 : vector<2x32xf32>
    %414 = arith.negf %413 : vector<2x32xf32>
    %415 = math.exp %414 : vector<2x32xf32>
    %cst_112 = arith.constant 1.000000e+00 : f32
    %416 = vector.broadcast %cst_112 : f32 to vector<2x32xf32>
    %417 = arith.addf %416, %415 : vector<2x32xf32>
    %418 = arith.divf %416, %417 : vector<2x32xf32>
    %419 = vector.extract_strided_slice %398 {offsets = [0, 64], sizes = [2, 32], strides = [1, 1]} : vector<2x96xf32> to vector<2x32xf32>
    %420 = vector.extract_strided_slice %402 {offsets = [0, 64], sizes = [2, 32], strides = [1, 1]} : vector<2x96xf32> to vector<2x32xf32>
    %421 = arith.mulf %410, %420 : vector<2x32xf32>
    %422 = arith.addf %419, %421 : vector<2x32xf32>
    %423 = math.tanh %422 : vector<2x32xf32>
    %cst_113 = arith.constant 1.000000e+00 : f32
    %424 = vector.broadcast %cst_113 : f32 to vector<2x32xf32>
    %425 = arith.subf %424, %418 : vector<2x32xf32>
    %426 = arith.mulf %425, %423 : vector<2x32xf32>
    %427 = arith.mulf %418, %353 : vector<2x32xf32>
    %428 = arith.addf %426, %427 : vector<2x32xf32>
    %429 = arith.index_cast %c5_i32 : i32 to index
    %c0_114 = arith.constant 0 : index
    %c0_115 = arith.constant 0 : index
    %430 = vector.load %arg18[%429, %c0_114, %c0_115] : memref<8x2x32xf32, #tpu.memory_space<vmem>>, vector<1x2x32xf32>
    %431 = vector.shape_cast %430 : vector<1x2x32xf32> to vector<2x32xf32>
    %432 = vector.shape_cast %428 : vector<2x32xf32> to vector<1x2x32xf32>
    tpu.vector_store %arg18[%429, %c0_114, %c0_115], %432 {strides = array<i32>} : memref<8x2x32xf32, #tpu.memory_space<vmem>>, vector<1x2x32xf32>,
    %c7_i32_116 = arith.constant 7 : i32
    %433 = arith.subi %c7_i32_116, %c5_i32 : i32
    %434 = arith.index_cast %433 : i32 to index
    %c0_117 = arith.constant 0 : index
    %c0_118 = arith.constant 0 : index
    %435 = vector.load %arg17[%434, %c0_117, %c0_118] : memref<8x2x96xf32, #tpu.memory_space<vmem>>, vector<1x2x96xf32>
    %436 = vector.shape_cast %435 : vector<1x2x96xf32> to vector<2x96xf32>
    %437 = arith.truncf %391 : vector<2x32xf32> to vector<2x32xbf16>
    %cst_119 = arith.constant dense<0.000000e+00> : vector<2x96xf32>
    %438 = tpu.matmul %437, %15, %cst_119 {dimension_numbers = #tpu.dot_dimension_numbers<[1], [0], [0], [1], [0, 0, 1, 1], [], []>} : vector<2x32xbf16>, vector<32x96xbf16>, vector<2x96xf32> -> vector<2x96xf32>
    %439 = vector.broadcast %19 : vector<1x96xf32> to vector<2x96xf32>
    %440 = arith.addf %438, %439 : vector<2x96xf32>
    %441 = vector.extract_strided_slice %436 {offsets = [0, 0], sizes = [2, 32], strides = [1, 1]} : vector<2x96xf32> to vector<2x32xf32>
    %442 = vector.extract_strided_slice %440 {offsets = [0, 0], sizes = [2, 32], strides = [1, 1]} : vector<2x96xf32> to vector<2x32xf32>
    %443 = arith.addf %441, %442 : vector<2x32xf32>
    %444 = arith.negf %443 : vector<2x32xf32>
    %445 = math.exp %444 : vector<2x32xf32>
    %cst_120 = arith.constant 1.000000e+00 : f32
    %446 = vector.broadcast %cst_120 : f32 to vector<2x32xf32>
    %447 = arith.addf %446, %445 : vector<2x32xf32>
    %448 = arith.divf %446, %447 : vector<2x32xf32>
    %449 = vector.extract_strided_slice %436 {offsets = [0, 32], sizes = [2, 32], strides = [1, 1]} : vector<2x96xf32> to vector<2x32xf32>
    %450 = vector.extract_strided_slice %440 {offsets = [0, 32], sizes = [2, 32], strides = [1, 1]} : vector<2x96xf32> to vector<2x32xf32>
    %451 = arith.addf %449, %450 : vector<2x32xf32>
    %452 = arith.negf %451 : vector<2x32xf32>
    %453 = math.exp %452 : vector<2x32xf32>
    %cst_121 = arith.constant 1.000000e+00 : f32
    %454 = vector.broadcast %cst_121 : f32 to vector<2x32xf32>
    %455 = arith.addf %454, %453 : vector<2x32xf32>
    %456 = arith.divf %454, %455 : vector<2x32xf32>
    %457 = vector.extract_strided_slice %436 {offsets = [0, 64], sizes = [2, 32], strides = [1, 1]} : vector<2x96xf32> to vector<2x32xf32>
    %458 = vector.extract_strided_slice %440 {offsets = [0, 64], sizes = [2, 32], strides = [1, 1]} : vector<2x96xf32> to vector<2x32xf32>
    %459 = arith.mulf %448, %458 : vector<2x32xf32>
    %460 = arith.addf %457, %459 : vector<2x32xf32>
    %461 = math.tanh %460 : vector<2x32xf32>
    %cst_122 = arith.constant 1.000000e+00 : f32
    %462 = vector.broadcast %cst_122 : f32 to vector<2x32xf32>
    %463 = arith.subf %462, %456 : vector<2x32xf32>
    %464 = arith.mulf %463, %461 : vector<2x32xf32>
    %465 = arith.mulf %456, %391 : vector<2x32xf32>
    %466 = arith.addf %464, %465 : vector<2x32xf32>
    %467 = arith.index_cast %433 : i32 to index
    %c0_123 = arith.constant 0 : index
    %c0_124 = arith.constant 0 : index
    %468 = vector.load %arg19[%467, %c0_123, %c0_124] : memref<8x2x32xf32, #tpu.memory_space<vmem>>, vector<1x2x32xf32>
    %469 = vector.shape_cast %468 : vector<1x2x32xf32> to vector<2x32xf32>
    %470 = vector.shape_cast %466 : vector<2x32xf32> to vector<1x2x32xf32>
    tpu.vector_store %arg19[%467, %c0_123, %c0_124], %470 {strides = array<i32>} : memref<8x2x32xf32, #tpu.memory_space<vmem>>, vector<1x2x32xf32>,
    %c6_i32 = arith.constant 6 : i32
    %471 = arith.index_cast %c6_i32 : i32 to index
    %c0_125 = arith.constant 0 : index
    %c0_126 = arith.constant 0 : index
    %472 = vector.load %arg16[%471, %c0_125, %c0_126] : memref<8x2x96xf32, #tpu.memory_space<vmem>>, vector<1x2x96xf32>
    %473 = vector.shape_cast %472 : vector<1x2x96xf32> to vector<2x96xf32>
    %474 = arith.truncf %428 : vector<2x32xf32> to vector<2x32xbf16>
    %cst_127 = arith.constant dense<0.000000e+00> : vector<2x96xf32>
    %475 = tpu.matmul %474, %13, %cst_127 {dimension_numbers = #tpu.dot_dimension_numbers<[1], [0], [0], [1], [0, 0, 1, 1], [], []>} : vector<2x32xbf16>, vector<32x96xbf16>, vector<2x96xf32> -> vector<2x96xf32>
    %476 = vector.broadcast %17 : vector<1x96xf32> to vector<2x96xf32>
    %477 = arith.addf %475, %476 : vector<2x96xf32>
    %478 = vector.extract_strided_slice %473 {offsets = [0, 0], sizes = [2, 32], strides = [1, 1]} : vector<2x96xf32> to vector<2x32xf32>
    %479 = vector.extract_strided_slice %477 {offsets = [0, 0], sizes = [2, 32], strides = [1, 1]} : vector<2x96xf32> to vector<2x32xf32>
    %480 = arith.addf %478, %479 : vector<2x32xf32>
    %481 = arith.negf %480 : vector<2x32xf32>
    %482 = math.exp %481 : vector<2x32xf32>
    %cst_128 = arith.constant 1.000000e+00 : f32
    %483 = vector.broadcast %cst_128 : f32 to vector<2x32xf32>
    %484 = arith.addf %483, %482 : vector<2x32xf32>
    %485 = arith.divf %483, %484 : vector<2x32xf32>
    %486 = vector.extract_strided_slice %473 {offsets = [0, 32], sizes = [2, 32], strides = [1, 1]} : vector<2x96xf32> to vector<2x32xf32>
    %487 = vector.extract_strided_slice %477 {offsets = [0, 32], sizes = [2, 32], strides = [1, 1]} : vector<2x96xf32> to vector<2x32xf32>
    %488 = arith.addf %486, %487 : vector<2x32xf32>
    %489 = arith.negf %488 : vector<2x32xf32>
    %490 = math.exp %489 : vector<2x32xf32>
    %cst_129 = arith.constant 1.000000e+00 : f32
    %491 = vector.broadcast %cst_129 : f32 to vector<2x32xf32>
    %492 = arith.addf %491, %490 : vector<2x32xf32>
    %493 = arith.divf %491, %492 : vector<2x32xf32>
    %494 = vector.extract_strided_slice %473 {offsets = [0, 64], sizes = [2, 32], strides = [1, 1]} : vector<2x96xf32> to vector<2x32xf32>
    %495 = vector.extract_strided_slice %477 {offsets = [0, 64], sizes = [2, 32], strides = [1, 1]} : vector<2x96xf32> to vector<2x32xf32>
    %496 = arith.mulf %485, %495 : vector<2x32xf32>
    %497 = arith.addf %494, %496 : vector<2x32xf32>
    %498 = math.tanh %497 : vector<2x32xf32>
    %cst_130 = arith.constant 1.000000e+00 : f32
    %499 = vector.broadcast %cst_130 : f32 to vector<2x32xf32>
    %500 = arith.subf %499, %493 : vector<2x32xf32>
    %501 = arith.mulf %500, %498 : vector<2x32xf32>
    %502 = arith.mulf %493, %428 : vector<2x32xf32>
    %503 = arith.addf %501, %502 : vector<2x32xf32>
    %504 = arith.index_cast %c6_i32 : i32 to index
    %c0_131 = arith.constant 0 : index
    %c0_132 = arith.constant 0 : index
    %505 = vector.load %arg18[%504, %c0_131, %c0_132] : memref<8x2x32xf32, #tpu.memory_space<vmem>>, vector<1x2x32xf32>
    %506 = vector.shape_cast %505 : vector<1x2x32xf32> to vector<2x32xf32>
    %507 = vector.shape_cast %503 : vector<2x32xf32> to vector<1x2x32xf32>
    tpu.vector_store %arg18[%504, %c0_131, %c0_132], %507 {strides = array<i32>} : memref<8x2x32xf32, #tpu.memory_space<vmem>>, vector<1x2x32xf32>,
    %c7_i32_133 = arith.constant 7 : i32
    %508 = arith.subi %c7_i32_133, %c6_i32 : i32
    %509 = arith.index_cast %508 : i32 to index
    %c0_134 = arith.constant 0 : index
    %c0_135 = arith.constant 0 : index
    %510 = vector.load %arg17[%509, %c0_134, %c0_135] : memref<8x2x96xf32, #tpu.memory_space<vmem>>, vector<1x2x96xf32>
    %511 = vector.shape_cast %510 : vector<1x2x96xf32> to vector<2x96xf32>
    %512 = arith.truncf %466 : vector<2x32xf32> to vector<2x32xbf16>
    %cst_136 = arith.constant dense<0.000000e+00> : vector<2x96xf32>
    %513 = tpu.matmul %512, %15, %cst_136 {dimension_numbers = #tpu.dot_dimension_numbers<[1], [0], [0], [1], [0, 0, 1, 1], [], []>} : vector<2x32xbf16>, vector<32x96xbf16>, vector<2x96xf32> -> vector<2x96xf32>
    %514 = vector.broadcast %19 : vector<1x96xf32> to vector<2x96xf32>
    %515 = arith.addf %513, %514 : vector<2x96xf32>
    %516 = vector.extract_strided_slice %511 {offsets = [0, 0], sizes = [2, 32], strides = [1, 1]} : vector<2x96xf32> to vector<2x32xf32>
    %517 = vector.extract_strided_slice %515 {offsets = [0, 0], sizes = [2, 32], strides = [1, 1]} : vector<2x96xf32> to vector<2x32xf32>
    %518 = arith.addf %516, %517 : vector<2x32xf32>
    %519 = arith.negf %518 : vector<2x32xf32>
    %520 = math.exp %519 : vector<2x32xf32>
    %cst_137 = arith.constant 1.000000e+00 : f32
    %521 = vector.broadcast %cst_137 : f32 to vector<2x32xf32>
    %522 = arith.addf %521, %520 : vector<2x32xf32>
    %523 = arith.divf %521, %522 : vector<2x32xf32>
    %524 = vector.extract_strided_slice %511 {offsets = [0, 32], sizes = [2, 32], strides = [1, 1]} : vector<2x96xf32> to vector<2x32xf32>
    %525 = vector.extract_strided_slice %515 {offsets = [0, 32], sizes = [2, 32], strides = [1, 1]} : vector<2x96xf32> to vector<2x32xf32>
    %526 = arith.addf %524, %525 : vector<2x32xf32>
    %527 = arith.negf %526 : vector<2x32xf32>
    %528 = math.exp %527 : vector<2x32xf32>
    %cst_138 = arith.constant 1.000000e+00 : f32
    %529 = vector.broadcast %cst_138 : f32 to vector<2x32xf32>
    %530 = arith.addf %529, %528 : vector<2x32xf32>
    %531 = arith.divf %529, %530 : vector<2x32xf32>
    %532 = vector.extract_strided_slice %511 {offsets = [0, 64], sizes = [2, 32], strides = [1, 1]} : vector<2x96xf32> to vector<2x32xf32>
    %533 = vector.extract_strided_slice %515 {offsets = [0, 64], sizes = [2, 32], strides = [1, 1]} : vector<2x96xf32> to vector<2x32xf32>
    %534 = arith.mulf %523, %533 : vector<2x32xf32>
    %535 = arith.addf %532, %534 : vector<2x32xf32>
    %536 = math.tanh %535 : vector<2x32xf32>
    %cst_139 = arith.constant 1.000000e+00 : f32
    %537 = vector.broadcast %cst_139 : f32 to vector<2x32xf32>
    %538 = arith.subf %537, %531 : vector<2x32xf32>
    %539 = arith.mulf %538, %536 : vector<2x32xf32>
    %540 = arith.mulf %531, %466 : vector<2x32xf32>
    %541 = arith.addf %539, %540 : vector<2x32xf32>
    %542 = arith.index_cast %508 : i32 to index
    %c0_140 = arith.constant 0 : index
    %c0_141 = arith.constant 0 : index
    %543 = vector.load %arg19[%542, %c0_140, %c0_141] : memref<8x2x32xf32, #tpu.memory_space<vmem>>, vector<1x2x32xf32>
    %544 = vector.shape_cast %543 : vector<1x2x32xf32> to vector<2x32xf32>
    %545 = vector.shape_cast %541 : vector<2x32xf32> to vector<1x2x32xf32>
    tpu.vector_store %arg19[%542, %c0_140, %c0_141], %545 {strides = array<i32>} : memref<8x2x32xf32, #tpu.memory_space<vmem>>, vector<1x2x32xf32>,
    %c7_i32_142 = arith.constant 7 : i32
    %546 = arith.index_cast %c7_i32_142 : i32 to index
    %c0_143 = arith.constant 0 : index
    %c0_144 = arith.constant 0 : index
    %547 = vector.load %arg16[%546, %c0_143, %c0_144] : memref<8x2x96xf32, #tpu.memory_space<vmem>>, vector<1x2x96xf32>
    %548 = vector.shape_cast %547 : vector<1x2x96xf32> to vector<2x96xf32>
    %549 = arith.truncf %503 : vector<2x32xf32> to vector<2x32xbf16>
    %cst_145 = arith.constant dense<0.000000e+00> : vector<2x96xf32>
    %550 = tpu.matmul %549, %13, %cst_145 {dimension_numbers = #tpu.dot_dimension_numbers<[1], [0], [0], [1], [0, 0, 1, 1], [], []>} : vector<2x32xbf16>, vector<32x96xbf16>, vector<2x96xf32> -> vector<2x96xf32>
    %551 = vector.broadcast %17 : vector<1x96xf32> to vector<2x96xf32>
    %552 = arith.addf %550, %551 : vector<2x96xf32>
    %553 = vector.extract_strided_slice %548 {offsets = [0, 0], sizes = [2, 32], strides = [1, 1]} : vector<2x96xf32> to vector<2x32xf32>
    %554 = vector.extract_strided_slice %552 {offsets = [0, 0], sizes = [2, 32], strides = [1, 1]} : vector<2x96xf32> to vector<2x32xf32>
    %555 = arith.addf %553, %554 : vector<2x32xf32>
    %556 = arith.negf %555 : vector<2x32xf32>
    %557 = math.exp %556 : vector<2x32xf32>
    %cst_146 = arith.constant 1.000000e+00 : f32
    %558 = vector.broadcast %cst_146 : f32 to vector<2x32xf32>
    %559 = arith.addf %558, %557 : vector<2x32xf32>
    %560 = arith.divf %558, %559 : vector<2x32xf32>
    %561 = vector.extract_strided_slice %548 {offsets = [0, 32], sizes = [2, 32], strides = [1, 1]} : vector<2x96xf32> to vector<2x32xf32>
    %562 = vector.extract_strided_slice %552 {offsets = [0, 32], sizes = [2, 32], strides = [1, 1]} : vector<2x96xf32> to vector<2x32xf32>
    %563 = arith.addf %561, %562 : vector<2x32xf32>
    %564 = arith.negf %563 : vector<2x32xf32>
    %565 = math.exp %564 : vector<2x32xf32>
    %cst_147 = arith.constant 1.000000e+00 : f32
    %566 = vector.broadcast %cst_147 : f32 to vector<2x32xf32>
    %567 = arith.addf %566, %565 : vector<2x32xf32>
    %568 = arith.divf %566, %567 : vector<2x32xf32>
    %569 = vector.extract_strided_slice %548 {offsets = [0, 64], sizes = [2, 32], strides = [1, 1]} : vector<2x96xf32> to vector<2x32xf32>
    %570 = vector.extract_strided_slice %552 {offsets = [0, 64], sizes = [2, 32], strides = [1, 1]} : vector<2x96xf32> to vector<2x32xf32>
    %571 = arith.mulf %560, %570 : vector<2x32xf32>
    %572 = arith.addf %569, %571 : vector<2x32xf32>
    %573 = math.tanh %572 : vector<2x32xf32>
    %cst_148 = arith.constant 1.000000e+00 : f32
    %574 = vector.broadcast %cst_148 : f32 to vector<2x32xf32>
    %575 = arith.subf %574, %568 : vector<2x32xf32>
    %576 = arith.mulf %575, %573 : vector<2x32xf32>
    %577 = arith.mulf %568, %503 : vector<2x32xf32>
    %578 = arith.addf %576, %577 : vector<2x32xf32>
    %579 = arith.index_cast %c7_i32_142 : i32 to index
    %c0_149 = arith.constant 0 : index
    %c0_150 = arith.constant 0 : index
    %580 = vector.load %arg18[%579, %c0_149, %c0_150] : memref<8x2x32xf32, #tpu.memory_space<vmem>>, vector<1x2x32xf32>
    %581 = vector.shape_cast %580 : vector<1x2x32xf32> to vector<2x32xf32>
    %582 = vector.shape_cast %578 : vector<2x32xf32> to vector<1x2x32xf32>
    tpu.vector_store %arg18[%579, %c0_149, %c0_150], %582 {strides = array<i32>} : memref<8x2x32xf32, #tpu.memory_space<vmem>>, vector<1x2x32xf32>,
    %c7_i32_151 = arith.constant 7 : i32
    %583 = arith.subi %c7_i32_151, %c7_i32_142 : i32
    %584 = arith.index_cast %583 : i32 to index
    %c0_152 = arith.constant 0 : index
    %c0_153 = arith.constant 0 : index
    %585 = vector.load %arg17[%584, %c0_152, %c0_153] : memref<8x2x96xf32, #tpu.memory_space<vmem>>, vector<1x2x96xf32>
    %586 = vector.shape_cast %585 : vector<1x2x96xf32> to vector<2x96xf32>
    %587 = arith.truncf %541 : vector<2x32xf32> to vector<2x32xbf16>
    %cst_154 = arith.constant dense<0.000000e+00> : vector<2x96xf32>
    %588 = tpu.matmul %587, %15, %cst_154 {dimension_numbers = #tpu.dot_dimension_numbers<[1], [0], [0], [1], [0, 0, 1, 1], [], []>} : vector<2x32xbf16>, vector<32x96xbf16>, vector<2x96xf32> -> vector<2x96xf32>
    %589 = vector.broadcast %19 : vector<1x96xf32> to vector<2x96xf32>
    %590 = arith.addf %588, %589 : vector<2x96xf32>
    %591 = vector.extract_strided_slice %586 {offsets = [0, 0], sizes = [2, 32], strides = [1, 1]} : vector<2x96xf32> to vector<2x32xf32>
    %592 = vector.extract_strided_slice %590 {offsets = [0, 0], sizes = [2, 32], strides = [1, 1]} : vector<2x96xf32> to vector<2x32xf32>
    %593 = arith.addf %591, %592 : vector<2x32xf32>
    %594 = arith.negf %593 : vector<2x32xf32>
    %595 = math.exp %594 : vector<2x32xf32>
    %cst_155 = arith.constant 1.000000e+00 : f32
    %596 = vector.broadcast %cst_155 : f32 to vector<2x32xf32>
    %597 = arith.addf %596, %595 : vector<2x32xf32>
    %598 = arith.divf %596, %597 : vector<2x32xf32>
    %599 = vector.extract_strided_slice %586 {offsets = [0, 32], sizes = [2, 32], strides = [1, 1]} : vector<2x96xf32> to vector<2x32xf32>
    %600 = vector.extract_strided_slice %590 {offsets = [0, 32], sizes = [2, 32], strides = [1, 1]} : vector<2x96xf32> to vector<2x32xf32>
    %601 = arith.addf %599, %600 : vector<2x32xf32>
    %602 = arith.negf %601 : vector<2x32xf32>
    %603 = math.exp %602 : vector<2x32xf32>
    %cst_156 = arith.constant 1.000000e+00 : f32
    %604 = vector.broadcast %cst_156 : f32 to vector<2x32xf32>
    %605 = arith.addf %604, %603 : vector<2x32xf32>
    %606 = arith.divf %604, %605 : vector<2x32xf32>
    %607 = vector.extract_strided_slice %586 {offsets = [0, 64], sizes = [2, 32], strides = [1, 1]} : vector<2x96xf32> to vector<2x32xf32>
    %608 = vector.extract_strided_slice %590 {offsets = [0, 64], sizes = [2, 32], strides = [1, 1]} : vector<2x96xf32> to vector<2x32xf32>
    %609 = arith.mulf %598, %608 : vector<2x32xf32>
    %610 = arith.addf %607, %609 : vector<2x32xf32>
    %611 = math.tanh %610 : vector<2x32xf32>
    %cst_157 = arith.constant 1.000000e+00 : f32
    %612 = vector.broadcast %cst_157 : f32 to vector<2x32xf32>
    %613 = arith.subf %612, %606 : vector<2x32xf32>
    %614 = arith.mulf %613, %611 : vector<2x32xf32>
    %615 = arith.mulf %606, %541 : vector<2x32xf32>
    %616 = arith.addf %614, %615 : vector<2x32xf32>
    %617 = arith.index_cast %583 : i32 to index
    %c0_158 = arith.constant 0 : index
    %c0_159 = arith.constant 0 : index
    %618 = vector.load %arg19[%617, %c0_158, %c0_159] : memref<8x2x32xf32, #tpu.memory_space<vmem>>, vector<1x2x32xf32>
    %619 = vector.shape_cast %618 : vector<1x2x32xf32> to vector<2x32xf32>
    %620 = vector.shape_cast %616 : vector<2x32xf32> to vector<1x2x32xf32>
    tpu.vector_store %arg19[%617, %c0_158, %c0_159], %620 {strides = array<i32>} : memref<8x2x32xf32, #tpu.memory_space<vmem>>, vector<1x2x32xf32>,
    %c8_i32 = arith.constant 8 : i32
    %c0_160 = arith.constant 0 : index
    %c0_161 = arith.constant 0 : index
    %c0_162 = arith.constant 0 : index
    %621 = vector.load %arg18[%c0_160, %c0_161, %c0_162] : memref<8x2x32xf32, #tpu.memory_space<vmem>>, vector<8x2x32xf32>
    %c0_163 = arith.constant 0 : index
    %c0_164 = arith.constant 0 : index
    %c0_165 = arith.constant 0 : index
    %622 = vector.load %arg19[%c0_163, %c0_164, %c0_165] : memref<8x2x32xf32, #tpu.memory_space<vmem>>, vector<8x2x32xf32>
    %623 = tpu.concatenate %621, %622 in 2 : vector<8x2x32xf32>, vector<8x2x32xf32> -> vector<8x2x64xf32>
    %cst_166 = arith.constant 0.000000e+00 : f32
    %624 = vector.broadcast %cst_166 : f32 to vector<1x2x64xf32>
    %625 = tpu.concatenate %624, %623, %624 in 0 : vector<1x2x64xf32>, vector<8x2x64xf32>, vector<1x2x64xf32> -> vector<10x2x64xf32>
    %c0_167 = arith.constant 0 : index
    %c0_168 = arith.constant 0 : index
    %626 = vector.load %arg5[%c0_167, %c0_168] : memref<128x16xbf16, #tpu.memory_space<vmem>>, vector<128x16xbf16>
    %c0_169 = arith.constant 0 : index
    %c0_170 = arith.constant 0 : index
    %627 = vector.load %arg6[%c0_169, %c0_170] : memref<1x16xf32, #tpu.memory_space<vmem>>, vector<1x16xf32>
    %628 = vector.extract_strided_slice %625 {offsets = [0, 0, 0], sizes = [9, 2, 64], strides = [1, 1, 1]} : vector<10x2x64xf32> to vector<9x2x64xf32>
    %629 = vector.extract_strided_slice %625 {offsets = [1, 0, 0], sizes = [9, 2, 64], strides = [1, 1, 1]} : vector<10x2x64xf32> to vector<9x2x64xf32>
    %630 = tpu.concatenate %628, %629 in 2 : vector<9x2x64xf32>, vector<9x2x64xf32> -> vector<9x2x128xf32>
    %631 = arith.truncf %630 : vector<9x2x128xf32> to vector<9x2x128xbf16>
    "tpu.trace_start"() <{level = 10 : i32, message = "pbf,fc->pbc"}> : () -> ()
    %cst_171 = arith.constant dense<0.000000e+00> : vector<9x2x16xf32>
    %632 = tpu.matmul %631, %626, %cst_171 {dimension_numbers = #tpu.dot_dimension_numbers<[2], [0], [0, 1], [1], [0, 0, 0, 1, 1, 1], [], []>} : vector<9x2x128xbf16>, vector<128x16xbf16>, vector<9x2x16xf32> -> vector<9x2x16xf32>
    "tpu.trace_stop"() : () -> ()
    %633 = vector.shape_cast %627 : vector<1x16xf32> to vector<1x1x16xf32>
    %634 = vector.broadcast %633 : vector<1x1x16xf32> to vector<9x2x16xf32>
    %635 = arith.addf %632, %634 : vector<9x2x16xf32>
    %cst_172 = arith.constant 0.000000e+00 : f32
    %636 = vector.broadcast %cst_172 : f32 to vector<9x2x16xf32>
    %637 = arith.maximumf %635, %636 : vector<9x2x16xf32>
    %cst_173 = arith.constant dense<0xFF800000> : vector<2x16xf32>
    %638 = vector.multi_reduction <maximumf>, %637, %cst_173 [0] : vector<9x2x16xf32> to vector<2x16xf32>
    %c0_174 = arith.constant 0 : index
    %c0_175 = arith.constant 0 : index
    %639 = vector.load %arg7[%c0_174, %c0_175] : memref<192x16xbf16, #tpu.memory_space<vmem>>, vector<192x16xbf16>
    %c0_176 = arith.constant 0 : index
    %c0_177 = arith.constant 0 : index
    %640 = vector.load %arg8[%c0_176, %c0_177] : memref<1x16xf32, #tpu.memory_space<vmem>>, vector<1x16xf32>
    %641 = vector.extract_strided_slice %625 {offsets = [0, 0, 0], sizes = [8, 2, 64], strides = [1, 1, 1]} : vector<10x2x64xf32> to vector<8x2x64xf32>
    %642 = vector.extract_strided_slice %625 {offsets = [1, 0, 0], sizes = [8, 2, 64], strides = [1, 1, 1]} : vector<10x2x64xf32> to vector<8x2x64xf32>
    %643 = vector.extract_strided_slice %625 {offsets = [2, 0, 0], sizes = [8, 2, 64], strides = [1, 1, 1]} : vector<10x2x64xf32> to vector<8x2x64xf32>
    %644 = tpu.concatenate %641, %642, %643 in 2 : vector<8x2x64xf32>, vector<8x2x64xf32>, vector<8x2x64xf32> -> vector<8x2x192xf32>
    %645 = arith.truncf %644 : vector<8x2x192xf32> to vector<8x2x192xbf16>
    "tpu.trace_start"() <{level = 10 : i32, message = "pbf,fc->pbc"}> : () -> ()
    %cst_178 = arith.constant dense<0.000000e+00> : vector<8x2x16xf32>
    %646 = tpu.matmul %645, %639, %cst_178 {dimension_numbers = #tpu.dot_dimension_numbers<[2], [0], [0, 1], [1], [0, 0, 0, 1, 1, 1], [], []>} : vector<8x2x192xbf16>, vector<192x16xbf16>, vector<8x2x16xf32> -> vector<8x2x16xf32>
    "tpu.trace_stop"() : () -> ()
    %647 = vector.shape_cast %640 : vector<1x16xf32> to vector<1x1x16xf32>
    %648 = vector.broadcast %647 : vector<1x1x16xf32> to vector<8x2x16xf32>
    %649 = arith.addf %646, %648 : vector<8x2x16xf32>
    %cst_179 = arith.constant 0.000000e+00 : f32
    %650 = vector.broadcast %cst_179 : f32 to vector<8x2x16xf32>
    %651 = arith.maximumf %649, %650 : vector<8x2x16xf32>
    %cst_180 = arith.constant dense<0xFF800000> : vector<2x16xf32>
    %652 = vector.multi_reduction <maximumf>, %651, %cst_180 [0] : vector<8x2x16xf32> to vector<2x16xf32>
    %653 = tpu.concatenate %638, %652 in 1 : vector<2x16xf32>, vector<2x16xf32> -> vector<2x32xf32>
    %654 = arith.truncf %653 : vector<2x32xf32> to vector<2x32xbf16>
    %c0_181 = arith.constant 0 : index
    %c0_182 = arith.constant 0 : index
    %655 = vector.load %arg9[%c0_181, %c0_182] : memref<32x192xbf16, #tpu.memory_space<vmem>>, vector<32x192xbf16>
    %cst_183 = arith.constant dense<0.000000e+00> : vector<2x192xf32>
    %656 = tpu.matmul %654, %655, %cst_183 {dimension_numbers = #tpu.dot_dimension_numbers<[1], [0], [0], [1], [0, 0, 1, 1], [], []>} : vector<2x32xbf16>, vector<32x192xbf16>, vector<2x192xf32> -> vector<2x192xf32>
    %c0_184 = arith.constant 0 : index
    %c0_185 = arith.constant 0 : index
    %657 = vector.load %arg10[%c0_184, %c0_185] : memref<1x192xf32, #tpu.memory_space<vmem>>, vector<1x192xf32>
    %658 = vector.broadcast %657 : vector<1x192xf32> to vector<2x192xf32>
    %659 = arith.addf %656, %658 : vector<2x192xf32>
    %660 = arith.truncf %659 : vector<2x192xf32> to vector<2x192xbf16>
    %c0_186 = arith.constant 0 : index
    %c0_187 = arith.constant 0 : index
    %661 = vector.load %arg11[%c0_186, %c0_187] : memref<192x192xbf16, #tpu.memory_space<vmem>>, vector<192x192xbf16>
    %cst_188 = arith.constant dense<0.000000e+00> : vector<2x192xf32>
    %662 = tpu.matmul %660, %661, %cst_188 {dimension_numbers = #tpu.dot_dimension_numbers<[1], [0], [0], [1], [0, 0, 1, 1], [], []>} : vector<2x192xbf16>, vector<192x192xbf16>, vector<2x192xf32> -> vector<2x192xf32>
    %c0_189 = arith.constant 0 : index
    %c0_190 = arith.constant 0 : index
    %663 = vector.load %arg12[%c0_189, %c0_190] : memref<1x192xf32, #tpu.memory_space<vmem>>, vector<1x192xf32>
    %664 = vector.broadcast %663 : vector<1x192xf32> to vector<2x192xf32>
    %665 = arith.addf %662, %664 : vector<2x192xf32>
    %cst_191 = arith.constant 0.000000e+00 : f32
    %666 = vector.broadcast %cst_191 : f32 to vector<2x192xf32>
    %667 = arith.maximumf %665, %666 : vector<2x192xf32>
    %668 = arith.truncf %667 : vector<2x192xf32> to vector<2x192xbf16>
    %c0_192 = arith.constant 0 : index
    %c0_193 = arith.constant 0 : index
    %669 = vector.load %arg13[%c0_192, %c0_193] : memref<192x6xbf16, #tpu.memory_space<vmem>>, vector<192x6xbf16>
    %cst_194 = arith.constant dense<0.000000e+00> : vector<2x6xf32>
    %670 = tpu.matmul %668, %669, %cst_194 {dimension_numbers = #tpu.dot_dimension_numbers<[1], [0], [0], [1], [0, 0, 1, 1], [], []>} : vector<2x192xbf16>, vector<192x6xbf16>, vector<2x6xf32> -> vector<2x6xf32>
    %c0_195 = arith.constant 0 : index
    %c0_196 = arith.constant 0 : index
    %671 = vector.load %arg14[%c0_195, %c0_196] : memref<1x6xf32, #tpu.memory_space<vmem>>, vector<1x6xf32>
    %672 = vector.broadcast %671 : vector<1x6xf32> to vector<2x6xf32>
    %673 = arith.addf %670, %672 : vector<2x6xf32>
    %c0_197 = arith.constant 0 : index
    %c0_198 = arith.constant 0 : index
    %674 = vector.load %arg15[%c0_197, %c0_198] : memref<2x6xf32, #tpu.memory_space<vmem>>, vector<2x6xf32>
    tpu.vector_store %arg15[%c0_197, %c0_198], %673 {strides = array<i32>} : memref<2x6xf32, #tpu.memory_space<vmem>>, vector<2x6xf32>,
    return
  }
}

</mosaic_0001>

<bundles_post_ra>
// kernel: himatch_forward_eval.1
= control target key start
LH: loop header
LB: loop body
LE: loop exit
PB: predicated region body
PF: predicated region fallthrough
CT: control target
= control target key end

     0   :  { %20 = vsyncpa [#allocation7], 0  ;;  %s3985_s0 = inlined_call_operand.vmem [shape: f32[8,2,32], index: 0, kind: input, shape index: {}]   ;;  %s3986_s1 = inlined_call_operand.hbm [shape: bf16[32,192], index: 1, kind: input, shape index: {}]   ;;  %s3987_s2 = inlined_call_operand.hbm [shape: bf16[2,32,96], index: 2, kind: input, shape index: {}]   ;;  %s3988_s3 = inlined_call_operand.vmem [shape: f32[1,192], index: 3, kind: input, shape index: {}, may-alias: {3,10,12}]   ;;  %s3989_s4 = inlined_call_operand.vmem [shape: f32[2,1,96], index: 4, kind: input, shape index: {}]   ;;  %s3990_s5 = inlined_call_operand.hbm [shape: bf16[128,16], index: 5, kind: input, shape index: {}]   ;;  %s3991_s6 = inlined_call_operand.vmem [shape: f32[1,16], index: 6, kind: input, shape index: {}, may-alias: {6,8}]   ;;  %s3992_s7 = inlined_call_operand.hbm [shape: bf16[192,16], index: 7, kind: input, shape index: {}]   ;;  %s3993_s8 = inlined_call_operand.vmem [shape: f32[1,16], index: 8, kind: input, shape index: {}, may-alias: {6,8}]   ;;  %s3994_s9 = inlined_call_operand.hbm [shape: bf16[32,192], index: 9, kind: input, shape index: {}]   ;;  %s3995_s10 = inlined_call_operand.vmem [shape: f32[1,192], index: 10, kind: input, shape index: {}, may-alias: {3,10,12}]   ;;  %s3996_s11 = inlined_call_operand.vmem [shape: bf16[192,192], index: 11, kind: input, shape index: {}]   ;;  %s3997_s12 = inlined_call_operand.vmem [shape: f32[1,192], index: 12, kind: input, shape index: {}, may-alias: {3,10,12}]   ;;  %s3998_s13 = inlined_call_operand.hbm [shape: bf16[192,6], index: 13, kind: input, shape index: {}]   ;;  %s3999_s14 = inlined_call_operand.vmem [shape: f32[1,6], index: 14, kind: input, shape index: {}]   ;;  %s4000_s15 = inlined_call_operand.hbm [shape: f32[2,6], index: 15, kind: output, shape index: {}]  }
   0x1   :  { %21 = vsyncpa [#allocation10], 0 }
   0x2   :  { %22 = vsyncpa [#allocation13], 0 }
   0x3   :  { %23 = vsyncpa [#allocation16], 0  ;;  %s44_s20 = sshll.u32 %s3987_s2, 4  ;;  %s45_s20 = int_to_ptr.hbm [resolvable:$true] %s44_s20 }
   0x4   :  { %24 = vsyncpa [#allocation8], 0  ;;  %s3178_s21 = smov [#allocation9]   ;;  %s76_s25 = sshll.u32 %s3992_s7, 4  ;;  %s77_s25 = int_to_ptr.hbm [resolvable:$true] %s76_s25 }
   0x5   :  { %s46_s22 = sshll.u32 %s3178_s21, 4  ;;  %s3179_s26 = smov 64   ;;  %s47_s22 = int_to_ptr.vmem [resolvable:$true] %s46_s22 }
   0x6   :  { %s3180_s27 = smov 4   ;;  %s3181_s28 = smov [#allocation12]  }
   0x7   :  { %52 = dma.hbm_to_vmem [thread:$0]  %s45_s20, 512, %s47_s22, [#allocation10], %s3179_s26, %s3179_s26, %s3180_s27  }
   0x8   :  { %s78_s29 = sshll.u32 %s3181_s28, 4  ;;  %s31_s16 = sshll.u32 %s3986_s1, 4  ;;  %s79_s29 = int_to_ptr.vmem [resolvable:$true] %s78_s29  ;;  %s32_s16 = int_to_ptr.hbm [resolvable:$true] %s31_s16 }
   0x9   :  { %84 = dma.hbm_to_vmem [thread:$0]  %s77_s25, 1536, %s79_s29, [#allocation13], %s3179_s26, %s3179_s26, %s3180_s27  }
   0xa   :  { %s3182_s7 = smov [#allocation6]   ;;  %s61_s20 = sshll.u32 %s3990_s5, 4  ;;  %s62_s20 = int_to_ptr.hbm [resolvable:$true] %s61_s20 }
   0xb   :  { %s33_s17 = sshll.u32 %s3182_s7, 4  ;;  %s3183_s21 = smov 128   ;;  %s34_s17 = int_to_ptr.vmem [resolvable:$true] %s33_s17 }
   0xc   :  { %s3184_s22 = smov 8   ;;  %s3185_s23 = smov [#allocation11]  }
   0xd   :  { %39 = dma.hbm_to_vmem [thread:$0]  %s32_s16, 512, %s34_s17, [#allocation7], %s3183_s21, %s3183_s21, %s3184_s22  }
   0xe   :  { %s63_s24 = sshll.u32 %s3185_s23, 4  ;;  %s91_s30 = sshll.u32 %s3994_s9, 4  ;;  %s64_s24 = int_to_ptr.vmem [resolvable:$true] %s63_s24  ;;  %s92_s30 = int_to_ptr.hbm [resolvable:$true] %s91_s30 }
   0xf   :  { %69 = dma.hbm_to_vmem [thread:$0]  %s62_s20, 1024, %s64_s24, [#allocation10], %s3179_s26, %s3179_s26, %s3180_s27  }
  0x10   :  { %s110_s5 = sshll.u32 %s3998_s13, 4  ;;  %s3186_s2 = smov [#allocation14]   ;;  %s111_s5 = int_to_ptr.hbm [resolvable:$true] %s110_s5 }
  0x11   :  { %s93_s7 = sshll.u32 %s3186_s2, 4  ;;  %s3187_s16 = smov [#allocation15]   ;;  %s94_s7 = int_to_ptr.vmem [resolvable:$true] %s93_s7 }
  0x12   :  { %99 = dma.hbm_to_vmem [thread:$0]  %s92_s30, 512, %s94_s7, [#allocation13], %s3183_s21, %s3183_s21, %s3184_s22  }
  0x13   :  { %s112_s17 = sshll.u32 %s3187_s16, 4  ;;  %s113_s17 = int_to_ptr.vmem [resolvable:$true] %s112_s17 }
  0x14   :  { %118 = dma.hbm_to_vmem [thread:$0]  %s111_s5, 1536, %s113_s17, [#allocation16], %s3179_s26, %s3179_s26, %s3180_s27  }
  0x15   :  { %3168 = dma.done.wait [#allocation7], 512  }
  0x16   :  { %3169 = vsyncadd [#allocation7], 4294966784 }
  0x17   :  { %3170 = dma.done.wait [#allocation10], 1536  }
  0x18   :  { %3171 = vsyncadd [#allocation10], 4294965760 }
  0x19   :  { %3172 = dma.done.wait [#allocation13], 2048  }
  0x1a   :  { %3173 = vsyncadd [#allocation13], 4294965248 }
  0x1b   :  { %3174 = dma.done.wait [#allocation16], 1536  }
  0x1c   :  { %3175 = vsyncadd [#allocation16], 4294965760  ;;  %v3304_v0 = vld [vmem:[#allocation9 + $0x18] sm:$0xff]  ;;  %v2472_v1 = vld [vmem:[#allocation6 + $0x10] sm:$0xf]  ;;  %v3188_v34 = vmov 0  }
  0x1d   :  { %v2776_v2 = vld [vmem:[#allocation6 + $0x14] sm:$0xf0]  ;;  %v2775_v4 = vld [vmem:[#allocation6 + $0x14] sm:$0xf]  ;;  %v2474_v5 = vld [vmem:[#allocation6 + $0x18] sm:$0xf0]  ;;  %504 = vmatpush.bf16.msra.mxu3 %v3304_v0 }
  0x1e   :  { %v2473_v3 = vor.u32 %v2776_v2, %v2472_v1  ;;  %v3306_v6 = vld [vmem:[#allocation9 + $0x10] sm:$0xff]  ;;  %v2477_v7 = vor.u32 %v2775_v4, %v2474_v5  ;;  %v2464_v8 = vld [vmem:[#allocation6] sm:$0xf]  ;;  %v2774_v9 = vld [vmem:[#allocation6 + $0x4] sm:$0xf0]  ;;  %vm171_vm0 = vcmask 1041408  }
  0x1f   :  { %v2773_v10 = vld [vmem:[#allocation6 + $0x4] sm:$0xf]  ;;  %v2465_v11 = vor.u32 %v2774_v9, %v2464_v8  ;;  %v2466_v12 = vld [vmem:[#allocation6 + $0x8] sm:$0xf0]  ;;  %v146_v14 = vld [vmem:[%s3985_s0] sm:$0x3] }
  0x20   :  { %249 = vmatpush.bf16.msra.mxu0 %v2473_v3  ;;  %v3309_v13 = vld [vmem:[#allocation9 + $0x8] sm:$0xff]  ;;  %263 = vmatpush.bf16.msra.mxu1 %v2477_v7  ;;  %v2469_v15 = vor.u32 %v2773_v10, %v2466_v12  ;;  %v147_v16 = vld [vmem:[%s3985_s0 + $0x2] sm:$0x3]  ;;  %v148_v17 = vld [vmem:[%s3985_s0 + $0x4] sm:$0x3]  ;;  %v154_v19 = vpack.c.bf16 %v146_v14, %v146_v14  ;;  %vm240_vm1 = vcmask 261120  }
  0x21   :  { %v149_v18 = vld [vmem:[%s3985_s0 + $0x6] sm:$0x3]  ;;  %429 = vmatpush.bf16.msra.mxu2 %v3309_v13  ;;  %v150_v20 = vld [vmem:[%s3985_s0 + $0x8] sm:$0x3]  ;;  %v151_v21 = vld [vmem:[%s3985_s0 + $0xa] sm:$0x3]  ;;  %v155_v23 = vpack.c.bf16 %v147_v16, %v147_v16  ;;  %v156_v24 = vpack.c.bf16 %v148_v17, %v148_v17  ;;  %505 = vmatpush.bf16.msra.mxu3 %v3306_v6 }
  0x22   :  { %v152_v22 = vld [vmem:[%s3985_s0 + $0xc] sm:$0x3]  ;;  %v157_v25 = vpack.c.bf16 %v149_v18, %v149_v18  ;;  %v153_v26 = vld [vmem:[%s3985_s0 + $0xe] sm:$0x3]  ;;  %v158_v27 = vpack.c.bf16 %v150_v20, %v150_v20  ;;  %174 = vst [vmem:[#allocation1] ss:$9 sm:$0xff] %v154_v19  ;;  %v159_v29 = vpack.c.bf16 %v151_v21, %v151_v21 }
  0x23   :  { %v3337_v28 = vld [vmem:[#allocation9] sm:$0xff]  ;;  %177 = vst [vmem:[#allocation1 + $0x1] ss:$9 sm:$0xff] %v155_v23  ;;  %v166_v30 = vld [vmem:[%s3988_s3] sm:$0x3]  ;;  %v160_v31 = vpack.c.bf16 %v152_v22, %v152_v22  ;;  %v161_v35 = vpack.c.bf16 %v153_v26, %v153_v26  ;;  %vm278_vm2 = vcmask 1043458  }
  0x24   :  { %250 = vmatpush.bf16.msra.mxu0 %v2465_v11  ;;  %264 = vmatpush.bf16.msra.mxu1 %v2469_v15  ;;  %180 = vst [vmem:[#allocation1 + $0x2] ss:$9 sm:$0xff] %v156_v24  ;;  %v168_v32 = vperm.slane %v166_v30, 0  ;;  %v169_v33 = vperm.slane %v166_v30, 1  ;;  %v3365_v39 = vld [vmem:[%s3989_s4 + $0x1] ss:$0 sm:$0xff] }
  0x25   :  { %772 = vmatpush.bf16.msrb.mxu3 %v3304_v0  ;;  %183 = vst [vmem:[#allocation1 + $0x3] ss:$9 sm:$0xff] %v157_v25  ;;  %430 = vmatpush.bf16.msra.mxu2 %v3337_v28  ;;  %v3375_v42 = vld [vmem:[%s3989_s4] ss:$0 sm:$0xff]  ;;  %vm281_vm3 = vcmask 1045508   ;;  %vm284_vm4 = vcmask 1045504  }
  0x26   :  { %506 = vmatmul.bf16.vlgmr.msra.gmra.mxu3 %v3188_v34  ;;  %186 = vst [vmem:[#allocation1 + $0x4] ss:$9 sm:$0xff] %v158_v27  ;;  %v170_v36 = vrot.slane %v169_v33, 6  ;;  %vm302_vm5 = vcmask 779264   ;;  %s3189_s9 = smov 32   ;;  %s3190_s13 = smov 96  }
  0x27   :  { %189 = vst [vmem:[#allocation1 + $0x5] ss:$9 sm:$0xff] %v159_v29 }
  0x28   :  { %571 = vmatpush.bf16.msrb.mxu0 %v3309_v13  ;;  %638 = vmatpush.bf16.msrb.mxu1 %v3304_v0  ;;  %192 = vst [vmem:[#allocation1 + $0x6] ss:$9 sm:$0xff] %v160_v31  ;;  %v172_v37 = vsel %vm171_vm0, %v168_v32, %v170_v36 }
  0x29   :  { %705 = vmatpush.bf16.msrb.mxu2 %v3309_v13  ;;  %773 = vmatpush.bf16.msrb.mxu3 %v3306_v6  ;;  %195 = vst [vmem:[#allocation1 + $0x7] ss:$9 sm:$0xff] %v161_v35 }
  0x2a   :  { %431 = vmatmul.bf16.vlgmr.msra.gmra.mxu2 %v3188_v34  ;;  %225 = vst [vmem:[#allocation1 + $0x20] ss:$4 sm:$0xff] %v172_v37 }
  0x2b   :  { %227 = vst [vmem:[#allocation1 + $0x21] ss:$4 sm:$0xff] %v172_v37 }
  0x2c   :  { %572 = vmatpush.bf16.msrb.mxu0 %v3337_v28  ;;  %639 = vmatpush.bf16.msrb.mxu1 %v3306_v6  ;;  %229 = vst [vmem:[#allocation1 + $0x22] ss:$4 sm:$0xff] %v172_v37 }
  0x2d   :  { %1040 = vmatpush.bf16.msra.mxu3 %v3304_v0  ;;  %706 = vmatpush.bf16.msrb.mxu2 %v3337_v28  ;;  %231 = vst [vmem:[#allocation1 + $0x23] ss:$4 sm:$0xff] %v172_v37 }
  0x30   :  { %v196_v38 = vld [vmem:[#allocation1] sm:$0xff] }
  0x31   :  { %973 = vmatpush.bf16.msra.mxu2 %v3309_v13  ;;  %1041 = vmatpush.bf16.msra.mxu3 %v3306_v6  ;;  %217 = vst [vmem:[#allocation1] ss:$4 sm:$0xff] %v172_v37 }
  0x32   :  { %2478 = vmatmul.msk.bf16.vlgmr.msra.gmra.mxu0 %vm240_vm1, %v196_v38  ;;  %2479 = vmatmul.msk.bf16.vlgmr.msra.gmra.mxu1 %vm240_vm1, %v196_v38  ;;  %219 = vst [vmem:[#allocation1 + $0x1] ss:$4 sm:$0xff] %v172_v37 }
  0x33   :  { %906 = vmatpush.bf16.msra.mxu1 %v3304_v0  ;;  %839 = vmatpush.bf16.msra.mxu0 %v3309_v13  ;;  %221 = vst [vmem:[#allocation1 + $0x2] ss:$4 sm:$0xff] %v172_v37 }
  0x34   :  { %223 = vst [vmem:[#allocation1 + $0x3] ss:$4 sm:$0xff] %v172_v37  ;;  %v235_v53 = vld.sshfl [vmem:[#allocation1 + $0x28] sm:$0xff pattern:$0x73625140] }
  0x35   :  { %974 = vmatpush.bf16.msra.mxu2 %v3337_v28  ;;  %v234_v62 = vld.sshfl [vmem:[#allocation1 + $0x20] sm:$0xff pattern:$0x73625140] }
  0x37   :  { %907 = vmatpush.bf16.msra.mxu1 %v3306_v6  ;;  %840 = vmatpush.bf16.msra.mxu0 %v3337_v28 }
  0x3b   :  { %v232_v44 = vld.sshfl [vmem:[#allocation1] sm:$0xff pattern:$0x73625140]  ;;  %v233_v45 = vld.sshfl [vmem:[#allocation1 + $0x8] sm:$0xff pattern:$0x73625140] }
  0xa9   :  { %v507_v40 = vpop.f32.mrf.mxu3 }
  0xaa   :  { %v3368_v41 = vadd.f32 %v3365_v39, %v507_v40 }
  0xac   :  { %532 = vrot.lane.b32.xlu1 %v3368_v41, %s3179_s26 }
  0xad   :  { %v432_v43 = vpop.f32.mrf.mxu2 }
  0xae   :  { %v3378_v50 = vadd.f32 %v3375_v42, %v432_v43 }
  0xaf   :  { %v252_v46 = vpop.f32.mrf.mxu0  ;;  %v266_v47 = vpop.f32.mrf.mxu1 }
  0xb0   :  { %v253_v48 = vadd.f32 %v252_v46, %v232_v44  ;;  %v267_v49 = vadd.f32 %v266_v47, %v233_v45 }
  0xb1   :  { %v509_v51 = vpop.f32.mrf.mxu3 }
  0xb2   :  { %v275_v52 = vrot.slane %v267_v49, 6 }
  0xb4   :  { %v277_v54 = vsel %vm171_vm0, %v253_v48, %v275_v52  ;;  %v279_v55 = vsel %vm278_vm2, %v253_v48, %v275_v52  ;;  %v282_v56 = vsel %vm281_vm3, %v253_v48, %v275_v52  ;;  %v285_v57 = vsel %vm284_vm4, %v275_v52, %v253_v48  ;;  %457 = vrot.lane.b32.xlu1 %v3378_v50, %s3179_s26 }
  0xb5   :  { %v434_v58 = vpop.f32.mrf.mxu2  ;;  %v280_v59 = vrot.slane %v279_v55, 2  ;;  %v283_v60 = vrot.slane %v282_v56, 4  ;;  %v286_v61 = vrot.slane %v285_v57, 6  ;;  %303 = vst.msk [vmem:[#allocation2] sm:$0x3] %vm302_vm5, %v277_v54 }
  0xb6   :  { %311 = vst [vmem:[#allocation1] ss:$4 sm:$0xff] %v277_v54 }
  0xb7   :  { %304 = vst.msk [vmem:[#allocation2 + $0x2] sm:$0x3] %vm302_vm5, %v280_v59  ;;  %v254_v63 = vpop.f32.mrf.mxu0  ;;  %v268_v1 = vpop.f32.mrf.mxu1 }
  0xb8   :  { %305 = vst.msk [vmem:[#allocation2 + $0x4] sm:$0x3] %vm302_vm5, %v283_v60  ;;  %v269_v2 = vadd.f32 %v268_v1, %v235_v53  ;;  %v255_v3 = vadd.f32 %v254_v63, %v234_v62 }
  0xb9   :  { %306 = vst.msk [vmem:[#allocation2 + $0x6] sm:$0x3] %vm302_vm5, %v286_v61 }
  0xba   :  { %315 = vst [vmem:[#allocation1 + $0x20] ss:$4 sm:$0xff] %v280_v59  ;;  %v276_v4 = vrot.slane %v269_v2, 6 }
  0xbc   :  { %v287_v5 = vsel %vm171_vm0, %v255_v3, %v276_v4  ;;  %v288_v7 = vsel %vm278_vm2, %v255_v3, %v276_v4  ;;  %v290_v8 = vsel %vm281_vm3, %v255_v3, %v276_v4  ;;  %v292_v11 = vsel %vm284_vm4, %v276_v4, %v255_v3  ;;  %v404_v30 = vld [vmem:[#allocation2] sm:$0x3] }
  0xbd   :  { %v3393_v9 = vld.sshfl [vmem:[#allocation1] sm:$0xff pattern:$0x73625140]  ;;  %v3395_v10 = vld.sshfl [vmem:[#allocation1 + $0x8] sm:$0xff pattern:$0x73625140]  ;;  %v436_v31 = vadd.f32 %v3378_v50, %v404_v30 }
  0xbe   :  { %318 = vst [vmem:[#allocation1] ss:$4 sm:$0xff] %v283_v60  ;;  %v289_v12 = vrot.slane %v288_v7, 2  ;;  %v291_v14 = vrot.slane %v290_v8, 4  ;;  %v293_v15 = vrot.slane %v292_v11, 6 }
  0xbf   :  { %307 = vst.msk [vmem:[#allocation2 + $0x8] sm:$0x3] %vm302_vm5, %v287_v5  ;;  %v2489_v34 = vmul.f32 -1.442695, %v436_v31 }
  0xc0   :  { %308 = vst.msk [vmem:[#allocation2 + $0xa] sm:$0x3] %vm302_vm5, %v289_v12 }
  0xc1   :  { %v3400_v16 = vld.sshfl [vmem:[#allocation1 + $0x20] sm:$0xff pattern:$0x73625140]  ;;  %v3402_v17 = vld.sshfl [vmem:[#allocation1 + $0x28] sm:$0xff pattern:$0x73625140]  ;;  %2902 = vpow2.f32 %v2489_v34 }
  0xc2   :  { %321 = vst [vmem:[#allocation1 + $0x20] ss:$4 sm:$0xff] %v286_v61 }
  0xc3   :  { %309 = vst.msk [vmem:[#allocation2 + $0xc] sm:$0x3] %vm302_vm5, %v291_v14 }
  0xc4   :  { %310 = vst.msk [vmem:[#allocation2 + $0xe] sm:$0x3] %vm302_vm5, %v293_v15 }
  0xc5   :  { %v3406_v18 = vld.sshfl [vmem:[#allocation1] sm:$0xff pattern:$0x73625140]  ;;  %v3408_v19 = vld.sshfl [vmem:[#allocation1 + $0x8] sm:$0xff pattern:$0x73625140] }
  0xc6   :  { %324 = vst [vmem:[#allocation1] ss:$4 sm:$0xff] %v287_v5 }
  0xc7   :  { %v2903_v37 = vpop.eup %2902 }
  0xc8   :  { %v440_v40 = vadd.f32 1.0, %v2903_v37 }
  0xc9   :  { %v3410_v20 = vld.sshfl [vmem:[#allocation1 + $0x20] sm:$0xff pattern:$0x73625140]  ;;  %v3412_v21 = vld.sshfl [vmem:[#allocation1 + $0x28] sm:$0xff pattern:$0x73625140] }
  0xca   :  { %327 = vst [vmem:[#allocation1 + $0x20] ss:$4 sm:$0xff] %v289_v12  ;;  %v452_v61 = vand.u32 2147483648, %v440_v40  ;;  %vm446_vm11 = vweird.f32 %v440_v40  ;;  %v450_v62 = vand.u32 2147483647, %v440_v40 }
  0xcc   :  { %v453_v2 = vor.u32 1.1754944e-38, %v452_v61  ;;  %vm451_vm13 = vcmp.eq.f32.partialorder %v450_v62, 8.507059e+37 }
  0xcd   :  { %v3414_v22 = vld.sshfl [vmem:[#allocation1] sm:$0xff pattern:$0x73625140]  ;;  %v3416_v23 = vld.sshfl [vmem:[#allocation1 + $0x8] sm:$0xff pattern:$0x73625140] }
  0xce   :  { %330 = vst [vmem:[#allocation1] ss:$4 sm:$0xff] %v291_v14 }
  0xd1   :  { %v3418_v24 = vld.sshfl [vmem:[#allocation1 + $0x20] sm:$0xff pattern:$0x73625140]  ;;  %v3420_v25 = vld.sshfl [vmem:[#allocation1 + $0x28] sm:$0xff pattern:$0x73625140] }
  0xd2   :  { %333 = vst [vmem:[#allocation1 + $0x20] ss:$4 sm:$0xff] %v293_v15 }
  0xd5   :  { %v331_v15 = vld.sshfl [vmem:[#allocation1] sm:$0xff pattern:$0x73625140] }
  0xd9   :  { %v334_v26 = vld.sshfl [vmem:[#allocation1 + $0x20] sm:$0xff pattern:$0x73625140]  ;;  %v335_v27 = vld.sshfl [vmem:[#allocation1 + $0x28] sm:$0xff pattern:$0x73625140] }
  0xda   :  { %364 = vrot.lane.b32.xlu0 %v334_v26, %s3189_s9 }
  0xe2   :  { %366 = vrot.lane.b32.xlu0 %v335_v27, %s3189_s9 }
 0x11e   :  { %v533_v54 = vpop.permute.xlu1 %532 }
 0x126   :  { %v458_v1 = vpop.permute.xlu1 %457 }
 0x14c   :  { %v365_v29 = vpop.permute.xlu0 %364 }
 0x154   :  { %v367_v32 = vpop.permute.xlu0 %366 }
 0x155   :  { %v375_v33 = vsel %vm240_vm1, %v365_v29, %v367_v32 }
 0x156   :  { %391 = vst.msk [vmem:[#allocation3 + $0xe] sm:$0x3] %vm302_vm5, %v375_v33 }
 0x15d   :  { %v482_v35 = vld [vmem:[#allocation3 + $0xe] sm:$0x3] }
 0x15e   :  { %v511_v36 = vadd.f32 %v3368_v41, %v482_v35 }
 0x160   :  { %v2498_v38 = vmul.f32 -1.442695, %v511_v36 }
 0x162   :  { %2904 = vpow2.f32 %v2498_v38 }
 0x163   :  { %2906 = vrcp.f32 %v440_v40 }
 0x168   :  { %v2905_v43 = vpop.eup %2904 }
 0x169   :  { %v515_v44 = vadd.f32 1.0, %v2905_v43  ;;  %v2907_v45 = vpop.eup %2906 }
 0x16a   :  { %v442_v46 = vmul.f32 %v2907_v45, %v440_v40  ;;  %vm447_vm10 = vweird.f32 %v2907_v45  ;;  %v332_v40 = vld.sshfl [vmem:[#allocation1 + $0x8] sm:$0xff pattern:$0x73625140] }
 0x16b   :  { %2908 = vrcp.f32 %v515_v44  ;;  %v527_v51 = vand.u32 2147483648, %v515_v44  ;;  %v525_v53 = vand.u32 2147483647, %v515_v44  ;;  %vm521_vm7 = vweird.f32 %v515_v44  ;;  %vm448_vm12 = vmor %vm446_vm11, %vm447_vm10 }
 0x16c   :  { %v443_v49 = vsub.f32 1.0, %v442_v46 }
 0x16d   :  { %v528_v56 = vor.u32 1.1754944e-38, %v527_v51  ;;  %vm526_vm9 = vcmp.eq.f32.partialorder %v525_v53, 8.507059e+37 }
 0x16e   :  { %v444_v41 = vmul.f32 %v2907_v45, %v443_v49 }
 0x170   :  { %v445_v59 = vadd.f32 %v2907_v45, %v444_v41 }
 0x171   :  { %v2909_v47 = vpop.eup %2908 }
 0x172   :  { %v517_v48 = vmul.f32 %v2909_v47, %v515_v44  ;;  %vm522_vm6 = vweird.f32 %v2909_v47  ;;  %v449_v63 = vsel %vm448_vm12, %v2907_v45, %v445_v59 }
 0x173   :  { %vm523_vm8 = vmor %vm521_vm7, %vm522_vm6  ;;  %v454_v3 = vsel %vm451_vm13, %v453_v2, %v449_v63 }
 0x174   :  { %v518_v50 = vsub.f32 1.0, %v517_v48  ;;  %v460_v4 = vmul.f32 %v458_v1, %v454_v3 }
 0x176   :  { %v519_v52 = vmul.f32 %v2909_v47, %v518_v50 }
 0x178   :  { %v520_v55 = vadd.f32 %v2909_v47, %v519_v52 }
 0x17a   :  { %v524_v57 = vsel %vm523_vm8, %v2909_v47, %v520_v55 }
 0x17b   :  { %v529_v58 = vsel %vm526_vm9, %v528_v56, %v524_v57 }
 0x17c   :  { %v535_v60 = vmul.f32 %v533_v54, %v529_v58  ;;  %v542_v26 = vsub.f32 1.0, %v529_v58  ;;  %v548_v29 = vmul.f32 0.0, %v529_v58 }
 0x17e   :  { %537 = vrot.lane.b32.xlu2 %v535_v60, %s3179_s26  ;;  %v557_v60 = vld [vmem:[#allocation2 + $0x2] sm:$0x3] }
 0x186   :  { %462 = vrot.lane.b32.xlu2 %v460_v4, %s3179_s26 }
 0x1d8   :  { %v538_v5 = vpop.permute.xlu2 %537 }
 0x1d9   :  { %v540_v7 = vadd.f32 %v538_v5, %v482_v35  ;;  %v473_v35 = vmul.f32 0.0, %v454_v3 }
 0x1db   :  { %2910 = vtanh.f32 %v540_v7 }
 0x1e0   :  { %v463_v8 = vpop.permute.xlu2 %462 }
 0x1e1   :  { %v2911_v11 = vpop.eup %2910  ;;  %v465_v12 = vadd.f32 %v463_v8, %v404_v30  ;;  %v467_v30 = vsub.f32 1.0, %v454_v3 }
 0x1e2   :  { %544 = vrot.lane.b32.xlu0 %v2911_v11, %s3190_s13 }
 0x1e3   :  { %2912 = vtanh.f32 %v465_v12 }
 0x1e9   :  { %v2913_v14 = vpop.eup %2912 }
 0x1ea   :  { %469 = vrot.lane.b32.xlu1 %v2913_v14, %s3190_s13 }
 0x1f2   :  { %360 = vrot.lane.b32.xlu1 %v331_v15, %s3189_s9 }
 0x254   :  { %v545_v27 = vpop.permute.xlu0 %544 }
 0x255   :  { %v547_v31 = vmul.f32 %v545_v27, %v542_v26 }
 0x257   :  { %v3433_v32 = vadd.f32 %v548_v29, %v547_v31 }
 0x259   :  { %v625_v33 = vpack.c.bf16 %v3433_v32, %v3433_v32 }
 0x25b   :  { %627 = vrot.lane.b32.xlu2 %v625_v33, %s3190_s13 }
 0x25c   :  { %v470_v34 = vpop.permute.xlu1 %469 }
 0x25d   :  { %v472_v36 = vmul.f32 %v470_v34, %v467_v30 }
 0x25f   :  { %v3438_v37 = vadd.f32 %v473_v35, %v472_v36 }
 0x261   :  { %v558_v38 = vpack.c.bf16 %v3438_v37, %v3438_v37 }
 0x263   :  { %362 = vrot.lane.b32.xlu2 %v332_v40, %s3189_s9  ;;  %560 = vrot.lane.b32.xlu0 %v558_v38, %s3190_s13 }
 0x264   :  { %v361_v44 = vpop.permute.xlu1 %360 }
 0x2b5   :  { %v628_v43 = vpop.permute.xlu2 %627 }
 0x2b6   :  { %2501 = vmatmul.msk.bf16.vlgmr.msrb.gmra.mxu1 %vm240_vm1, %v628_v43 }
 0x2b7   :  { %1174 = vmatpush.bf16.msrb.mxu1 %v3304_v0 }
 0x2bb   :  { %1175 = vmatpush.bf16.msrb.mxu1 %v3306_v6 }
 0x2bd   :  { %v363_v45 = vpop.permute.xlu2 %362 }
 0x2be   :  { %v374_v46 = vsel %vm240_vm1, %v361_v44, %v363_v45 }
 0x2bf   :  { %390 = vst.msk [vmem:[#allocation3 + $0xc] sm:$0x3] %vm302_vm5, %v374_v46 }
 0x2c6   :  { %v624_v54 = vld [vmem:[#allocation3 + $0xc] sm:$0x3] }
 0x2d5   :  { %v561_v47 = vpop.permute.xlu0 %560 }
 0x2d6   :  { %2499 = vmatmul.msk.bf16.vlgmr.msrb.gmra.mxu0 %vm240_vm1, %v561_v47 }
 0x2d7   :  { %1107 = vmatpush.bf16.msrb.mxu0 %v3309_v13 }
 0x2db   :  { %1108 = vmatpush.bf16.msrb.mxu0 %v3337_v28 }
 0x333   :  { %v641_v48 = vpop.f32.mrf.mxu1 }
 0x334   :  { %v642_v49 = vadd.f32 %v3365_v39, %v641_v48 }
 0x336   :  { %666 = vrot.lane.b32.xlu0 %v642_v49, %s3179_s26  ;;  %v645_v41 = vadd.f32 %v642_v49, %v624_v54 }
 0x338   :  { %v2502_v55 = vmul.f32 -1.442695, %v645_v41 }
 0x33a   :  { %2914 = vpow2.f32 %v2502_v55 }
 0x33b   :  { %v643_v50 = vpop.f32.mrf.mxu1 }
 0x340   :  { %v2915_v56 = vpop.eup %2914 }
 0x341   :  { %v649_v57 = vadd.f32 1.0, %v2915_v56 }
 0x343   :  { %2916 = vrcp.f32 %v649_v57  ;;  %v661_v3 = vand.u32 2147483648, %v649_v57  ;;  %vm655_vm15 = vweird.f32 %v649_v57  ;;  %v659_v4 = vand.u32 2147483647, %v649_v57 }
 0x345   :  { %v662_v8 = vor.u32 1.1754944e-38, %v661_v3  ;;  %vm660_vm2 = vcmp.eq.f32.partialorder %v659_v4, 8.507059e+37 }
 0x349   :  { %v2917_v58 = vpop.eup %2916 }
 0x34a   :  { %v651_v59 = vmul.f32 %v2917_v58, %v649_v57  ;;  %vm656_vm14 = vweird.f32 %v2917_v58 }
 0x34b   :  { %vm657_vm0 = vmor %vm655_vm15, %vm656_vm14 }
 0x34c   :  { %v652_v62 = vsub.f32 1.0, %v651_v59 }
 0x34e   :  { %v653_v1 = vmul.f32 %v2917_v58, %v652_v62 }
 0x350   :  { %v654_v2 = vadd.f32 %v2917_v58, %v653_v1 }
 0x352   :  { %v658_v7 = vsel %vm657_vm0, %v2917_v58, %v654_v2 }
 0x353   :  { %v574_v51 = vpop.f32.mrf.mxu0  ;;  %v663_v14 = vsel %vm660_vm2, %v662_v8, %v658_v7 }
 0x354   :  { %v575_v52 = vadd.f32 %v3375_v42, %v574_v51  ;;  %v676_v50 = vsub.f32 1.0, %v663_v14 }
 0x356   :  { %599 = vrot.lane.b32.xlu1 %v575_v52, %s3179_s26  ;;  %v578_v61 = vadd.f32 %v575_v52, %v557_v60  ;;  %v682_v52 = vmul.f32 %v663_v14, %v3433_v32 }
 0x358   :  { %v2500_v63 = vmul.f32 -1.442695, %v578_v61 }
 0x35a   :  { %2918 = vpow2.f32 %v2500_v63 }
 0x35b   :  { %v576_v53 = vpop.f32.mrf.mxu0 }
 0x360   :  { %v2919_v5 = vpop.eup %2918 }
 0x361   :  { %v582_v11 = vadd.f32 1.0, %v2919_v5 }
 0x363   :  { %2920 = vrcp.f32 %v582_v11  ;;  %v594_v30 = vand.u32 2147483648, %v582_v11  ;;  %vm588_vm4 = vweird.f32 %v582_v11  ;;  %v592_v34 = vand.u32 2147483647, %v582_v11 }
 0x365   :  { %v595_v36 = vor.u32 1.1754944e-38, %v594_v30  ;;  %vm593_vm7 = vcmp.eq.f32.partialorder %v592_v34, 8.507059e+37 }
 0x369   :  { %v2921_v26 = vpop.eup %2920 }
 0x36a   :  { %v584_v27 = vmul.f32 %v2921_v26, %v582_v11  ;;  %vm589_vm3 = vweird.f32 %v2921_v26 }
 0x36b   :  { %vm590_vm6 = vmor %vm588_vm4, %vm589_vm3 }
 0x36c   :  { %v585_v29 = vsub.f32 1.0, %v584_v27 }
 0x36e   :  { %v586_v31 = vmul.f32 %v2921_v26, %v585_v29 }
 0x370   :  { %v587_v33 = vadd.f32 %v2921_v26, %v586_v31 }
 0x372   :  { %v591_v35 = vsel %vm590_vm6, %v2921_v26, %v587_v33 }
 0x373   :  { %v596_v38 = vsel %vm593_vm7, %v595_v36, %v591_v35 }
 0x374   :  { %v609_v55 = vsub.f32 1.0, %v596_v38  ;;  %v615_v57 = vmul.f32 %v596_v38, %v3438_v37 }
 0x3a8   :  { %v667_v12 = vpop.permute.xlu0 %666 }
 0x3a9   :  { %v669_v15 = vmul.f32 %v667_v12, %v663_v14  ;;  %v691_v14 = vld [vmem:[#allocation2 + $0x4] sm:$0x3] }
 0x3ab   :  { %671 = vrot.lane.b32.xlu2 %v669_v15, %s3179_s26 }
 0x3c8   :  { %v600_v40 = vpop.permute.xlu1 %599 }
 0x3c9   :  { %v602_v43 = vmul.f32 %v600_v40, %v596_v38 }
 0x3cb   :  { %604 = vrot.lane.b32.xlu0 %v602_v43, %s3179_s26 }
 0x405   :  { %v672_v44 = vpop.permute.xlu2 %671 }
 0x406   :  { %v674_v45 = vadd.f32 %v672_v44, %v624_v54 }
 0x408   :  { %2922 = vtanh.f32 %v674_v45 }
 0x40e   :  { %v2923_v46 = vpop.eup %2922 }
 0x40f   :  { %678 = vrot.lane.b32.xlu1 %v2923_v46, %s3190_s13 }
 0x43d   :  { %v605_v47 = vpop.permute.xlu0 %604 }
 0x43e   :  { %v607_v48 = vadd.f32 %v605_v47, %v557_v60 }
 0x440   :  { %2924 = vtanh.f32 %v607_v48 }
 0x446   :  { %v2925_v49 = vpop.eup %2924 }
 0x447   :  { %611 = vrot.lane.b32.xlu2 %v2925_v49, %s3190_s13 }
 0x44f   :  { %356 = vrot.lane.b32.xlu2 %v3418_v24, %s3189_s9 }
 0x481   :  { %v679_v51 = vpop.permute.xlu1 %678 }
 0x482   :  { %v681_v53 = vmul.f32 %v679_v51, %v676_v50 }
 0x484   :  { %v3463_v41 = vadd.f32 %v682_v52, %v681_v53 }
 0x486   :  { %v759_v54 = vpack.c.bf16 %v3463_v41, %v3463_v41 }
 0x488   :  { %761 = vrot.lane.b32.xlu0 %v759_v54, %s3190_s13 }
 0x490   :  { %358 = vrot.lane.b32.xlu0 %v3420_v25, %s3189_s9 }
 0x4a1   :  { %v612_v56 = vpop.permute.xlu2 %611 }
 0x4a2   :  { %v614_v24 = vmul.f32 %v612_v56, %v609_v55 }
 0x4a4   :  { %v3471_v58 = vadd.f32 %v615_v57, %v614_v24 }
 0x4a6   :  { %v692_v59 = vpack.c.bf16 %v3471_v58, %v3471_v58 }
 0x4a8   :  { %694 = vrot.lane.b32.xlu1 %v692_v59, %s3190_s13 }
 0x4a9   :  { %v357_v25 = vpop.permute.xlu2 %356 }
 0x4fa   :  { %v762_v60 = vpop.permute.xlu0 %761 }
 0x4fb   :  { %2505 = vmatmul.msk.bf16.vlgmr.msrb.gmra.mxu3 %vm240_vm1, %v762_v60 }
 0x4fc   :  { %1308 = vmatpush.bf16.msrb.mxu3 %v3304_v0 }
 0x500   :  { %1309 = vmatpush.bf16.msrb.mxu3 %v3306_v6 }
 0x502   :  { %v359_v61 = vpop.permute.xlu0 %358 }
 0x503   :  { %v373_v62 = vsel %vm240_vm1, %v357_v25, %v359_v61 }
 0x504   :  { %389 = vst.msk [vmem:[#allocation3 + $0xa] sm:$0x3] %vm302_vm5, %v373_v62 }
 0x50b   :  { %v758_v8 = vld [vmem:[#allocation3 + $0xa] sm:$0x3] }
 0x51a   :  { %v695_v63 = vpop.permute.xlu1 %694 }
 0x51b   :  { %2503 = vmatmul.msk.bf16.vlgmr.msrb.gmra.mxu2 %vm240_vm1, %v695_v63 }
 0x51c   :  { %1241 = vmatpush.bf16.msrb.mxu2 %v3309_v13 }
 0x520   :  { %1242 = vmatpush.bf16.msrb.mxu2 %v3337_v28 }
 0x57e   :  { %v775_v1 = vpop.f32.mrf.mxu3 }
 0x57f   :  { %v776_v2 = vadd.f32 %v3365_v39, %v775_v1 }
 0x581   :  { %800 = vrot.lane.b32.xlu1 %v776_v2, %s3179_s26  ;;  %v779_v11 = vadd.f32 %v776_v2, %v758_v8 }
 0x583   :  { %v2506_v12 = vmul.f32 -1.442695, %v779_v11 }
 0x585   :  { %2926 = vpow2.f32 %v2506_v12 }
 0x586   :  { %v777_v3 = vpop.f32.mrf.mxu3 }
 0x58b   :  { %v2927_v27 = vpop.eup %2926 }
 0x58c   :  { %v783_v29 = vadd.f32 1.0, %v2927_v27 }
 0x58e   :  { %v795_v45 = vand.u32 2147483648, %v783_v29  ;;  %vm789_vm9 = vweird.f32 %v783_v29  ;;  %v793_v46 = vand.u32 2147483647, %v783_v29 }
 0x590   :  { %v796_v49 = vor.u32 1.1754944e-38, %v795_v45  ;;  %vm794_vm11 = vcmp.eq.f32.partialorder %v793_v46, 8.507059e+37 }
 0x59e   :  { %v708_v4 = vpop.f32.mrf.mxu2 }
 0x59f   :  { %v709_v5 = vadd.f32 %v3375_v42, %v708_v4 }
 0x5a1   :  { %733 = vrot.lane.b32.xlu2 %v709_v5, %s3179_s26  ;;  %v712_v15 = vadd.f32 %v709_v5, %v691_v14 }
 0x5a3   :  { %v2504_v26 = vmul.f32 -1.442695, %v712_v15 }
 0x5a5   :  { %2928 = vpow2.f32 %v2504_v26 }
 0x5a6   :  { %v710_v7 = vpop.f32.mrf.mxu2  ;;  %2930 = vrcp.f32 %v783_v29 }
 0x5ab   :  { %v2929_v31 = vpop.eup %2928 }
 0x5ac   :  { %v716_v33 = vadd.f32 1.0, %v2929_v31  ;;  %v2931_v30 = vpop.eup %2930 }
 0x5ad   :  { %v785_v34 = vmul.f32 %v2931_v30, %v783_v29  ;;  %vm790_vm8 = vweird.f32 %v2931_v30 }
 0x5ae   :  { %2932 = vrcp.f32 %v716_v33  ;;  %vm791_vm10 = vmor %vm789_vm9, %vm790_vm8  ;;  %v728_v54 = vand.u32 2147483648, %v716_v33  ;;  %vm722_vm13 = vweird.f32 %v716_v33  ;;  %v726_v55 = vand.u32 2147483647, %v716_v33 }
 0x5af   :  { %v786_v35 = vsub.f32 1.0, %v785_v34 }
 0x5b0   :  { %v729_v57 = vor.u32 1.1754944e-38, %v728_v54  ;;  %vm727_vm15 = vcmp.eq.f32.partialorder %v726_v55, 8.507059e+37 }
 0x5b1   :  { %v787_v38 = vmul.f32 %v2931_v30, %v786_v35 }
 0x5b3   :  { %v788_v43 = vadd.f32 %v2931_v30, %v787_v38 }
 0x5b4   :  { %v2933_v36 = vpop.eup %2932 }
 0x5b5   :  { %v718_v40 = vmul.f32 %v2933_v36, %v716_v33  ;;  %v792_v47 = vsel %vm791_vm10, %v2931_v30, %v788_v43  ;;  %vm723_vm12 = vweird.f32 %v2933_v36 }
 0x5b6   :  { %v797_v51 = vsel %vm794_vm11, %v796_v49, %v792_v47  ;;  %vm724_vm14 = vmor %vm722_vm13, %vm723_vm12  ;;  %v825_v47 = vld [vmem:[#allocation2 + $0x6] sm:$0x3] }
 0x5b7   :  { %v719_v44 = vsub.f32 1.0, %v718_v40  ;;  %v810_v3 = vsub.f32 1.0, %v797_v51  ;;  %v816_v5 = vmul.f32 %v797_v51, %v3463_v41 }
 0x5b9   :  { %v720_v48 = vmul.f32 %v2933_v36, %v719_v44 }
 0x5bb   :  { %v721_v53 = vadd.f32 %v2933_v36, %v720_v48 }
 0x5bd   :  { %v725_v56 = vsel %vm724_vm14, %v2933_v36, %v721_v53 }
 0x5be   :  { %v730_v24 = vsel %vm727_vm15, %v729_v57, %v725_v56 }
 0x5bf   :  { %v743_v12 = vsub.f32 1.0, %v730_v24  ;;  %v749_v15 = vmul.f32 %v730_v24, %v3471_v58 }
 0x5f3   :  { %v801_v50 = vpop.permute.xlu1 %800 }
 0x5f4   :  { %v803_v52 = vmul.f32 %v801_v50, %v797_v51 }
 0x5f6   :  { %805 = vrot.lane.b32.xlu0 %v803_v52, %s3179_s26 }
 0x5fb   :  { %v734_v59 = vpop.permute.xlu2 %733 }
 0x5fc   :  { %v736_v60 = vmul.f32 %v734_v59, %v730_v24 }
 0x5fe   :  { %738 = vrot.lane.b32.xlu1 %v736_v60, %s3179_s26 }
 0x668   :  { %v806_v25 = vpop.permute.xlu0 %805 }
 0x669   :  { %v808_v61 = vadd.f32 %v806_v25, %v758_v8 }
 0x66b   :  { %2934 = vtanh.f32 %v808_v61 }
 0x670   :  { %v739_v62 = vpop.permute.xlu1 %738 }
 0x671   :  { %v2935_v63 = vpop.eup %2934  ;;  %v741_v1 = vadd.f32 %v739_v62, %v691_v14 }
 0x672   :  { %812 = vrot.lane.b32.xlu2 %v2935_v63, %s3190_s13 }
 0x673   :  { %2936 = vtanh.f32 %v741_v1 }
 0x679   :  { %v2937_v2 = vpop.eup %2936 }
 0x67a   :  { %745 = vrot.lane.b32.xlu0 %v2937_v2, %s3190_s13 }
 0x682   :  { %352 = vrot.lane.b32.xlu0 %v3414_v22, %s3189_s9 }
 0x6cc   :  { %v813_v4 = vpop.permute.xlu2 %812 }
 0x6cd   :  { %v815_v7 = vmul.f32 %v813_v4, %v810_v3 }
 0x6cf   :  { %v3495_v11 = vadd.f32 %v816_v5, %v815_v7 }
 0x6d1   :  { %v893_v8 = vpack.c.bf16 %v3495_v11, %v3495_v11 }
 0x6d3   :  { %895 = vrot.lane.b32.xlu1 %v893_v8, %s3190_s13 }
 0x6db   :  { %354 = vrot.lane.b32.xlu1 %v3416_v23, %s3189_s9 }
 0x6ec   :  { %v746_v14 = vpop.permute.xlu0 %745 }
 0x6ed   :  { %v748_v22 = vmul.f32 %v746_v14, %v743_v12 }
 0x6ef   :  { %v3503_v26 = vadd.f32 %v749_v15, %v748_v22 }
 0x6f1   :  { %v826_v27 = vpack.c.bf16 %v3503_v26, %v3503_v26 }
 0x6f3   :  { %828 = vrot.lane.b32.xlu2 %v826_v27, %s3190_s13 }
 0x6f4   :  { %v353_v23 = vpop.permute.xlu0 %352 }
 0x745   :  { %v896_v29 = vpop.permute.xlu1 %895 }
 0x746   :  { %2509 = vmatmul.msk.bf16.vlgmr.msra.gmra.mxu1 %vm240_vm1, %v896_v29 }
 0x747   :  { %1441 = vmatpush.bf16.msra.mxu1 %v3304_v0 }
 0x74b   :  { %1442 = vmatpush.bf16.msra.mxu1 %v3306_v6 }
 0x74d   :  { %v355_v31 = vpop.permute.xlu1 %354  ;;  %v829_v33 = vpop.permute.xlu2 %828 }
 0x74e   :  { %v372_v30 = vsel %vm240_vm1, %v353_v23, %v355_v31  ;;  %2507 = vmatmul.msk.bf16.vlgmr.msra.gmra.mxu0 %vm240_vm1, %v829_v33 }
 0x74f   :  { %388 = vst.msk [vmem:[#allocation3 + $0x8] sm:$0x3] %vm302_vm5, %v372_v30  ;;  %1375 = vmatpush.bf16.msra.mxu0 %v3309_v13 }
 0x753   :  { %1376 = vmatpush.bf16.msra.mxu0 %v3337_v28 }
 0x756   :  { %v892_v40 = vld [vmem:[#allocation3 + $0x8] sm:$0x3] }
 0x7c3   :  { %v909_v34 = vpop.f32.mrf.mxu1 }
 0x7c4   :  { %v910_v35 = vadd.f32 %v3365_v39, %v909_v34 }
 0x7c6   :  { %934 = vrot.lane.b32.xlu2 %v910_v35, %s3179_s26  ;;  %v913_v43 = vadd.f32 %v910_v35, %v892_v40 }
 0x7c8   :  { %v2510_v44 = vmul.f32 -1.442695, %v913_v43 }
 0x7ca   :  { %2938 = vpow2.f32 %v2510_v44 }
 0x7cb   :  { %v842_v0 = vpop.f32.mrf.mxu0  ;;  %v911_v6 = vpop.f32.mrf.mxu1 }
 0x7cc   :  { %v843_v36 = vadd.f32 %v3375_v42, %v842_v0 }
 0x7ce   :  { %867 = vrot.lane.b32.xlu0 %v843_v36, %s3179_s26  ;;  %v846_v48 = vadd.f32 %v843_v36, %v825_v47 }
 0x7d0   :  { %v2939_v45 = vpop.eup %2938  ;;  %v2508_v50 = vmul.f32 -1.442695, %v846_v48 }
 0x7d1   :  { %v917_v13 = vadd.f32 1.0, %v2939_v45 }
 0x7d3   :  { %v844_v38 = vpop.f32.mrf.mxu0  ;;  %2940 = vrcp.f32 %v917_v13  ;;  %v929_v53 = vand.u32 2147483648, %v917_v13  ;;  %vm923_vm2 = vweird.f32 %v917_v13  ;;  %v927_v54 = vand.u32 2147483647, %v917_v13 }
 0x7d4   :  { %2942 = vpow2.f32 %v2508_v50 }
 0x7d5   :  { %v930_v57 = vor.u32 1.1754944e-38, %v929_v53  ;;  %vm928_vm4 = vcmp.eq.f32.partialorder %v927_v54, 8.507059e+37 }
 0x7d9   :  { %v2941_v28 = vpop.eup %2940 }
 0x7da   :  { %v919_v46 = vmul.f32 %v2941_v28, %v917_v13  ;;  %vm924_vm0 = vweird.f32 %v2941_v28  ;;  %v2943_v55 = vpop.eup %2942 }
 0x7db   :  { %vm925_vm3 = vmor %vm923_vm2, %vm924_vm0  ;;  %v850_v24 = vadd.f32 1.0, %v2943_v55 }
 0x7dc   :  { %v920_v49 = vsub.f32 1.0, %v919_v46 }
 0x7dd   :  { %2944 = vrcp.f32 %v850_v24  ;;  %v862_v3 = vand.u32 2147483648, %v850_v24  ;;  %vm856_vm7 = vweird.f32 %v850_v24  ;;  %v860_v4 = vand.u32 2147483647, %v850_v24 }
 0x7de   :  { %v921_v51 = vmul.f32 %v2941_v28, %v920_v49 }
 0x7df   :  { %v863_v7 = vor.u32 1.1754944e-38, %v862_v3  ;;  %vm861_vm9 = vcmp.eq.f32.partialorder %v860_v4, 8.507059e+37 }
 0x7e0   :  { %v922_v52 = vadd.f32 %v2941_v28, %v921_v51 }
 0x7e2   :  { %v926_v56 = vsel %vm925_vm3, %v2941_v28, %v922_v52 }
 0x7e3   :  { %v931_v59 = vsel %vm928_vm4, %v930_v57, %v926_v56  ;;  %v2945_v61 = vpop.eup %2944 }
 0x7e4   :  { %v852_v62 = vmul.f32 %v2945_v61, %v850_v24  ;;  %vm857_vm6 = vweird.f32 %v2945_v61  ;;  %v944_v33 = vsub.f32 1.0, %v931_v59  ;;  %v950_v34 = vmul.f32 %v931_v59, %v3495_v11 }
 0x7e5   :  { %vm858_vm8 = vmor %vm856_vm7, %vm857_vm6 }
 0x7e6   :  { %v853_v63 = vsub.f32 1.0, %v852_v62 }
 0x7e8   :  { %v854_v1 = vmul.f32 %v2945_v61, %v853_v63 }
 0x7ea   :  { %v855_v2 = vadd.f32 %v2945_v61, %v854_v1 }
 0x7ec   :  { %v859_v5 = vsel %vm858_vm8, %v2945_v61, %v855_v2 }
 0x7ed   :  { %v864_v12 = vsel %vm861_vm9, %v863_v7, %v859_v5 }
 0x7ee   :  { %v877_v36 = vsub.f32 1.0, %v864_v12 }
 0x820   :  { %v935_v60 = vpop.permute.xlu2 %934 }
 0x821   :  { %v937_v25 = vmul.f32 %v935_v60, %v931_v59  ;;  %v959_v60 = vld [vmem:[#allocation2 + $0x8] sm:$0x3] }
 0x823   :  { %939 = vrot.lane.b32.xlu1 %v937_v25, %s3179_s26 }
 0x840   :  { %v868_v8 = vpop.permute.xlu0 %867 }
 0x841   :  { %v870_v14 = vmul.f32 %v868_v8, %v864_v12 }
 0x843   :  { %872 = vrot.lane.b32.xlu2 %v870_v14, %s3179_s26 }
 0x895   :  { %v940_v15 = vpop.permute.xlu1 %939 }
 0x896   :  { %v942_v22 = vadd.f32 %v940_v15, %v892_v40  ;;  %v883_v40 = vmul.f32 %v864_v12, %v3503_v26 }
 0x898   :  { %2946 = vtanh.f32 %v942_v22 }
 0x89d   :  { %v873_v27 = vpop.permute.xlu2 %872 }
 0x89e   :  { %v2947_v29 = vpop.eup %2946  ;;  %v875_v23 = vadd.f32 %v873_v27, %v825_v47 }
 0x89f   :  { %946 = vrot.lane.b32.xlu0 %v2947_v29, %s3190_s13 }
 0x8a0   :  { %2948 = vtanh.f32 %v875_v23 }
 0x8a6   :  { %v2949_v31 = vpop.eup %2948 }
 0x8a7   :  { %879 = vrot.lane.b32.xlu1 %v2949_v31, %s3190_s13 }
 0x8af   :  { %348 = vrot.lane.b32.xlu1 %v3410_v20, %s3189_s9 }
 0x911   :  { %v947_v30 = vpop.permute.xlu0 %946 }
 0x912   :  { %v949_v35 = vmul.f32 %v947_v30, %v944_v33 }
 0x914   :  { %v3527_v0 = vadd.f32 %v950_v34, %v949_v35 }
 0x916   :  { %v1027_v6 = vpack.c.bf16 %v3527_v0, %v3527_v0 }
 0x918   :  { %1029 = vrot.lane.b32.xlu2 %v1027_v6, %s3190_s13 }
 0x919   :  { %v880_v38 = vpop.permute.xlu1 %879 }
 0x91a   :  { %v882_v43 = vmul.f32 %v880_v38, %v877_v36 }
 0x91c   :  { %v3533_v44 = vadd.f32 %v883_v40, %v882_v43 }
 0x91e   :  { %v960_v20 = vpack.c.bf16 %v3533_v44, %v3533_v44 }
 0x920   :  { %350 = vrot.lane.b32.xlu2 %v3412_v21, %s3189_s9  ;;  %962 = vrot.lane.b32.xlu0 %v960_v20, %s3190_s13 }
 0x921   :  { %v349_v13 = vpop.permute.xlu1 %348 }
 0x972   :  { %v1030_v45 = vpop.permute.xlu2 %1029 }
 0x973   :  { %2513 = vmatmul.msk.bf16.vlgmr.msra.gmra.mxu3 %vm240_vm1, %v1030_v45 }
 0x97a   :  { %v351_v28 = vpop.permute.xlu2 %350 }
 0x97b   :  { %v371_v46 = vsel %vm240_vm1, %v349_v13, %v351_v28 }
 0x97c   :  { %387 = vst.msk [vmem:[#allocation3 + $0x6] sm:$0x3] %vm302_vm5, %v371_v46 }
 0x983   :  { %v1026_v53 = vld [vmem:[#allocation3 + $0x6] sm:$0x3] }
 0x992   :  { %v963_v47 = vpop.permute.xlu0 %962 }
 0x993   :  { %2511 = vmatmul.msk.bf16.vlgmr.msra.gmra.mxu2 %vm240_vm1, %v963_v47 }
 0x9f6   :  { %v1043_v48 = vpop.f32.mrf.mxu3 }
 0x9f7   :  { %v1044_v49 = vadd.f32 %v3365_v39, %v1043_v48 }
 0x9f9   :  { %1068 = vrot.lane.b32.xlu0 %v1044_v49, %s3179_s26  ;;  %v1047_v54 = vadd.f32 %v1044_v49, %v1026_v53 }
 0x9fb   :  { %v2514_v55 = vmul.f32 -1.442695, %v1047_v54 }
 0x9fd   :  { %2950 = vpow2.f32 %v2514_v55 }
 0x9fe   :  { %v1045_v21 = vpop.f32.mrf.mxu3 }
 0xa03   :  { %v2951_v56 = vpop.eup %2950 }
 0xa04   :  { %v1051_v57 = vadd.f32 1.0, %v2951_v56 }
 0xa06   :  { %2952 = vrcp.f32 %v1051_v57  ;;  %vm1057_vm11 = vweird.f32 %v1051_v57  ;;  %v1061_v1 = vand.u32 2147483647, %v1051_v57 }
 0xa08   :  { %vm1062_vm13 = vcmp.eq.f32.partialorder %v1061_v1, 8.507059e+37 }
 0xa0c   :  { %v2953_v24 = vpop.eup %2952 }
 0xa0d   :  { %v1053_v59 = vmul.f32 %v2953_v24, %v1051_v57  ;;  %vm1058_vm10 = vweird.f32 %v2953_v24 }
 0xa0e   :  { %vm1059_vm12 = vmor %vm1057_vm11, %vm1058_vm10 }
 0xa0f   :  { %v1054_v25 = vsub.f32 1.0, %v1053_v59  ;;  %v3575_v59 = vld [vmem:[%s3989_s4 + $0x1] ss:$0 sm:$0xff] }
 0xa11   :  { %v1055_v62 = vmul.f32 %v2953_v24, %v1054_v25 }
 0xa13   :  { %v1056_v63 = vadd.f32 %v2953_v24, %v1055_v62 }
 0xa15   :  { %v1060_v3 = vsel %vm1059_vm12, %v2953_v24, %v1056_v63 }
 0xa16   :  { %v976_v50 = vpop.f32.mrf.mxu2 }
 0xa17   :  { %v977_v51 = vadd.f32 %v3375_v42, %v976_v50  ;;  %v1063_v42 = vand.u32 2147483648, %v1051_v57 }
 0xa19   :  { %1001 = vrot.lane.b32.xlu1 %v977_v51, %s3179_s26  ;;  %v980_v39 = vadd.f32 %v977_v51, %v959_v60  ;;  %v1064_v4 = vor.u32 1.1754944e-38, %v1063_v42 }
 0xa1b   :  { %v2512_v61 = vmul.f32 -1.442695, %v980_v39  ;;  %v1065_v8 = vsel %vm1062_vm13, %v1064_v4, %v1060_v3  ;;  %v1093_v3 = vld [vmem:[#allocation2 + $0xa] sm:$0x3] }
 0xa1c   :  { %v1078_v13 = vsub.f32 1.0, %v1065_v8  ;;  %v1084_v46 = vmul.f32 %v1065_v8, %v3527_v0 }
 0xa1d   :  { %2954 = vpow2.f32 %v2512_v61  ;;  %v3582_v61 = vld [vmem:[%s3989_s4] ss:$0 sm:$0xff]  ;;  %s3193_s4 = smov [#allocation17]  }
 0xa1e   :  { %v978_v52 = vpop.f32.mrf.mxu2 }
 0xa23   :  { %v2955_v2 = vpop.eup %2954 }
 0xa24   :  { %v984_v5 = vadd.f32 1.0, %v2955_v2 }
 0xa26   :  { %2956 = vrcp.f32 %v984_v5  ;;  %v996_v23 = vand.u32 2147483648, %v984_v5  ;;  %vm990_vm15 = vweird.f32 %v984_v5  ;;  %v994_v31 = vand.u32 2147483647, %v984_v5 }
 0xa28   :  { %v997_v30 = vor.u32 1.1754944e-38, %v996_v23  ;;  %vm995_vm2 = vcmp.eq.f32.partialorder %v994_v31, 8.507059e+37 }
 0xa2c   :  { %v2957_v14 = vpop.eup %2956 }
 0xa2d   :  { %v986_v15 = vmul.f32 %v2957_v14, %v984_v5  ;;  %vm991_vm14 = vweird.f32 %v2957_v14 }
 0xa2e   :  { %vm992_vm0 = vmor %vm990_vm15, %vm991_vm14 }
 0xa2f   :  { %v987_v22 = vsub.f32 1.0, %v986_v15 }
 0xa31   :  { %v988_v27 = vmul.f32 %v2957_v14, %v987_v22 }
 0xa33   :  { %v989_v29 = vadd.f32 %v2957_v14, %v988_v27 }
 0xa35   :  { %v993_v33 = vsel %vm992_vm0, %v2957_v14, %v989_v29 }
 0xa36   :  { %v998_v34 = vsel %vm995_vm2, %v997_v30, %v993_v33 }
 0xa37   :  { %v1011_v21 = vsub.f32 1.0, %v998_v34  ;;  %v1017_v51 = vmul.f32 %v998_v34, %v3533_v44 }
 0xa6b   :  { %v1069_v7 = vpop.permute.xlu0 %1068 }
 0xa6c   :  { %v1071_v12 = vmul.f32 %v1069_v7, %v1065_v8 }
 0xa6e   :  { %1073 = vrot.lane.b32.xlu2 %v1071_v12, %s3179_s26 }
 0xa8b   :  { %v1002_v35 = vpop.permute.xlu1 %1001 }
 0xa8c   :  { %v1004_v6 = vmul.f32 %v1002_v35, %v998_v34 }
 0xa8e   :  { %1006 = vrot.lane.b32.xlu0 %v1004_v6, %s3179_s26 }
 0xac8   :  { %v1074_v36 = vpop.permute.xlu2 %1073 }
 0xac9   :  { %v1076_v38 = vadd.f32 %v1074_v36, %v1026_v53 }
 0xacb   :  { %2958 = vtanh.f32 %v1076_v38 }
 0xad1   :  { %v2959_v40 = vpop.eup %2958 }
 0xad2   :  { %1080 = vrot.lane.b32.xlu1 %v2959_v40, %s3190_s13 }
 0xb00   :  { %v1007_v43 = vpop.permute.xlu0 %1006 }
 0xb01   :  { %v1009_v20 = vadd.f32 %v1007_v43, %v959_v60 }
 0xb03   :  { %2960 = vtanh.f32 %v1009_v20 }
 0xb09   :  { %v2961_v45 = vpop.eup %2960 }
 0xb0a   :  { %1013 = vrot.lane.b32.xlu2 %v2961_v45, %s3190_s13 }
 0xb12   :  { %344 = vrot.lane.b32.xlu2 %v3406_v18, %s3189_s9 }
 0xb44   :  { %v1081_v28 = vpop.permute.xlu1 %1080 }
 0xb45   :  { %v1083_v47 = vmul.f32 %v1081_v28, %v1078_v13 }
 0xb47   :  { %v3555_v48 = vadd.f32 %v1084_v46, %v1083_v47 }
 0xb49   :  { %v1161_v49 = vpack.c.bf16 %v3555_v48, %v3555_v48 }
 0xb4b   :  { %1163 = vrot.lane.b32.xlu0 %v1161_v49, %s3190_s13 }
 0xb53   :  { %346 = vrot.lane.b32.xlu0 %v3408_v19, %s3189_s9 }
 0xb64   :  { %v1014_v50 = vpop.permute.xlu2 %1013 }
 0xb65   :  { %v1016_v18 = vmul.f32 %v1014_v50, %v1011_v21 }
 0xb67   :  { %v3563_v52 = vadd.f32 %v1017_v51, %v1016_v18 }
 0xb69   :  { %v1094_v53 = vpack.c.bf16 %v3563_v52, %v3563_v52 }
 0xb6b   :  { %1096 = vrot.lane.b32.xlu1 %v1094_v53, %s3190_s13 }
 0xb6c   :  { %v345_v55 = vpop.permute.xlu2 %344 }
 0xbbd   :  { %v1164_v54 = vpop.permute.xlu0 %1163 }
 0xbbe   :  { %2517 = vmatmul.msk.bf16.vlgmr.msrb.gmra.mxu1 %vm240_vm1, %v1164_v54 }
 0xbc5   :  { %v347_v56 = vpop.permute.xlu0 %346 }
 0xbc6   :  { %v370_v57 = vsel %vm240_vm1, %v345_v55, %v347_v56 }
 0xbc7   :  { %386 = vst.msk [vmem:[#allocation3 + $0x4] sm:$0x3] %vm302_vm5, %v370_v57 }
 0xbce   :  { %v1160_v42 = vld [vmem:[#allocation3 + $0x4] sm:$0x3] }
 0xbdd   :  { %v1097_v19 = vpop.permute.xlu1 %1096 }
 0xbde   :  { %2515 = vmatmul.msk.bf16.vlgmr.msrb.gmra.mxu0 %vm240_vm1, %v1097_v19 }
 0xc3b   :  { %v1177_v24 = vpop.f32.mrf.mxu1 }
 0xc3c   :  { %v1178_v60 = vadd.f32 %v3575_v59, %v1177_v24 }
 0xc3e   :  { %1202 = vrot.lane.b32.xlu1 %v1178_v60, %s3179_s26  ;;  %v1181_v1 = vadd.f32 %v1178_v60, %v1160_v42 }
 0xc40   :  { %v2518_v2 = vmul.f32 -1.442695, %v1181_v1 }
 0xc42   :  { %2962 = vpow2.f32 %v2518_v2 }
 0xc43   :  { %v1179_v39 = vpop.f32.mrf.mxu1 }
 0xc48   :  { %v2963_v7 = vpop.eup %2962 }
 0xc49   :  { %v1185_v8 = vadd.f32 1.0, %v2963_v7 }
 0xc4b   :  { %v1197_v34 = vand.u32 2147483648, %v1185_v8  ;;  %vm1191_vm4 = vweird.f32 %v1185_v8  ;;  %v1195_v35 = vand.u32 2147483647, %v1185_v8 }
 0xc4d   :  { %v1198_v38 = vor.u32 1.1754944e-38, %v1197_v34  ;;  %vm1196_vm7 = vcmp.eq.f32.partialorder %v1195_v35, 8.507059e+37 }
 0xc5b   :  { %v1110_v25 = vpop.f32.mrf.mxu0 }
 0xc5c   :  { %v1111_v62 = vadd.f32 %v3582_v61, %v1110_v25 }
 0xc5e   :  { %1135 = vrot.lane.b32.xlu2 %v1111_v62, %s3179_s26  ;;  %v1114_v4 = vadd.f32 %v1111_v62, %v1093_v3 }
 0xc60   :  { %v2516_v5 = vmul.f32 -1.442695, %v1114_v4 }
 0xc62   :  { %2964 = vpow2.f32 %v2516_v5 }
 0xc63   :  { %v1112_v63 = vpop.f32.mrf.mxu0  ;;  %2966 = vrcp.f32 %v1185_v8 }
 0xc68   :  { %v2965_v12 = vpop.eup %2964 }
 0xc69   :  { %v1118_v14 = vadd.f32 1.0, %v2965_v12  ;;  %v2967_v15 = vpop.eup %2966 }
 0xc6a   :  { %v1187_v22 = vmul.f32 %v2967_v15, %v1185_v8  ;;  %vm1192_vm3 = vweird.f32 %v2967_v15 }
 0xc6b   :  { %2968 = vrcp.f32 %v1118_v14  ;;  %vm1193_vm6 = vmor %vm1191_vm4, %vm1192_vm3  ;;  %v1130_v13 = vand.u32 2147483648, %v1118_v14  ;;  %vm1124_vm9 = vweird.f32 %v1118_v14  ;;  %v1128_v28 = vand.u32 2147483647, %v1118_v14 }
 0xc6c   :  { %v1188_v27 = vsub.f32 1.0, %v1187_v22 }
 0xc6d   :  { %v1131_v47 = vor.u32 1.1754944e-38, %v1130_v13  ;;  %vm1129_vm11 = vcmp.eq.f32.partialorder %v1128_v28, 8.507059e+37 }
 0xc6e   :  { %v1189_v23 = vmul.f32 %v2967_v15, %v1188_v27 }
 0xc70   :  { %v1190_v33 = vadd.f32 %v2967_v15, %v1189_v23 }
 0xc71   :  { %v2969_v29 = vpop.eup %2968 }
 0xc72   :  { %v1120_v31 = vmul.f32 %v2969_v29, %v1118_v14  ;;  %v1194_v6 = vsel %vm1193_vm6, %v2967_v15, %v1190_v33  ;;  %vm1125_vm8 = vweird.f32 %v2969_v29 }
 0xc73   :  { %v1199_v43 = vsel %vm1196_vm7, %v1198_v38, %v1194_v6  ;;  %vm1126_vm10 = vmor %vm1124_vm9, %vm1125_vm8  ;;  %v1227_v6 = vld [vmem:[#allocation2 + $0xc] sm:$0x3] }
 0xc74   :  { %v1121_v30 = vsub.f32 1.0, %v1120_v31  ;;  %v1212_v57 = vsub.f32 1.0, %v1199_v43  ;;  %v1218_v24 = vmul.f32 %v1199_v43, %v3555_v48 }
 0xc76   :  { %v1122_v36 = vmul.f32 %v2969_v29, %v1121_v30 }
 0xc78   :  { %v1123_v45 = vadd.f32 %v2969_v29, %v1122_v36 }
 0xc7a   :  { %v1127_v46 = vsel %vm1126_vm10, %v2969_v29, %v1123_v45 }
 0xc7b   :  { %v1132_v49 = vsel %vm1129_vm11, %v1131_v47, %v1127_v46 }
 0xc7c   :  { %v1145_v62 = vsub.f32 1.0, %v1132_v49 }
 0xcb0   :  { %v1203_v40 = vpop.permute.xlu1 %1202 }
 0xcb1   :  { %v1205_v20 = vmul.f32 %v1203_v40, %v1199_v43 }
 0xcb3   :  { %1207 = vrot.lane.b32.xlu0 %v1205_v20, %s3179_s26 }
 0xcb8   :  { %v1136_v21 = vpop.permute.xlu2 %1135 }
 0xcb9   :  { %v1138_v50 = vmul.f32 %v1136_v21, %v1132_v49 }
 0xcbb   :  { %1140 = vrot.lane.b32.xlu1 %v1138_v50, %s3179_s26 }
 0xd25   :  { %v1208_v51 = vpop.permute.xlu0 %1207 }
 0xd26   :  { %v1210_v18 = vadd.f32 %v1208_v51, %v1160_v42  ;;  %v1151_v42 = vmul.f32 %v1132_v49, %v3563_v52 }
 0xd28   :  { %2970 = vtanh.f32 %v1210_v18 }
 0xd2d   :  { %v1141_v53 = vpop.permute.xlu1 %1140 }
 0xd2e   :  { %v2971_v54 = vpop.eup %2970  ;;  %v1143_v55 = vadd.f32 %v1141_v53, %v1093_v3 }
 0xd2f   :  { %1214 = vrot.lane.b32.xlu2 %v2971_v54, %s3190_s13 }
 0xd30   :  { %2972 = vtanh.f32 %v1143_v55 }
 0xd36   :  { %v2973_v56 = vpop.eup %2972 }
 0xd37   :  { %1147 = vrot.lane.b32.xlu0 %v2973_v56, %s3190_s13 }
 0xd3f   :  { %340 = vrot.lane.b32.xlu0 %v3400_v16, %s3189_s9 }
 0xd89   :  { %v1215_v19 = vpop.permute.xlu2 %1214 }
 0xd8a   :  { %v1217_v60 = vmul.f32 %v1215_v19, %v1212_v57 }
 0xd8c   :  { %v3593_v39 = vadd.f32 %v1218_v24, %v1217_v60 }
 0xd8e   :  { %v1295_v25 = vpack.c.bf16 %v3593_v39, %v3593_v39 }
 0xd90   :  { %1297 = vrot.lane.b32.xlu1 %v1295_v25, %s3190_s13 }
 0xd98   :  { %342 = vrot.lane.b32.xlu1 %v3402_v17, %s3189_s9 }
 0xda9   :  { %v1148_v63 = vpop.permute.xlu0 %1147 }
 0xdaa   :  { %v1150_v16 = vmul.f32 %v1148_v63, %v1145_v62 }
 0xdac   :  { %v3601_v1 = vadd.f32 %v1151_v42, %v1150_v16 }
 0xdae   :  { %v1228_v2 = vpack.c.bf16 %v3601_v1, %v3601_v1 }
 0xdb0   :  { %1230 = vrot.lane.b32.xlu2 %v1228_v2, %s3190_s13 }
 0xdb1   :  { %v341_v4 = vpop.permute.xlu0 %340 }
 0xe02   :  { %v1298_v3 = vpop.permute.xlu1 %1297 }
 0xe03   :  { %2521 = vmatmul.msk.bf16.vlgmr.msrb.gmra.mxu3 %vm240_vm1, %v1298_v3 }
 0xe0a   :  { %v343_v5 = vpop.permute.xlu1 %342  ;;  %v1231_v7 = vpop.permute.xlu2 %1230 }
 0xe0b   :  { %v369_v17 = vsel %vm240_vm1, %v341_v4, %v343_v5  ;;  %2519 = vmatmul.msk.bf16.vlgmr.msrb.gmra.mxu2 %vm240_vm1, %v1231_v7 }
 0xe0c   :  { %385 = vst.msk [vmem:[#allocation3 + $0x2] sm:$0x3] %vm302_vm5, %v369_v17 }
 0xe13   :  { %v1294_v29 = vld [vmem:[#allocation3 + $0x2] sm:$0x3] }
 0xe86   :  { %v1311_v8 = vpop.f32.mrf.mxu3 }
 0xe87   :  { %v1312_v12 = vadd.f32 %v3575_v59, %v1311_v8 }
 0xe89   :  { %1336 = vrot.lane.b32.xlu2 %v1312_v12, %s3179_s26  ;;  %v1315_v23 = vadd.f32 %v1312_v12, %v1294_v29 }
 0xe8b   :  { %v2522_v31 = vmul.f32 -1.442695, %v1315_v23 }
 0xe8d   :  { %2974 = vpow2.f32 %v2522_v31 }
 0xe8e   :  { %v1244_v14 = vpop.f32.mrf.mxu2  ;;  %v1313_v15 = vpop.f32.mrf.mxu3 }
 0xe8f   :  { %v1245_v22 = vadd.f32 %v3582_v61, %v1244_v14 }
 0xe91   :  { %1269 = vrot.lane.b32.xlu0 %v1245_v22, %s3179_s26  ;;  %v1248_v36 = vadd.f32 %v1245_v22, %v1227_v6 }
 0xe93   :  { %v2975_v33 = vpop.eup %2974  ;;  %v2520_v40 = vmul.f32 -1.442695, %v1248_v36 }
 0xe94   :  { %v1319_v30 = vadd.f32 1.0, %v2975_v33 }
 0xe96   :  { %v1246_v27 = vpop.f32.mrf.mxu2  ;;  %2976 = vrcp.f32 %v1319_v30  ;;  %v1331_v45 = vand.u32 2147483648, %v1319_v30  ;;  %vm1325_vm13 = vweird.f32 %v1319_v30  ;;  %v1329_v13 = vand.u32 2147483647, %v1319_v30 }
 0xe97   :  { %2978 = vpow2.f32 %v2520_v40 }
 0xe98   :  { %v1332_v47 = vor.u32 1.1754944e-38, %v1331_v45  ;;  %vm1330_vm15 = vcmp.eq.f32.partialorder %v1329_v13, 8.507059e+37 }
 0xe9c   :  { %v2977_v34 = vpop.eup %2976 }
 0xe9d   :  { %v1321_v35 = vmul.f32 %v2977_v34, %v1319_v30  ;;  %vm1326_vm12 = vweird.f32 %v2977_v34  ;;  %v2979_v28 = vpop.eup %2978 }
 0xe9e   :  { %vm1327_vm14 = vmor %vm1325_vm13, %vm1326_vm12  ;;  %v1252_v49 = vadd.f32 1.0, %v2979_v28  ;;  %vm479_vm13 = vcmask 254976  }
 0xe9f   :  { %v1322_v38 = vsub.f32 1.0, %v1321_v35 }
 0xea0   :  { %2980 = vrcp.f32 %v1252_v49  ;;  %v1264_v57 = vand.u32 2147483648, %v1252_v49  ;;  %vm1258_vm2 = vweird.f32 %v1252_v49  ;;  %v1262_v19 = vand.u32 2147483647, %v1252_v49 }
 0xea1   :  { %v1323_v43 = vmul.f32 %v2977_v34, %v1322_v38 }
 0xea2   :  { %v1265_v60 = vor.u32 1.1754944e-38, %v1264_v57  ;;  %vm1263_vm4 = vcmp.eq.f32.partialorder %v1262_v19, 8.507059e+37 }
 0xea3   :  { %v1324_v20 = vadd.f32 %v2977_v34, %v1323_v43 }
 0xea5   :  { %v1328_v46 = vsel %vm1327_vm14, %v2977_v34, %v1324_v20  ;;  %vm1601_vm14 = vcmask 523264  }
 0xea6   :  { %v1333_v21 = vsel %vm1330_vm15, %v1332_v47, %v1328_v46  ;;  %v2981_v18 = vpop.eup %2980  ;;  %vm1831_vm15 = vcmask 1040384  }
 0xea7   :  { %v1254_v53 = vmul.f32 %v2981_v18, %v1252_v49  ;;  %vm1259_vm0 = vweird.f32 %v2981_v18  ;;  %v1346_v7 = vsub.f32 1.0, %v1333_v21  ;;  %v1352_v8 = vmul.f32 %v1333_v21, %v3593_v39 }
 0xea8   :  { %vm1260_vm3 = vmor %vm1258_vm2, %vm1259_vm0  ;;  %vm1762_vm0 = vcmask 123904   ;;  %vm2038_vm2 = vcmask 130048  }
 0xea9   :  { %v1255_v54 = vsub.f32 1.0, %v1254_v53 }
 0xeab   :  { %v1256_v55 = vmul.f32 %v2981_v18, %v1255_v54 }
 0xead   :  { %v1257_v56 = vadd.f32 %v2981_v18, %v1256_v55 }
 0xeaf   :  { %v1261_v24 = vsel %vm1260_vm3, %v2981_v18, %v1257_v56 }
 0xeb0   :  { %v1266_v62 = vsel %vm1263_vm4, %v1265_v60, %v1261_v24 }
 0xeb1   :  { %v1279_v22 = vsub.f32 1.0, %v1266_v62 }
 0xee3   :  { %v1337_v50 = vpop.permute.xlu2 %1336 }
 0xee4   :  { %v1339_v51 = vmul.f32 %v1337_v50, %v1333_v21  ;;  %v1361_v50 = vld [vmem:[#allocation2 + $0xe] sm:$0x3] }
 0xee6   :  { %1341 = vrot.lane.b32.xlu1 %v1339_v51, %s3179_s26 }
 0xf03   :  { %v1270_v25 = vpop.permute.xlu0 %1269 }
 0xf04   :  { %v1272_v63 = vmul.f32 %v1270_v25, %v1266_v62 }
 0xf06   :  { %1274 = vrot.lane.b32.xlu2 %v1272_v63, %s3179_s26 }
 0xf58   :  { %v1342_v42 = vpop.permute.xlu1 %1341 }
 0xf59   :  { %v1344_v16 = vadd.f32 %v1342_v42, %v1294_v29  ;;  %v1285_v29 = vmul.f32 %v1266_v62, %v3601_v1 }
 0xf5b   :  { %2982 = vtanh.f32 %v1344_v16 }
 0xf60   :  { %v1275_v2 = vpop.permute.xlu2 %1274 }
 0xf61   :  { %v2983_v3 = vpop.eup %2982  ;;  %v1277_v4 = vadd.f32 %v1275_v2, %v1227_v6 }
 0xf62   :  { %1348 = vrot.lane.b32.xlu0 %v2983_v3, %s3190_s13 }
 0xf63   :  { %2984 = vtanh.f32 %v1277_v4 }
 0xf69   :  { %v2985_v5 = vpop.eup %2984 }
 0xf6a   :  { %1281 = vrot.lane.b32.xlu1 %v2985_v5, %s3190_s13 }
 0xf72   :  { %336 = vrot.lane.b32.xlu1 %v3393_v9, %s3189_s9 }
 0xfd4   :  { %v1349_v17 = vpop.permute.xlu0 %1348 }
 0xfd5   :  { %v1351_v12 = vmul.f32 %v1349_v17, %v1346_v7 }
 0xfd7   :  { %v3621_v14 = vadd.f32 %v1352_v8, %v1351_v12 }
 0xfd9   :  { %v1428_v15 = vpack.c.bf16 %v3621_v14, %v3621_v14 }
 0xfdb   :  { %1430 = vrot.lane.b32.xlu2 %v1428_v15, %s3190_s13 }
 0xfdc   :  { %v1282_v27 = vpop.permute.xlu1 %1281 }
 0xfdd   :  { %v1284_v23 = vmul.f32 %v1282_v27, %v1279_v22 }
 0xfdf   :  { %v3627_v31 = vadd.f32 %v1285_v29, %v1284_v23 }
 0xfe1   :  { %v1362_v9 = vpack.c.bf16 %v3627_v31, %v3627_v31 }
 0xfe3   :  { %338 = vrot.lane.b32.xlu2 %v3395_v10, %s3189_s9  ;;  %1364 = vrot.lane.b32.xlu0 %v1362_v9, %s3190_s13 }
 0xfe4   :  { %v337_v30 = vpop.permute.xlu1 %336 }
0x1035   :  { %v1431_v33 = vpop.permute.xlu2 %1430 }
0x1036   :  { %2525 = vmatmul.msk.bf16.vlgmr.msra.gmra.mxu1 %vm240_vm1, %v1431_v33 }
0x103d   :  { %v339_v34 = vpop.permute.xlu2 %338 }
0x103e   :  { %v368_v35 = vsel %vm240_vm1, %v337_v30, %v339_v34 }
0x103f   :  { %384 = vst.msk [vmem:[#allocation3] sm:$0x3] %vm302_vm5, %v368_v35 }
0x1046   :  { %v1427_v45 = vld [vmem:[#allocation3] sm:$0x3] }
0x1055   :  { %v1365_v6 = vpop.permute.xlu0 %1364 }
0x1056   :  { %2523 = vmatmul.msk.bf16.vlgmr.msra.gmra.mxu0 %vm240_vm1, %v1365_v6 }
0x10b3   :  { %v1444_v36 = vpop.f32.mrf.mxu1 }
0x10b4   :  { %v1445_v38 = vadd.f32 %v3575_v59, %v1444_v36 }
0x10b6   :  { %1469 = vrot.lane.b32.xlu0 %v1445_v38, %s3179_s26  ;;  %v1448_v13 = vadd.f32 %v1445_v38, %v1427_v45 }
0x10b8   :  { %v2526_v28 = vmul.f32 -1.442695, %v1448_v13 }
0x10ba   :  { %2986 = vpow2.f32 %v2526_v28 }
0x10bb   :  { %v1446_v10 = vpop.f32.mrf.mxu1 }
0x10c0   :  { %v2987_v46 = vpop.eup %2986 }
0x10c1   :  { %v1452_v47 = vadd.f32 1.0, %v2987_v46 }
0x10c3   :  { %2988 = vrcp.f32 %v1452_v47  ;;  %vm1458_vm6 = vweird.f32 %v1452_v47  ;;  %v1462_v55 = vand.u32 2147483647, %v1452_v47 }
0x10c5   :  { %vm1463_vm8 = vcmp.eq.f32.partialorder %v1462_v55, 8.507059e+37 }
0x10c9   :  { %v2989_v49 = vpop.eup %2988 }
0x10ca   :  { %v1454_v21 = vmul.f32 %v2989_v49, %v1452_v47  ;;  %vm1459_vm5 = vweird.f32 %v2989_v49 }
0x10cb   :  { %vm1460_vm7 = vmor %vm1458_vm6, %vm1459_vm5 }
0x10cc   :  { %v1455_v51 = vsub.f32 1.0, %v1454_v21 }
0x10ce   :  { %v1456_v53 = vmul.f32 %v2989_v49, %v1455_v51 }
0x10d0   :  { %v1457_v54 = vadd.f32 %v2989_v49, %v1456_v53 }
0x10d2   :  { %v1461_v57 = vsel %vm1460_vm7, %v2989_v49, %v1457_v54 }
0x10d3   :  { %v1378_v40 = vpop.f32.mrf.mxu0 }
0x10d4   :  { %v1379_v43 = vadd.f32 %v3582_v61, %v1378_v40  ;;  %v1464_v61 = vand.u32 2147483648, %v1452_v47 }
0x10d6   :  { %1403 = vrot.lane.b32.xlu1 %v1379_v43, %s3179_s26  ;;  %v1382_v59 = vadd.f32 %v1379_v43, %v1361_v50  ;;  %v1465_v19 = vor.u32 1.1754944e-38, %v1464_v61 }
0x10d8   :  { %v2524_v18 = vmul.f32 -1.442695, %v1382_v59  ;;  %v1466_v25 = vsel %vm1463_vm8, %v1465_v19, %v1461_v57 }
0x10d9   :  { %v1485_v30 = vmul.f32 %v1466_v25, %v3621_v14 }
0x10da   :  { %2990 = vpow2.f32 %v2524_v18 }
0x10db   :  { %v1380_v20 = vpop.f32.mrf.mxu0 }
0x10e0   :  { %v2991_v56 = vpop.eup %2990 }
0x10e1   :  { %v1386_v24 = vadd.f32 1.0, %v2991_v56 }
0x10e3   :  { %2992 = vrcp.f32 %v1386_v24  ;;  %v1398_v4 = vand.u32 2147483648, %v1386_v24  ;;  %vm1392_vm10 = vweird.f32 %v1386_v24  ;;  %v1396_v5 = vand.u32 2147483647, %v1386_v24 }
0x10e5   :  { %v1399_v17 = vor.u32 1.1754944e-38, %v1398_v4  ;;  %vm1397_vm12 = vcmp.eq.f32.partialorder %v1396_v5, 8.507059e+37 }
0x10e9   :  { %v2993_v63 = vpop.eup %2992 }
0x10ea   :  { %v1388_v42 = vmul.f32 %v2993_v63, %v1386_v24  ;;  %vm1393_vm9 = vweird.f32 %v2993_v63 }
0x10eb   :  { %vm1394_vm11 = vmor %vm1392_vm10, %vm1393_vm9 }
0x10ec   :  { %v1389_v16 = vsub.f32 1.0, %v1388_v42 }
0x10ee   :  { %v1390_v2 = vmul.f32 %v2993_v63, %v1389_v16 }
0x10f0   :  { %v1391_v3 = vadd.f32 %v2993_v63, %v1390_v2 }
0x10f2   :  { %v1395_v7 = vsel %vm1394_vm11, %v2993_v63, %v1391_v3  ;;  %v3191_v63 = vmov 0.0  }
0x10f3   :  { %v1400_v8 = vsel %vm1397_vm12, %v1399_v17, %v1395_v7 }
0x1128   :  { %v1470_v60 = vpop.permute.xlu0 %1469 }
0x1129   :  { %v1472_v62 = vmul.f32 %v1470_v60, %v1466_v25 }
0x112b   :  { %1474 = vrot.lane.b32.xlu2 %v1472_v62, %s3179_s26 }
0x1148   :  { %v1404_v12 = vpop.permute.xlu1 %1403 }
0x1149   :  { %v1406_v15 = vmul.f32 %v1404_v12, %v1400_v8 }
0x114b   :  { %1408 = vrot.lane.b32.xlu0 %v1406_v15, %s3179_s26 }
0x1153   :  { %551 = vrot.lane.b32.xlu0 %v3433_v32, %s3190_s13 }
0x115b   :  { %953 = vrot.lane.b32.xlu0 %v3527_v0, %s3190_s13 }
0x1163   :  { %1355 = vrot.lane.b32.xlu0 %v3621_v14, %s3190_s13  ;;  %v1419_v14 = vmul.f32 %v1400_v8, %v3627_v31 }
0x116b   :  { %618 = vrot.lane.b32.xlu0 %v3471_v58, %s3190_s13 }
0x1173   :  { %1020 = vrot.lane.b32.xlu0 %v3563_v52, %s3190_s13 }
0x1185   :  { %v1475_v22 = vpop.permute.xlu2 %1474 }
0x1186   :  { %v1477_v27 = vadd.f32 %v1475_v22, %v1427_v45 }
0x1188   :  { %2994 = vtanh.f32 %v1477_v27 }
0x118e   :  { %v2995_v29 = vpop.eup %2994 }
0x118f   :  { %1481 = vrot.lane.b32.xlu1 %v2995_v29, %s3190_s13 }
0x1197   :  { %685 = vrot.lane.b32.xlu1 %v3463_v41, %s3190_s13 }
0x119f   :  { %1087 = vrot.lane.b32.xlu1 %v3555_v48, %s3190_s13 }
0x11bd   :  { %v1409_v32 = vpop.permute.xlu0 %1408 }
0x11be   :  { %v1411_v0 = vadd.f32 %v1409_v32, %v1361_v50 }
0x11c0   :  { %2996 = vtanh.f32 %v1411_v0 }
0x11c5   :  { %v552_v58 = vpop.permute.xlu0 %551 }
0x11c6   :  { %v2997_v23 = vpop.eup %2996  ;;  %555 = vst.msk [vmem:[#allocation5 + $0xe] sm:$0x3] %vm479_vm13, %v552_v58 }
0x11c7   :  { %1415 = vrot.lane.b32.xlu2 %v2997_v23, %s3190_s13 }
0x11cd   :  { %v954_v52 = vpop.permute.xlu0 %953  ;;  %v1507_v53 = vld [vmem:[#allocation5 + $0xe] sm:$0x3] }
0x11ce   :  { %957 = vst.msk [vmem:[#allocation5 + $0x8] sm:$0x3] %vm479_vm13, %v954_v52 }
0x11cf   :  { %819 = vrot.lane.b32.xlu2 %v3495_v11, %s3190_s13  ;;  %v1479_v11 = vsub.f32 1.0, %v1466_v25 }
0x11d5   :  { %v1356_v41 = vpop.permute.xlu0 %1355  ;;  %v1504_v43 = vld [vmem:[#allocation5 + $0x8] sm:$0x3] }
0x11d6   :  { %1359 = vst.msk [vmem:[#allocation5 + $0x2] sm:$0x3] %vm479_vm13, %v1356_v41 }
0x11d7   :  { %1221 = vrot.lane.b32.xlu2 %v3593_v39, %s3190_s13 }
0x11dd   :  { %v619_v48 = vpop.permute.xlu0 %618  ;;  %v1501_v50 = vld [vmem:[#allocation5 + $0x2] sm:$0x3] }
0x11de   :  { %622 = vst.msk [vmem:[#allocation4 + $0x2] sm:$0x3] %vm479_vm13, %v619_v48 }
0x11df   :  { %476 = vrot.lane.b32.xlu2 %v3438_v37, %s3190_s13 }
0x11e5   :  { %v1021_v9 = vpop.permute.xlu0 %1020  ;;  %v1493_v27 = vld [vmem:[#allocation4 + $0x2] sm:$0x3] }
0x11e6   :  { %1024 = vst.msk [vmem:[#allocation4 + $0x8] sm:$0x3] %vm479_vm13, %v1021_v9 }
0x11e7   :  { %886 = vrot.lane.b32.xlu2 %v3533_v44, %s3190_s13  ;;  %v1413_v44 = vsub.f32 1.0, %v1400_v8 }
0x11ed   :  { %v1496_v3 = vld [vmem:[#allocation4 + $0x8] sm:$0x3] }
0x11ef   :  { %1288 = vrot.lane.b32.xlu2 %v3627_v31, %s3190_s13 }
0x1201   :  { %v1482_v33 = vpop.permute.xlu1 %1481 }
0x1202   :  { %v1484_v39 = vmul.f32 %v1482_v33, %v1479_v11 }
0x1204   :  { %v1486_v34 = vadd.f32 %v1485_v30, %v1484_v39  ;;  %v2788_v30 = vld [vmem:[#allocation11 + $0x38] sm:$0xff]  ;;  %v2787_v39 = vld [vmem:[#allocation11 + $0x30] sm:$0xff] }
0x1205   :  { %1721 = vmatpush.bf16.msra.mxu2 %v2788_v30 }
0x1206   :  { %1488 = vrot.lane.b32.xlu1 %v1486_v34, %s3190_s13  ;;  %v2786_v34 = vld [vmem:[#allocation11 + $0x28] sm:$0xff] }
0x1209   :  { %v686_v35 = vpop.permute.xlu1 %685  ;;  %1722 = vmatpush.bf16.msra.mxu2 %v2787_v39 }
0x120a   :  { %689 = vst.msk [vmem:[#allocation5 + $0xc] sm:$0x3] %vm479_vm13, %v686_v35 }
0x120d   :  { %1723 = vmatpush.bf16.msra.mxu2 %v2786_v34 }
0x120e   :  { %752 = vrot.lane.b32.xlu1 %v3503_v26, %s3190_s13 }
0x1211   :  { %v1088_v37 = vpop.permute.xlu1 %1087  ;;  %v1506_v51 = vld [vmem:[#allocation5 + $0xc] sm:$0x3] }
0x1212   :  { %1091 = vst.msk [vmem:[#allocation5 + $0x6] sm:$0x3] %vm479_vm13, %v1088_v37  ;;  %v2872_v54 = vpack.i.bf16 %v1507_v53, %v1506_v51  ;;  %v2793_v53 = vld [vmem:[#allocation12 + $0x20] sm:$0xff] }
0x1216   :  { %1154 = vrot.lane.b32.xlu1 %v3601_v1, %s3190_s13 }
0x1219   :  { %v1503_v13 = vld [vmem:[#allocation5 + $0x6] sm:$0x3] }
0x1221   :  { %v1416_v6 = vpop.permute.xlu2 %1415 }
0x1222   :  { %v1418_v36 = vmul.f32 %v1416_v6, %v1413_v44 }
0x1224   :  { %v1420_v38 = vadd.f32 %v1419_v14, %v1418_v36 }
0x1226   :  { %1422 = vrot.lane.b32.xlu0 %v1420_v38, %s3190_s13 }
0x1229   :  { %v820_v10 = vpop.permute.xlu2 %819 }
0x122a   :  { %823 = vst.msk [vmem:[#allocation5 + $0xa] sm:$0x3] %vm479_vm13, %v820_v10 }
0x1231   :  { %v1222_v40 = vpop.permute.xlu2 %1221  ;;  %v1505_v26 = vld [vmem:[#allocation5 + $0xa] sm:$0x3] }
0x1232   :  { %1225 = vst.msk [vmem:[#allocation5 + $0x4] sm:$0x3] %vm479_vm13, %v1222_v40  ;;  %v2862_v20 = vpack.i.bf16 %v1505_v26, %v1504_v43 }
0x1234   :  { %2863 = vrot.lane.b32.xlu0 %v2862_v20, %s3189_s9 }
0x1239   :  { %v477_v1 = vpop.permute.xlu2 %476  ;;  %v1502_v45 = vld [vmem:[#allocation5 + $0x4] sm:$0x3] }
0x123a   :  { %480 = vst.msk [vmem:[#allocation4] sm:$0x3] %vm479_vm13, %v477_v1  ;;  %v2857_v31 = vpack.i.bf16 %v1503_v13, %v1502_v45  ;;  %v2785_v13 = vld [vmem:[#allocation11 + $0x20] sm:$0xff] }
0x123b   :  { %1724 = vmatpush.bf16.msra.mxu2 %v2785_v13 }
0x123c   :  { %2858 = vrot.lane.b32.xlu2 %v2857_v31, %s3189_s9  ;;  %v2784_v31 = vld [vmem:[#allocation11 + $0x18] sm:$0xff] }
0x123f   :  { %1725 = vmatpush.bf16.msra.mxu2 %v2784_v31 }
0x1241   :  { %v887_v28 = vpop.permute.xlu2 %886  ;;  %v1492_v22 = vld [vmem:[#allocation4] sm:$0x3] }
0x1242   :  { %890 = vst.msk [vmem:[#allocation4 + $0x6] sm:$0x3] %vm479_vm13, %v887_v28  ;;  %v2783_v28 = vld [vmem:[#allocation11 + $0x10] sm:$0xff] }
0x1243   :  { %1726 = vmatpush.bf16.msra.mxu2 %v2783_v28 }
0x1249   :  { %v1289_v46 = vpop.permute.xlu2 %1288  ;;  %v1495_v24 = vld [vmem:[#allocation4 + $0x6] sm:$0x3] }
0x124a   :  { %1292 = vst.msk [vmem:[#allocation4 + $0xc] sm:$0x3] %vm479_vm13, %v1289_v46  ;;  %v2782_v46 = vld [vmem:[#allocation11 + $0x8] sm:$0xff] }
0x124b   :  { %1727 = vmatpush.bf16.msra.mxu2 %v2782_v46 }
0x1251   :  { %v1498_v41 = vld [vmem:[#allocation4 + $0xc] sm:$0x3] }
0x1278   :  { %v1489_v47 = vpop.permute.xlu1 %1488 }
0x1279   :  { %1491 = vst.msk [vmem:[#allocation5] sm:$0x3] %vm479_vm13, %v1489_v47  ;;  %v2781_v47 = vld [vmem:[#allocation11] sm:$0xff] }
0x127a   :  { %1728 = vmatpush.bf16.msra.mxu2 %v2781_v47  ;;  %v2900_v47 = vld [vmem:[%s3993_s8] ss:$0 sm:$0xff]  ;;  %s3192_s8 = smov 16  }
0x1280   :  { %v753_v49 = vpop.permute.xlu1 %752  ;;  %v1500_v21 = vld [vmem:[#allocation5] sm:$0x3] }
0x1281   :  { %756 = vst.msk [vmem:[#allocation4 + $0x4] sm:$0x3] %vm479_vm13, %v753_v49  ;;  %v2867_v59 = vpack.i.bf16 %v1501_v50, %v1500_v21  ;;  %v2796_v49 = vld [vmem:[#allocation12 + $0x38] sm:$0xff]  ;;  %v2795_v21 = vld [vmem:[#allocation12 + $0x30] sm:$0xff]  ;;  %v2794_v50 = vld [vmem:[#allocation12 + $0x28] sm:$0xff] }
0x1282   :  { %1967 = vmatpush.bf16.msra.mxu3 %v2796_v49 }
0x1283   :  { %2868 = vrot.lane.b32.xlu1 %v2867_v59, %s3189_s9 }
0x1286   :  { %1968 = vmatpush.bf16.msra.mxu3 %v2795_v21 }
0x1288   :  { %v1155_v18 = vpop.permute.xlu1 %1154  ;;  %v1494_v19 = vld [vmem:[#allocation4 + $0x4] sm:$0x3] }
0x1289   :  { %1158 = vst.msk [vmem:[#allocation4 + $0xa] sm:$0x3] %vm479_vm13, %v1155_v18 }
0x128a   :  { %1969 = vmatpush.bf16.msra.mxu3 %v2794_v50 }
0x128b   :  { %2873 = vrot.lane.b32.xlu1 %v2872_v54, %s3189_s9 }
0x128e   :  { %1970 = vmatpush.bf16.msra.mxu3 %v2793_v53 }
0x1290   :  { %v1497_v4 = vld [vmem:[#allocation4 + $0xa] sm:$0x3] }
0x1296   :  { %v2859_v61 = vpop.permute.xlu2 %2858 }
0x1297   :  { %v2861_v55 = vunpack.i.h.bf16 %v2859_v61  ;;  %v2860_v56 = vunpack.i.l.bf16 %v2859_v61 }
0x1298   :  { %v1423_v57 = vpop.permute.xlu0 %1422 }
0x1299   :  { %1426 = vst.msk [vmem:[#allocation4 + $0xe] sm:$0x3] %vm479_vm13, %v1423_v57  ;;  %v3699_v60 = vsel %vm240_vm1, %v1494_v19, %v2860_v56  ;;  %v3702_v25 = vsel %vm240_vm1, %v1495_v24, %v2861_v55  ;;  %v2792_v57 = vld [vmem:[#allocation12 + $0x18] sm:$0xff] }
0x129a   :  { %v2877_v62 = vpack.i.bf16 %v3702_v25, %v3699_v60  ;;  %v2800_v19 = vld [vmem:[#allocation12 + $0x58] sm:$0xff]  ;;  %1971 = vmatpush.bf16.msra.mxu3 %v2792_v57 }
0x129b   :  { %1985 = vmatpush.bf16.msrb.mxu0 %v2800_v19 }
0x129c   :  { %2878 = vrot.lane.b32.xlu0 %v2877_v62, %s3179_s26 }
0x12a0   :  { %v1499_v48 = vld [vmem:[#allocation4 + $0xe] sm:$0x3] }
0x12a4   :  { %1590 = vrot.lane.b32.xlu0 %v3191_v63, %s3179_s26 }
0x12a6   :  { %v2864_v42 = vpop.permute.xlu0 %2863 }
0x12a7   :  { %v2866_v16 = vunpack.i.h.bf16 %v2864_v42  ;;  %v2865_v2 = vunpack.i.l.bf16 %v2864_v42  ;;  %v2791_v42 = vld [vmem:[#allocation12 + $0x10] sm:$0xff] }
0x12a8   :  { %1972 = vmatpush.bf16.msra.mxu3 %v2791_v42 }
0x12a9   :  { %v3709_v5 = vsel %vm240_vm1, %v1496_v3, %v2865_v2  ;;  %v3712_v7 = vsel %vm240_vm1, %v1497_v4, %v2866_v16  ;;  %v2799_v16 = vld [vmem:[#allocation12 + $0x50] sm:$0xff] }
0x12aa   :  { %v2882_v17 = vpack.i.bf16 %v3712_v7, %v3709_v5  ;;  %1986 = vmatpush.bf16.msrb.mxu0 %v2799_v16 }
0x12ac   :  { %2883 = vrot.lane.b32.xlu1 %v2882_v17, %s3179_s26 }
0x12f5   :  { %v2869_v8 = vpop.permute.xlu1 %2868 }
0x12f6   :  { %v2871_v12 = vunpack.i.h.bf16 %v2869_v8  ;;  %v2870_v15 = vunpack.i.l.bf16 %v2869_v8  ;;  %v2790_v8 = vld [vmem:[#allocation12 + $0x8] sm:$0xff] }
0x12f7   :  { %1973 = vmatpush.bf16.msra.mxu3 %v2790_v8 }
0x12f8   :  { %v1540_v29 = vsel %vm240_vm1, %v1492_v22, %v2870_v15  ;;  %v3719_v32 = vsel %vm240_vm1, %v1493_v27, %v2871_v12  ;;  %v2798_v12 = vld [vmem:[#allocation12 + $0x48] sm:$0xff]  ;;  %v2789_v22 = vld [vmem:[#allocation12] sm:$0xff] }
0x12f9   :  { %v2887_v0 = vpack.i.bf16 %v3719_v32, %v1540_v29  ;;  %1987 = vmatpush.bf16.msrb.mxu0 %v2798_v12  ;;  %v2797_v27 = vld [vmem:[#allocation12 + $0x40] sm:$0xff] }
0x12fb   :  { %2888 = vrot.lane.b32.xlu2 %v2887_v0, %s3179_s26  ;;  %1974 = vmatpush.bf16.msra.mxu3 %v2789_v22 }
0x12fd   :  { %v2874_v58 = vpop.permute.xlu1 %2873  ;;  %1988 = vmatpush.bf16.msrb.mxu0 %v2797_v27 }
0x12fe   :  { %v2876_v23 = vunpack.i.h.bf16 %v2874_v58  ;;  %v2875_v52 = vunpack.i.l.bf16 %v2874_v58 }
0x1300   :  { %v3724_v9 = vsel %vm240_vm1, %v1498_v41, %v2875_v52  ;;  %v3727_v11 = vsel %vm240_vm1, %v1499_v48, %v2876_v23  ;;  %v2899_v23 = vld [vmem:[%s3991_s6] ss:$0 sm:$0xff] }
0x1301   :  { %v2892_v33 = vpack.i.bf16 %v3727_v11, %v3724_v9 }
0x1303   :  { %2893 = vrot.lane.b32.xlu2 %v2892_v33, %s3179_s26  ;;  %s2447_s26 = sshll.u32 %s3193_s4, 4  ;;  %s2448_s26 = int_to_ptr.vmem [resolvable:$true] %s2447_s26 }
0x130e   :  { %v2879_v35 = vpop.permute.xlu0 %2878 }
0x130f   :  { %v2881_v37 = vunpack.i.h.bf16 %v2879_v35  ;;  %v2880_v44 = vunpack.i.l.bf16 %v2879_v35 }
0x1311   :  { %v3734_v6 = vsel %vm1601_vm14, %v3699_v60, %v2881_v37  ;;  %v3738_v14 = vsel %vm1601_vm14, %v3719_v32, %v2880_v44 }
0x1312   :  { %v1614_v36 = vpack.c.bf16 %v3734_v6, %v3734_v6  ;;  %v1613_v38 = vpack.c.bf16 %v3738_v14, %v3738_v14  ;;  %v1807_v30 = vpack.c.bf16 %v3702_v25, %v3738_v14  ;;  %v1808_v39 = vpack.c.bf16 %v3709_v5, %v3734_v6 }
0x1314   :  { %1629 = vst [vmem:[#allocation1 + $0x2] ss:$9 sm:$0xff] %v1613_v38 }
0x1315   :  { %1632 = vst [vmem:[#allocation1 + $0x3] ss:$9 sm:$0xff] %v1614_v36  ;;  %v1825_v36 = vrot.slane %v1807_v30, 3 }
0x1316   :  { %v1591_v15 = vpop.permute.xlu0 %1590 }
0x131e   :  { %v2884_v10 = vpop.permute.xlu1 %2883 }
0x131f   :  { %v2886_v40 = vunpack.i.h.bf16 %v2884_v10  ;;  %v2885_v43 = vunpack.i.l.bf16 %v2884_v10 }
0x1321   :  { %v3746_v26 = vsel %vm1601_vm14, %v3709_v5, %v2886_v40  ;;  %v3750_v20 = vsel %vm1601_vm14, %v3702_v25, %v2885_v43 }
0x1322   :  { %v1616_v1 = vpack.c.bf16 %v3746_v26, %v3746_v26  ;;  %v1615_v45 = vpack.c.bf16 %v3750_v20, %v3750_v20  ;;  %v1809_v34 = vpack.c.bf16 %v3712_v7, %v3750_v20  ;;  %v1810_v37 = vpack.c.bf16 %v3724_v9, %v3746_v26 }
0x1324   :  { %1635 = vst [vmem:[#allocation1 + $0x4] ss:$9 sm:$0xff] %v1615_v45  ;;  %v1827_v25 = vrot.slane %v1809_v34, 3  ;;  %v1828_v6 = vrot.slane %v1810_v37, 3 }
0x1325   :  { %1638 = vst [vmem:[#allocation1 + $0x5] ss:$9 sm:$0xff] %v1616_v1 }
0x1326   :  { %v1846_v26 = vsel %vm1831_vm15, %v1809_v34, %v1827_v25  ;;  %v1849_v20 = vsel %vm1831_vm15, %v1810_v37, %v1828_v6  ;;  %v2801_v25 = vld [vmem:[#allocation14 + $0x4] sm:$0xf]  ;;  %v2610_v6 = vld [vmem:[#allocation14] sm:$0xf] }
0x1355   :  { %v2889_v59 = vpop.permute.xlu2 %2888 }
0x1356   :  { %v2891_v51 = vunpack.i.h.bf16 %v2889_v59  ;;  %v2890_v18 = vunpack.i.l.bf16 %v2889_v59 }
0x1358   :  { %v1603_v54 = vsel %vm1601_vm14, %v1540_v29, %v2891_v51  ;;  %v1602_v61 = vsel %vm1601_vm14, 0.0, %v2890_v18  ;;  %v1610_v29 = vsel %vm1601_vm14, %v3727_v11, %v1591_v15 }
0x1359   :  { %v1612_v55 = vpack.c.bf16 %v1603_v54, %v1603_v54  ;;  %v1611_v56 = vpack.c.bf16 %v1602_v61, %v1602_v61  ;;  %v1619_v0 = vpack.c.bf16 %v1610_v29, %v1610_v29  ;;  %v1805_v41 = vpack.c.bf16 %v3719_v32, %v1602_v61 }
0x135a   :  { %v1806_v33 = vpack.c.bf16 %v3699_v60, %v1603_v54  ;;  %v1826_v60 = vrot.slane %v1808_v39, 3 }
0x135b   :  { %1623 = vst [vmem:[#allocation1] ss:$9 sm:$0xff] %v1611_v56  ;;  %v1823_v35 = vrot.slane %v1805_v41, 3 }
0x135c   :  { %1626 = vst [vmem:[#allocation1 + $0x1] ss:$9 sm:$0xff] %v1612_v55  ;;  %v1824_v44 = vrot.slane %v1806_v33, 3 }
0x135d   :  { %v2894_v24 = vpop.permute.xlu2 %2893  ;;  %v1834_v14 = vsel %vm1831_vm15, %v1805_v41, %v1823_v35 }
0x135e   :  { %v2896_v62 = vunpack.i.h.bf16 %v2894_v24  ;;  %v2895_v63 = vunpack.i.l.bf16 %v2894_v24 }
0x1360   :  { %v3760_v2 = vsel %vm1601_vm14, %v3724_v9, %v2896_v62  ;;  %v1608_v3 = vsel %vm1601_vm14, %v3712_v7, %v2895_v63  ;;  %v1837_v7 = vsel %vm1831_vm15, %v1806_v33, %v1824_v44  ;;  %v1840_v9 = vsel %vm1831_vm15, %v1807_v30, %v1825_v36  ;;  %v2803_v44 = vld [vmem:[#allocation14 + $0x14] sm:$0xf]  ;;  %v2620_v36 = vld [vmem:[#allocation14 + $0x18] sm:$0xf0] }
0x1361   :  { %v1618_v4 = vpack.c.bf16 %v3760_v2, %v3760_v2  ;;  %v1617_v17 = vpack.c.bf16 %v1608_v3, %v1608_v3  ;;  %v1811_v32 = vpack.c.bf16 %v3727_v11, %v1608_v3  ;;  %v1812_v10 = vpack.c.bf16 0.0, %v3760_v2 }
0x1362   :  { %v1843_v11 = vsel %vm1831_vm15, %v1808_v39, %v1826_v60  ;;  %v2623_v60 = vor.u32 %v2803_v44, %v2620_v36  ;;  %v2668_v44 = vld [vmem:[%s3996_s11 + $0x50] sm:$0xf]  ;;  %v2816_v36 = vld [vmem:[%s3996_s11 + $0x54] sm:$0xf0] }
0x1363   :  { %1641 = vst [vmem:[#allocation1 + $0x6] ss:$9 sm:$0xff] %v1617_v17  ;;  %v1829_v40 = vrot.slane %v1811_v32, 3  ;;  %v1830_v43 = vrot.slane %v1812_v10, 3 }
0x1364   :  { %1644 = vst [vmem:[#allocation1 + $0x7] ss:$9 sm:$0xff] %v1618_v4  ;;  %2093 = vmatpush.bf16.msra.mxu0 %v2623_v60  ;;  %v2716_v60 = vld [vmem:[%s3996_s11 + $0xb0] sm:$0xf] }
0x1365   :  { %v1852_v1 = vsel %vm1831_vm15, %v1811_v32, %v1829_v40  ;;  %v1855_v45 = vsel %vm1831_vm15, %v1812_v10, %v1830_v43  ;;  %v2618_v32 = vld [vmem:[#allocation14 + $0x10] sm:$0xf]  ;;  %v2804_v10 = vld [vmem:[#allocation14 + $0x14] sm:$0xf0] }
0x136b   :  { %v1645_v58 = vld [vmem:[#allocation1] sm:$0xff] }
0x136c   :  { %1729 = vmatmul.bf16.vlgmr.msra.gmra.mxu2 %v1645_v58  ;;  %1647 = vst [vmem:[#allocation1] ss:$9 sm:$0xff] %v1619_v0 }
0x136d   :  { %1707 = vst [vmem:[#allocation1 + $0x20] ss:$4 sm:$0xff] %v2899_v23 }
0x136e   :  { %1709 = vst [vmem:[#allocation1 + $0x21] ss:$4 sm:$0xff] %v2899_v23 }
0x136f   :  { %1711 = vst [vmem:[#allocation1 + $0x22] ss:$4 sm:$0xff] %v2899_v23 }
0x1370   :  { %1713 = vst [vmem:[#allocation1 + $0x23] ss:$4 sm:$0xff] %v2899_v23 }
0x1373   :  { %v1648_v52 = vld [vmem:[#allocation1] sm:$0xff] }
0x1374   :  { %1699 = vst [vmem:[#allocation1] ss:$4 sm:$0xff] %v2899_v23 }
0x1375   :  { %1701 = vst [vmem:[#allocation1 + $0x1] ss:$4 sm:$0xff] %v2899_v23 }
0x1376   :  { %1703 = vst [vmem:[#allocation1 + $0x2] ss:$4 sm:$0xff] %v2899_v23 }
0x1377   :  { %1705 = vst [vmem:[#allocation1 + $0x3] ss:$4 sm:$0xff] %v2899_v23  ;;  %v1715_v38 = vld.sshfl [vmem:[#allocation1 + $0x20] sm:$0xff pattern:$0x73625140] }
0x137c   :  { %1734 = vmatmul.bf16.gmra.mxu2 %v1648_v52 }
0x137e   :  { %v1714_v48 = vld.sshfl [vmem:[#allocation1] sm:$0xff pattern:$0x73625140] }
0x137f   :  { %1716 = vst [vmem:[#allocation1] ss:$4 sm:$0xff] %v2899_v23 }
0x1386   :  { %v3784_v5 = vld.sshfl [vmem:[#allocation1] sm:$0xff pattern:$0x73625140] }
0x1387   :  { %1856 = vst [vmem:[#allocation1] ss:$9 sm:$0xff] %v1834_v14  ;;  %v2612_v14 = vld [vmem:[#allocation14 + $0x8] sm:$0xf0] }
0x1388   :  { %1858 = vst [vmem:[#allocation1 + $0x1] ss:$9 sm:$0xff] %v1837_v7  ;;  %v2802_v7 = vld [vmem:[#allocation14 + $0x4] sm:$0xf0] }
0x1389   :  { %1860 = vst [vmem:[#allocation1 + $0x2] ss:$9 sm:$0xff] %v1840_v9  ;;  %v2615_v9 = vor.u32 %v2801_v25, %v2612_v14  ;;  %v2669_v14 = vor.u32 %v2816_v36, %v2668_v44  ;;  %v2835_v44 = vld [vmem:[#allocation15 + $0x30] sm:$0xff]  ;;  %v2834_v36 = vld [vmem:[#allocation15 + $0x28] sm:$0xff] }
0x138a   :  { %1862 = vst [vmem:[#allocation1 + $0x3] ss:$9 sm:$0xff] %v1843_v11  ;;  %v2611_v11 = vor.u32 %v2802_v7, %v2610_v6  ;;  %v2827_v6 = vld [vmem:[%s3996_s11 + $0xb4] sm:$0xf]  ;;  %v2718_v7 = vld [vmem:[%s3996_s11 + $0xb8] sm:$0xf0] }
0x138b   :  { %1864 = vst [vmem:[#allocation1 + $0x4] ss:$9 sm:$0xff] %v1846_v26  ;;  %2094 = vmatpush.bf16.msra.mxu0 %v2615_v9 }
0x138c   :  { %1866 = vst [vmem:[#allocation1 + $0x5] ss:$9 sm:$0xff] %v1849_v20 }
0x138d   :  { %1868 = vst [vmem:[#allocation1 + $0x6] ss:$9 sm:$0xff] %v1852_v1 }
0x138e   :  { %1870 = vst [vmem:[#allocation1 + $0x7] ss:$9 sm:$0xff] %v1855_v45 }
0x138f   :  { %1954 = vst [vmem:[#allocation1 + $0x20] ss:$4 sm:$0xff] %v2900_v47 }
0x1390   :  { %1956 = vst [vmem:[#allocation1 + $0x21] ss:$4 sm:$0xff] %v2900_v47 }
0x1391   :  { %1958 = vst [vmem:[#allocation1 + $0x22] ss:$4 sm:$0xff] %v2900_v47 }
0x1392   :  { %1960 = vst [vmem:[#allocation1 + $0x23] ss:$4 sm:$0xff] %v2900_v47 }
0x1395   :  { %v1871_v13 = vld [vmem:[#allocation1] sm:$0xff]  ;;  %v1872_v31 = vld [vmem:[#allocation1 + $0x9] sm:$0xff] }
0x1396   :  { %1975 = vmatmul.bf16.vlgmr.msra.gmra.mxu3 %v1871_v13  ;;  %2607 = vmatmul.msk.bf16.vlgmr.msrb.gmra.mxu0 %vm1601_vm14, %v1872_v31  ;;  %1946 = vst [vmem:[#allocation1] ss:$4 sm:$0xff] %v2900_v47 }
0x1397   :  { %1948 = vst [vmem:[#allocation1 + $0x1] ss:$4 sm:$0xff] %v2900_v47 }
0x1398   :  { %1950 = vst [vmem:[#allocation1 + $0x2] ss:$4 sm:$0xff] %v2900_v47 }
0x1399   :  { %1952 = vst [vmem:[#allocation1 + $0x3] ss:$4 sm:$0xff] %v2900_v47  ;;  %v1962_v43 = vld.sshfl [vmem:[#allocation1 + $0x20] sm:$0xff pattern:$0x73625140] }
0x13a0   :  { %v1961_v34 = vld.sshfl [vmem:[#allocation1] sm:$0xff pattern:$0x73625140] }
0x13ef   :  { %v1730_v28 = vpop.f32.mrf.mxu2 }
0x13f0   :  { %v1731_v46 = vadd.f32 %v1730_v28, %v1714_v48 }
0x13f2   :  { %v1741_v49 = vrot.slane %v1731_v46, 2  ;;  %v1742_v21 = vrot.slane %v1731_v46, 4  ;;  %v1743_v50 = vrot.slane %v1731_v46, 6  ;;  %v1753_v59 = vmax.f32 %v1731_v46, 0.0 }
0x13f4   :  { %v1754_v51 = vmax.f32 %v1741_v49, 0.0  ;;  %v1755_v18 = vmax.f32 %v1742_v21, 0.0  ;;  %v1756_v53 = vmax.f32 %v1743_v50, 0.0  ;;  %v1763_v54 = vsel %vm1762_vm0, %v1753_v59, -inf }
0x13f6   :  { %v1765_v61 = vsel %vm1762_vm0, %v1755_v18, -inf  ;;  %v1766_v55 = vsel %vm1762_vm0, %v1756_v53, -inf  ;;  %v1764_v56 = vsel %vm1762_vm0, %v1754_v51, -inf }
0x13f7   :  { %v1732_v57 = vpop.f32.mrf.mxu2 }
0x13f8   :  { %v1733_v19 = vadd.f32 %v1732_v57, %v1715_v38 }
0x13fa   :  { %v1744_v24 = vrot.slane %v1733_v19, 2  ;;  %v1745_v62 = vrot.slane %v1733_v19, 4  ;;  %v1746_v63 = vrot.slane %v1733_v19, 6  ;;  %v1757_v42 = vmax.f32 %v1733_v19, 0.0 }
0x13fc   :  { %v1758_v16 = vmax.f32 %v1744_v24, 0.0  ;;  %v1759_v2 = vmax.f32 %v1745_v62, 0.0  ;;  %v1760_v3 = vmax.f32 %v1746_v63, 0.0  ;;  %v1767_v4 = vsel %vm1762_vm0, %v1757_v42, -inf }
0x13fd   :  { %v1768_v17 = vmax.f32 %v1763_v54, %v1767_v4 }
0x13fe   :  { %v1771_v8 = vsel %vm1762_vm0, %v1759_v2, -inf  ;;  %v1773_v12 = vsel %vm1762_vm0, %v1760_v3, -inf  ;;  %v1769_v15 = vsel %vm1762_vm0, %v1758_v16, -inf }
0x13ff   :  { %v1735_v22 = vpop.f32.mrf.mxu2  ;;  %v1770_v27 = vmax.f32 %v1764_v56, %v1769_v15  ;;  %v1772_v29 = vmax.f32 %v1765_v61, %v1771_v8  ;;  %v1774_v0 = vmax.f32 %v1766_v55, %v1773_v12 }
0x1400   :  { %v1736_v58 = vadd.f32 %v1735_v22, %v3784_v5  ;;  %v2619_v5 = vor.u32 %v2804_v10, %v2618_v32  ;;  %v2684_v22 = vld [vmem:[%s3996_s11 + $0x70] sm:$0xf]  ;;  %v2815_v32 = vld [vmem:[%s3996_s11 + $0x54] sm:$0xf]  ;;  %v2828_v10 = vld [vmem:[%s3996_s11 + $0xb4] sm:$0xf0] }
0x1401   :  { %v3806_v23 = vmax.f32 %v1772_v29, %v1774_v0  ;;  %v2819_v29 = vld [vmem:[%s3996_s11 + $0x74] sm:$0xf]  ;;  %v2717_v25 = vor.u32 %v2828_v10, %v2716_v60  ;;  %v2045_v60 = vld [vmem:[%s3995_s10] sm:$0x3] }
0x1402   :  { %v1761_v52 = vmax.f32 %v1736_v58, 0.0  ;;  %2080 = vmatpush.bf16.msrb.mxu1 %v2619_v5  ;;  %v2686_v58 = vld [vmem:[%s3996_s11 + $0x78] sm:$0xf0]  ;;  %v2660_v5 = vld [vmem:[%s3996_s11 + $0x40] sm:$0xf]  ;;  %v2047_v10 = vperm.slane %v2045_v60, 0 }
0x1403   :  { %2272 = vmatpush.bf16.msrb.mxu3 %v2717_v25  ;;  %v2048_v25 = vperm.slane %v2045_v60, 1 }
0x1404   :  { %v1775_v41 = vsel %vm1762_vm0, %v1761_v52, -inf  ;;  %v2676_v52 = vld [vmem:[%s3996_s11 + $0x60] sm:$0xf] }
0x1405   :  { %v1776_v48 = vmax.f32 %v1768_v17, %v1775_v41  ;;  %v2818_v41 = vld [vmem:[%s3996_s11 + $0x64] sm:$0xf0] }
0x1406   :  { %2081 = vmatpush.bf16.msrb.mxu1 %v2611_v11  ;;  %v2721_v11 = vor.u32 %v2827_v6, %v2718_v7 }
0x1407   :  { %v3809_v33 = vmax.f32 %v1776_v48, %v1770_v27  ;;  %v1737_v30 = vpop.f32.mrf.mxu2  ;;  %v2820_v27 = vld [vmem:[%s3996_s11 + $0x74] sm:$0xf0]  ;;  %v2689_v48 = vor.u32 %v2819_v29, %v2686_v58  ;;  %v2692_v29 = vld [vmem:[%s3996_s11 + $0x80] sm:$0xf] }
0x1408   :  { %v2685_v0 = vor.u32 %v2820_v27, %v2684_v22  ;;  %v2817_v30 = vld [vmem:[%s3996_s11 + $0x64] sm:$0xf]  ;;  %2298 = vmatpush.bf16.msrb.mxu0 %v2721_v11 }
0x1409   :  { %v1779_v39 = vmax.f32 %v3809_v33, %v3806_v23  ;;  %2281 = vmatpush.bf16.msrb.mxu2 %v2689_v48  ;;  %v2806_v23 = vld [vmem:[%s3996_s11 + $0x4] sm:$0xf0]  ;;  %v2805_v33 = vld [vmem:[%s3996_s11 + $0x4] sm:$0xf] }
0x140a   :  { %2255 = vmatpush.bf16.msra.mxu1 %v2685_v0  ;;  %v2822_v0 = vld [vmem:[%s3996_s11 + $0x84] sm:$0xf0]  ;;  %v2821_v48 = vld [vmem:[%s3996_s11 + $0x84] sm:$0xf] }
0x140b   :  { %v2693_v58 = vor.u32 %v2822_v0, %v2692_v29 }
0x1413   :  { %v1990_v35 = vpop.f32.mrf.mxu0 }
0x1419   :  { %v1976_v37 = vpop.f32.mrf.mxu3 }
0x141a   :  { %v1977_v38 = vadd.f32 %v1976_v37, %v1961_v34  ;;  %v2678_v34 = vld [vmem:[%s3996_s11 + $0x68] sm:$0xf0] }
0x141b   :  { %v1992_v31 = vpop.f32.mrf.mxu0  ;;  %v2681_v37 = vor.u32 %v2817_v30, %v2678_v34  ;;  %v2694_v30 = vld [vmem:[%s3996_s11 + $0x88] sm:$0xf0] }
0x141c   :  { %v1991_v40 = vadd.f32 %v1990_v35, %v1977_v38  ;;  %v2677_v35 = vor.u32 %v2818_v41, %v2676_v52  ;;  %v2670_v38 = vld [vmem:[%s3996_s11 + $0x58] sm:$0xf0]  ;;  %v2628_v52 = vld [vmem:[%s3996_s11] sm:$0xf]  ;;  %v2630_v41 = vld [vmem:[%s3996_s11 + $0x8] sm:$0xf0] }
0x141d   :  { %2282 = vmatpush.bf16.msrb.mxu2 %v2681_v37  ;;  %v2673_v9 = vor.u32 %v2815_v32, %v2670_v38  ;;  %v2633_v34 = vor.u32 %v2805_v33, %v2630_v41  ;;  %v2836_v37 = vld [vmem:[#allocation15 + $0x38] sm:$0xff]  ;;  %v2833_v32 = vld [vmem:[#allocation15 + $0x20] sm:$0xff] }
0x141e   :  { %v1997_v26 = vrot.slane %v1991_v40, 2  ;;  %v1998_v20 = vrot.slane %v1991_v40, 4  ;;  %v1999_v1 = vrot.slane %v1991_v40, 6  ;;  %v2009_v46 = vmax.f32 %v1991_v40, 0.0  ;;  %2256 = vmatpush.bf16.msra.mxu1 %v2677_v35  ;;  %v2814_v40 = vld [vmem:[%s3996_s11 + $0x44] sm:$0xf0] }
0x141f   :  { %v2697_v35 = vor.u32 %v2821_v48, %v2694_v30  ;;  %v2832_v38 = vld [vmem:[#allocation15 + $0x18] sm:$0xff] }
0x1420   :  { %v2010_v47 = vmax.f32 %v1997_v26, 0.0  ;;  %v2011_v49 = vmax.f32 %v1998_v20, 0.0  ;;  %v2012_v21 = vmax.f32 %v1999_v1, 0.0  ;;  %v2017_v56 = vsel %vm1762_vm0, %v2009_v46, -inf  ;;  %v2826_v26 = vld [vmem:[%s3996_s11 + $0xa4] sm:$0xf0] }
0x1421   :  { %v1978_v45 = vpop.f32.mrf.mxu3  ;;  %v2813_v20 = vld [vmem:[%s3996_s11 + $0x44] sm:$0xf]  ;;  %v2662_v1 = vld [vmem:[%s3996_s11 + $0x48] sm:$0xf0]  ;;  %v2661_v46 = vor.u32 %v2814_v40, %v2660_v5  ;;  %2283 = vmatpush.bf16.msrb.mxu2 %v2673_v9 }
0x1422   :  { %v1979_v13 = vadd.f32 %v1978_v45, %v1962_v43  ;;  %v2018_v57 = vsel %vm1762_vm0, %v2010_v47, -inf  ;;  %v2019_v19 = vsel %vm1762_vm0, %v2011_v49, -inf  ;;  %v2020_v24 = vsel %vm1762_vm0, %v2012_v21, -inf  ;;  %v2708_v43 = vld [vmem:[%s3996_s11 + $0xa0] sm:$0xf]  ;;  %2257 = vmatpush.bf16.msra.mxu1 %v2669_v14 }
0x1423   :  { %v2709_v45 = vor.u32 %v2826_v26, %v2708_v43  ;;  %v2824_v49 = vld [vmem:[%s3996_s11 + $0x94] sm:$0xf0]  ;;  %v2665_v21 = vor.u32 %v2813_v20, %v2662_v1  ;;  %v2840_v26 = vld [vmem:[#allocation15 + $0x58] sm:$0xff] }
0x1424   :  { %v1993_v28 = vadd.f32 %v1992_v31, %v1979_v13  ;;  %v2825_v13 = vld [vmem:[%s3996_s11 + $0xa4] sm:$0xf]  ;;  %v2710_v31 = vld [vmem:[%s3996_s11 + $0xa8] sm:$0xf0]  ;;  %v2831_v20 = vld [vmem:[#allocation15 + $0x10] sm:$0xff] }
0x1425   :  { %v2713_v47 = vor.u32 %v2825_v13, %v2710_v31  ;;  %2273 = vmatpush.bf16.msrb.mxu3 %v2709_v45  ;;  %2284 = vmatpush.bf16.msrb.mxu2 %v2665_v21  ;;  %v2839_v1 = vld [vmem:[#allocation15 + $0x50] sm:$0xff]  ;;  %v2830_v45 = vld [vmem:[#allocation15 + $0x8] sm:$0xff]  ;;  %v2829_v31 = vld [vmem:[#allocation15] sm:$0xff] }
0x1426   :  { %v2000_v50 = vrot.slane %v1993_v28, 2  ;;  %v2001_v59 = vrot.slane %v1993_v28, 4  ;;  %v2002_v51 = vrot.slane %v1993_v28, 6  ;;  %v2013_v18 = vmax.f32 %v1993_v28, 0.0  ;;  %v2700_v28 = vld [vmem:[%s3996_s11 + $0x90] sm:$0xf]  ;;  %2258 = vmatpush.bf16.msra.mxu1 %v2661_v46 }
0x1427   :  { %2299 = vmatpush.bf16.msrb.mxu0 %v2713_v47  ;;  %v2838_v13 = vld [vmem:[#allocation15 + $0x48] sm:$0xff]  ;;  %v2126_v46 = vld [vmem:[%s3997_s12] sm:$0x3] }
0x1428   :  { %v2014_v53 = vmax.f32 %v2000_v50, 0.0  ;;  %v2015_v54 = vmax.f32 %v2001_v59, 0.0  ;;  %v2016_v61 = vmax.f32 %v2002_v51, 0.0  ;;  %v2021_v55 = vsel %vm1762_vm0, %v2013_v18, -inf  ;;  %v2652_v50 = vld [vmem:[%s3996_s11 + $0x30] sm:$0xf] }
0x1429   :  { %v2022_v16 = vmax.f32 %v2017_v56, %v2021_v55  ;;  %v2812_v59 = vld [vmem:[%s3996_s11 + $0x34] sm:$0xf0]  ;;  %v2701_v51 = vor.u32 %v2824_v49, %v2700_v28  ;;  %v2823_v18 = vld [vmem:[%s3996_s11 + $0x94] sm:$0xf]  ;;  %v2837_v28 = vld [vmem:[#allocation15 + $0x40] sm:$0xff]  ;;  %v2128_v49 = vperm.slane %v2126_v46, 0 }
0x142a   :  { %v2023_v62 = vsel %vm1762_vm0, %v2014_v53, -inf  ;;  %v2025_v63 = vsel %vm1762_vm0, %v2015_v54, -inf  ;;  %v2027_v42 = vsel %vm1762_vm0, %v2016_v61, -inf  ;;  %v2811_v53 = vld [vmem:[%s3996_s11 + $0x34] sm:$0xf]  ;;  %v2653_v56 = vor.u32 %v2812_v59, %v2652_v50 }
0x142b   :  { %v2024_v2 = vmax.f32 %v2018_v57, %v2023_v62  ;;  %v2026_v3 = vmax.f32 %v2019_v19, %v2025_v63  ;;  %v2028_v4 = vmax.f32 %v2020_v24, %v2027_v42  ;;  %v2654_v54 = vld [vmem:[%s3996_s11 + $0x38] sm:$0xf0]  ;;  %v2644_v19 = vld [vmem:[%s3996_s11 + $0x20] sm:$0xf]  ;;  %v2810_v24 = vld [vmem:[%s3996_s11 + $0x24] sm:$0xf0]  ;;  %2274 = vmatpush.bf16.msrb.mxu3 %v2701_v51 }
0x142c   :  { %v2702_v61 = vld [vmem:[%s3996_s11 + $0x98] sm:$0xf0]  ;;  %v2657_v57 = vor.u32 %v2811_v53, %v2654_v54  ;;  %v2809_v62 = vld [vmem:[%s3996_s11 + $0x24] sm:$0xf]  ;;  %v2646_v63 = vld [vmem:[%s3996_s11 + $0x28] sm:$0xf0]  ;;  %2259 = vmatpush.bf16.msra.mxu1 %v2653_v56  ;;  %v2645_v42 = vor.u32 %v2810_v24, %v2644_v19 }
0x142d   :  { %v2029_v17 = vmax.f32 %v2022_v16, %v2024_v2  ;;  %v2030_v8 = vmax.f32 %v2026_v3, %v2028_v4  ;;  %v2705_v55 = vor.u32 %v2823_v18, %v2702_v61  ;;  %v2649_v16 = vor.u32 %v2809_v62, %v2646_v63  ;;  %v2636_v2 = vld [vmem:[%s3996_s11 + $0x10] sm:$0xf]  ;;  %v2808_v3 = vld [vmem:[%s3996_s11 + $0x14] sm:$0xf0]  ;;  %v2807_v4 = vld [vmem:[%s3996_s11 + $0x14] sm:$0xf] }
0x142e   :  { %2285 = vmatpush.bf16.msrb.mxu2 %v2657_v57  ;;  %v2129_v50 = vperm.slane %v2126_v46, 1 }
0x142f   :  { %v2031_v12 = vmax.f32 %v2029_v17, %v2030_v8  ;;  %2300 = vmatpush.bf16.msrb.mxu0 %v2705_v55  ;;  %v2638_v17 = vld [vmem:[%s3996_s11 + $0x18] sm:$0xf0]  ;;  %v2637_v8 = vor.u32 %v2808_v3, %v2636_v2  ;;  %2275 = vmatpush.bf16.msrb.mxu3 %v2693_v58  ;;  %v2901_v2 = vld [vmem:[%s3999_s14] ss:$0 sm:$0xff] }
0x1430   :  { %2260 = vmatpush.bf16.msra.mxu1 %v2645_v42 }
0x1431   :  { %2033 = vst [vmem:[#allocation1] ss:$4 sm:$0xff] %v2031_v12  ;;  %v2641_v12 = vor.u32 %v2807_v4, %v2638_v17 }
0x1432   :  { %2286 = vmatpush.bf16.msrb.mxu2 %v2649_v16 }
0x1433   :  { %2301 = vmatpush.bf16.msrb.mxu0 %v2697_v35  ;;  %2414 = vmatpush.bf16.msra.mxu3 %v2836_v37 }
0x1434   :  { %2261 = vmatpush.bf16.msra.mxu1 %v2637_v8 }
0x1436   :  { %2287 = vmatpush.bf16.msrb.mxu2 %v2641_v12 }
0x1437   :  { %2415 = vmatpush.bf16.msra.mxu3 %v2835_v44 }
0x1438   :  { %v2034_v15 = vld.sshfl [vmem:[#allocation1] sm:$0xff pattern:$0x73625140] }
0x1439   :  { %2035 = vrot.lane.b32.xlu1 %v2034_v15, %s3192_s8  ;;  %s2449_s8 = sshll.u32 %s4000_s15, 4  ;;  %s2450_s8 = int_to_ptr.hbm [resolvable:$true] %s2449_s8 }
0x143a   :  { %2288 = vmatpush.bf16.msrb.mxu2 %v2633_v34 }
0x143b   :  { %2416 = vmatpush.bf16.msra.mxu3 %v2834_v36 }
0x143f   :  { %2417 = vmatpush.bf16.msra.mxu3 %v2833_v32 }
0x1443   :  { %2418 = vmatpush.bf16.msra.mxu3 %v2832_v38 }
0x1447   :  { %2419 = vmatpush.bf16.msra.mxu3 %v2831_v20 }
0x144b   :  { %2420 = vmatpush.bf16.msra.mxu3 %v2830_v45 }
0x144f   :  { %2421 = vmatpush.bf16.msra.mxu3 %v2829_v31 }
0x14ab   :  { %v2036_v15 = vpop.permute.xlu1 %2035 }
0x14ac   :  { %v2039_v22 = vsel %vm2038_vm2, %v1779_v39, %v2036_v15  ;;  %v2629_v39 = vor.u32 %v2806_v23, %v2628_v52 }
0x14ad   :  { %v2040_v27 = vpack.c.bf16 %v2039_v22, %v2039_v22 }
0x14ae   :  { %2262 = vmatpush.bf16.msra.mxu1 %v2629_v39 }
0x14af   :  { %2624 = vmatmul.msk.bf16.vlgmr.msrb.gmra.mxu1 %vm240_vm1, %v2040_v27  ;;  %2625 = vmatmul.msk.bf16.vlgmr.msra.gmra.mxu0 %vm240_vm1, %v2040_v27  ;;  %vm2440_vm1 = vcmask 41984  }
0x14b0   :  { %2431 = vmatpush.bf16.msra.mxu0 %v2840_v26 }
0x14b4   :  { %2432 = vmatpush.bf16.msra.mxu0 %v2839_v1 }
0x14b8   :  { %2433 = vmatpush.bf16.msra.mxu0 %v2838_v13 }
0x14bc   :  { %2434 = vmatpush.bf16.msra.mxu0 %v2837_v28 }
0x152c   :  { %v2083_v14 = vpop.f32.mrf.mxu1  ;;  %v2096_v5 = vpop.f32.mrf.mxu0 }
0x152d   :  { %v2084_v6 = vadd.f32 %v2083_v14, %v2047_v10  ;;  %v2097_v7 = vadd.f32 %v2096_v5, %v2048_v25 }
0x152f   :  { %v2100_v9 = vpack.c.bf16 %v2084_v6, %v2084_v6  ;;  %v2101_v40 = vpack.c.bf16 %v2097_v7, %v2097_v7 }
0x1531   :  { %2263 = vmatmul.bf16.vlgmr.msra.gmra.mxu1 %v2100_v9  ;;  %2722 = vmatmul.msk.bf16.vlgmr.msrb.gmra.mxu3 %vm1601_vm14, %v2101_v40 }
0x1532   :  { %2289 = vmatmul.bf16.vlgmr.msrb.gmra.mxu2 %v2100_v9  ;;  %2723 = vmatmul.msk.bf16.vlgmr.msrb.gmra.mxu0 %vm1601_vm14, %v2101_v40 }
0x1534   :  { %v2085_v11 = vpop.f32.mrf.mxu1  ;;  %v2098_v43 = vpop.f32.mrf.mxu0 }
0x15ae   :  { %v2264_v47 = vpop.f32.mrf.mxu1 }
0x15af   :  { %v2303_v21 = vpop.f32.mrf.mxu0  ;;  %v2265_v59 = vadd.f32 %v2264_v47, %v2128_v49 }
0x15b4   :  { %v2277_v51 = vpop.f32.mrf.mxu3 }
0x15b5   :  { %v2278_v18 = vadd.f32 %v2277_v51, %v2265_v59  ;;  %v2290_v53 = vpop.f32.mrf.mxu2 }
0x15b6   :  { %v2291_v54 = vadd.f32 %v2290_v53, %v2129_v50  ;;  %v2266_v61 = vpop.f32.mrf.mxu1 }
0x15b7   :  { %v2307_v55 = vmax.f32 %v2278_v18, 0.0  ;;  %v2305_v56 = vpop.f32.mrf.mxu0 }
0x15b8   :  { %v2304_v57 = vadd.f32 %v2303_v21, %v2291_v54 }
0x15b9   :  { %v2309_v19 = vpack.c.bf16 %v2307_v55, %v2307_v55 }
0x15ba   :  { %v2308_v24 = vmax.f32 %v2304_v57, 0.0 }
0x15bb   :  { %2422 = vmatmul.bf16.vlgmr.msra.gmra.mxu3 %v2309_v19 }
0x15bc   :  { %v2310_v62 = vpack.c.bf16 %v2308_v24, %v2308_v24  ;;  %v2279_v63 = vpop.f32.mrf.mxu3 }
0x15bd   :  { %v2292_v42 = vpop.f32.mrf.mxu2 }
0x15be   :  { %2772 = vmatmul.msk.bf16.vlgmr.msra.gmra.mxu0 %vm1601_vm14, %v2310_v62 }
0x163b   :  { %v2436_v16 = vpop.f32.mrf.mxu0 }
0x163e   :  { %v2423_v3 = vpop.f32.mrf.mxu3 }
0x163f   :  { %v2424_v4 = vadd.f32 %v2901_v2, %v2423_v3 }
0x1641   :  { %v2437_v17 = vadd.f32 %v2436_v16, %v2424_v4 }
0x1643   :  { %v2438_v8 = vpop.f32.mrf.mxu0  ;;  %2441 = vst.msk [vmem:[#allocation17] sm:$0x3] %vm2440_vm1, %v2437_v17 }
0x1644   :  { %2452 = dma.vmem_to_hbm [thread:$0]  %s2448_s26, 32, %s2450_s8, [#allocation8]  }
0x1646   :  { %v2425_v12 = vpop.f32.mrf.mxu3 }
0x1647   :  { %3176 = dma.done.wait [#allocation8], 32  }
0x1648   :  { %3177 = vsyncadd [#allocation8], 4294967264 }
0x1649   :  { %2457 = vsyncpa [#allocation7], 1 }
0x164a   :  { %2458 = vsyncpa [#allocation10], 1 }
0x164b   :  { %2459 = vsyncpa [#allocation13], 1 }
0x164c   :  { %2460 = vsyncpa [#allocation16], 1 }
0x164d   :  { %2461 = vsyncpa [#allocation8], 1 }

</bundles_post_ra>
